<compile_context>
chip_gen: v5e
topology: v5e:2x2
jax: 0.10.0
libtpu: 0.0.40
codegen_flags: <defaults>
</compile_context>

<pallas_src>
import functools

import jax
import jax.numpy as jnp
import numpy as np
from jax.experimental import pallas as pl
from jax.experimental.pallas import tpu as pltpu


_MIN_PALLAS_BYTES = 1 << 20      # below this, XLA's native transpose wins


def _prod(xs):
    return int(np.prod(xs, dtype=np.int64)) if len(xs) else 1


def _sublane_multiple(dtype):
    itemsize = jnp.dtype(dtype).itemsize
    return max(8, 32 // max(1, itemsize))   # f32 -> 8, bf16 -> 16, int8 -> 32


@functools.lru_cache(maxsize=1)
def _vmem_params():
    """(per-buffer block budget bytes, scoped vmem_limit_bytes), per chip gen.

    v5e / v6e: 128 MiB VMEM per core -> 8 MiB blocks, 64 MiB scoped limit.
    v7x: 64 MiB per core (and the highest HBM BW, so overhead amortization
    matters most) -> 4 MiB blocks, 32 MiB scoped limit.  Unknown -> v7x-safe.
    Double-buffered in+out footprint = 4x budget, well under the limit.
    """
    try:
        cap = int(pltpu.get_tpu_info().vmem_capacity_bytes)
    except Exception:   # interpret mode / older jax: stay conservative.
        cap = 0
    if cap >= (96 << 20):
        return 8 << 20, 64 << 20
    return 4 << 20, 32 << 20


def _sort_grid(counts):
    """Order grid axes by descending block count (largest leading -> better
    megacore sharding on v7x).  Returns (grid, positions) with positions[i]
    = new grid position of logical axis i."""
    order = sorted(range(len(counts)), key=lambda i: (-int(counts[i]), i))
    grid = tuple(int(counts[i]) for i in order)
    pos = [0] * len(counts)
    for new_i, old_i in enumerate(order):
        pos[old_i] = new_i
    return grid, tuple(pos)


# ----------------------------------------------------------------------------
# Kernels
# ----------------------------------------------------------------------------

def _transpose_minor_kernel(x_ref, o_ref):
    # (tP, tA, tB) -> (tP, tB, tA): one batched XLU minor-dims transpose so
    # Mosaic can schedule the per-slab transposes against the block DMAs
    # (no static Python unroll over slabs).
    o_ref[...] = jnp.swapaxes(x_ref[...], 1, 2)


def _transpose_rowcopy_kernel(tb, x_ref, o_ref):
    # (tA, tB, tR) -> (tB, tA, tR): bounded (tb <= 32) row scatter with
    # strided reads and dense, lane-contiguous stores (the store slot is the
    # scarce resource, especially on v5e).
    for b in range(tb):
        o_ref[b, :, :] = x_ref[:, b, :]


# ----------------------------------------------------------------------------
# Pallas paths
# ----------------------------------------------------------------------------

def _minor_transpose(x3, P, A, B, budget, vmem_limit):
    """(P, A, B) -> (P, B, A) via tiled XLU minor-dims transposes."""
    dtype = x3.dtype
    itemsize = jnp.dtype(dtype).itemsize

    # Square-ish tile cap: multiple of 128 lanes (valid for both the input and
    # the swapped output BlockSpec), dtype-aware so a block buffer is ~budget
    # bytes regardless of element width (1024 f32 / 2048 bf16 class at 4 MiB).
    side = int(np.sqrt(budget / itemsize))
    cap = max(128, (side // 128) * 128)
    tA = A if A <= cap else cap
    tB = B if B <= cap else cap
    tile_bytes = max(1, tA * tB * itemsize)

    # Fold P slabs until the block reaches the VMEM budget (no hard tP cap):
    # amortizes the ~0.35us/grid-step overhead for small (A, B) planes.
    tP = int(max(1, min(P, budget // tile_bytes)))

    counts = (pl.cdiv(P, tP), pl.cdiv(A, tA), pl.cdiv(B, tB))
    grid, (pP, pA, pB) = _sort_grid(counts)

    def in_map(*g):
        return (g[pP], g[pA], g[pB])

    def out_map(*g):
        return (g[pP], g[pB], g[pA])

    return pl.pallas_call(
        _transpose_minor_kernel,
        out_shape=jax.ShapeDtypeStruct((P, B, A), dtype),
        grid=grid,
        in_specs=[pl.BlockSpec((tP, tA, tB), in_map)],
        out_specs=pl.BlockSpec((tP, tB, tA), out_map),
        compiler_params=pltpu.CompilerParams(
            dimension_semantics=("parallel",) * len(grid),
            vmem_limit_bytes=vmem_limit),
    )(x3)


def _general_transpose(x5, P, A, Q, B, R, budget, vmem_limit):
    """(P, A, Q, B, R) -> (P, B, Q, A, R), tiled over A, B and R."""
    dtype = x5.dtype
    itemsize = jnp.dtype(dtype).itemsize
    sub = _sublane_multiple(dtype)

    # B tile: bounded in-kernel unroll; 32 is a multiple of every sublane pack.
    tB = B if B <= 32 else 32
    # R tile (lane dim): full extent, or a multiple of 128 sized for ~4 KiB of
    # contiguous HBM per row regardless of dtype (1024 f32 / 2048 bf16 / 4096 i8).
    r_cap = max(128, ((4096 // itemsize) // 128) * 128)
    tR = R if R <= r_cap else r_cap
    # A tile: fill the per-buffer budget; multiple of the sublane pack or full A.
    row_bytes = max(1, tB * tR * itemsize)
    max_tA = max(sub, (budget // row_bytes) // sub * sub)
    tA = A if A <= max_tA else max_tA

    counts = (P, Q, pl.cdiv(A, tA), pl.cdiv(B, tB), pl.cdiv(R, tR))
    grid, (pP, pQ, pA, pB, pR) = _sort_grid(counts)

    def in_map(*g):
        return (g[pP], g[pA], g[pQ], g[pB], g[pR])

    def out_map(*g):
        return (g[pP], g[pB], g[pQ], g[pA], g[pR])

    return pl.pallas_call(
        functools.partial(_transpose_rowcopy_kernel, tB),
        out_shape=jax.ShapeDtypeStruct((P, B, Q, A, R), dtype),
        grid=grid,
        in_specs=[pl.BlockSpec(
            (pl.Squeezed(), tA, pl.Squeezed(), tB, tR), in_map)],
        out_specs=pl.BlockSpec(
            (pl.Squeezed(), tB, pl.Squeezed(), tA, tR), out_map),
        compiler_params=pltpu.CompilerParams(
            dimension_semantics=("parallel",) * len(grid),
            vmem_limit_bytes=vmem_limit),
    )(x5)


# ----------------------------------------------------------------------------
# Public wrapper
# ----------------------------------------------------------------------------

def transpose_pallas(x, dim0, dim1, *, min_pallas_bytes=_MIN_PALLAS_BYTES):
    ndim = x.ndim
    if ndim < 2:
        return x
    d0 = dim0 % ndim
    d1 = dim1 % ndim
    if d0 == d1:
        return x
    d0, d1 = min(d0, d1), max(d0, d1)

    shape = x.shape
    out_shape = (shape[:d0] + (shape[d1],) + shape[d0 + 1:d1]
                 + (shape[d0],) + shape[d1 + 1:])

    itemsize = jnp.dtype(x.dtype).itemsize
    total_bytes = _prod(shape) * itemsize

    # Tiny / degenerate inputs: a Pallas launch + per-step overhead and masked
    # sub-128-lane stores lose to XLA's native transpose.
    if (total_bytes < min_pallas_bytes or 0 in shape
            or shape[d0] == 1 or shape[d1] == 1):
        return jnp.swapaxes(x, d0, d1)

    P = _prod(shape[:d0])
    A = int(shape[d0])
    Q = _prod(shape[d0 + 1:d1])
    B = int(shape[d1])
    R = _prod(shape[d1 + 1:])

    budget, vmem_limit = _vmem_params()

    if Q == 1 and R == 1:
        if A < 128 or B < 128:
            # Sub-128-lane tiles -> masked partial stores; XLA native wins.
            return jnp.swapaxes(x, d0, d1)
        out = _minor_transpose(x.reshape(P, A, B), P, A, B, budget, vmem_limit)
    else:
        if R * itemsize < 512:
            # TODO(synk): pack trailing elems into 32-bit lanes (pltpu.bitcast)
            # instead of falling back to XLA's native transpose.
            return jnp.swapaxes(x, d0, d1)
        out = _general_transpose(x.reshape(P, A, Q, B, R), P, A, Q, B, R,
                                 budget, vmem_limit)
    return out.reshape(out_shape)


class Transpose:
    """JAX/Pallas equivalent of the PyTorch Transpose module (no parameters)."""

    def __init__(self, dim0, dim1):
        self.dim0 = dim0
        self.dim1 = dim1

    def __call__(self, x):
        return transpose_pallas(x, self.dim0, self.dim1)


if __name__ == "__main__":
    key = jax.random.PRNGKey(0)
    ks = jax.random.split(key, 6)

    def check(x, d0, d1, min_bytes=_MIN_PALLAS_BYTES):
        y = jax.block_until_ready(
            transpose_pallas(x, d0, d1, min_pallas_bytes=min_bytes))
        ref = jnp.swapaxes(x, d0, d1)
        assert y.shape == ref.shape and y.dtype == ref.dtype
        np.testing.assert_array_equal(np.asarray(y), np.asarray(ref))

    # 1) Nominal module shape (batch=2, channels=4, 16x16 spatial),
    #    transpose(1, 2): small -> XLA-native fast path; also via the module.
    x1 = jax.random.normal(ks[0], (2, 4, 16, 16), dtype=jnp.float32)
    check(x1, 1, 2)
    y1 = jax.block_until_ready(Transpose(1, 2)(x1))
    np.testing.assert_array_equal(np.asarray(y1),
                                  np.asarray(jnp.swapaxes(x1, 1, 2)))

    # 2) (batch, seq, hidden) trailing swap -> tiled minor (XLU) Pallas path.
    x2 = jax.random.normal(ks[1], (2, 1024, 640), dtype=jnp.float32)
    check(x2, 1, 2)

    # 3) Minor path with a tiled / ragged A axis (A above the tile cap on v7x
    #    and above the folded cap on v5e/v6e), negative dims.
    x3 = jax.random.normal(ks[2], (1, 1500, 640), dtype=jnp.float32)
    check(x3, -2, -1)

    # 4) NCHW-style adjacent swap with trailing dims preserved -> general path
    #    (lane-dense R = 256, B tiled to 32-row scatter blocks).
    x4 = jax.random.normal(ks[3], (1, 128, 64, 256), dtype=jnp.float32)
    check(x4, 1, 2)

    # 5) Non-adjacent swap with a middle axis (Q > 1), forced through the
    #    general Pallas path (lane-dense R = 128).
    x5 = jax.random.normal(ks[4], (2, 8, 6, 4, 128), dtype=jnp.float32)
    check(x5, 1, 3, min_bytes=0)

    # 6) Small-R swap: routed to the XLA fallback by the lane-density check.
    x6 = jax.random.normal(ks[5], (2, 4, 6, 128), dtype=jnp.float32)
    check(x6, 1, 3, min_bytes=0)

    print("KERNEL_OK")
</pallas_src>

<mosaic_0001>
module attributes {stable_mosaic.version = 11 : i64} {
  func.func @_transpose_minor_kernel(%arg0: i32, %arg1: i32, %arg2: i32, %arg3: memref<1x1024x640xf32, #tpu.memory_space<vmem>>, %arg4: memref<1x640x1024xf32, #tpu.memory_space<vmem>>) attributes {dimension_semantics = [#tpu.dimension_semantics<parallel>, #tpu.dimension_semantics<parallel>, #tpu.dimension_semantics<parallel>], iteration_bounds = array<i64: 2, 1, 1>, scalar_prefetch = 0 : i64, scratch_operands = 0 : i64, tpu.core_type = #tpu.core_type<tc>, window_params = [{transform_indices = @transform_0, window_bounds = array<i64: 1, 1024, 640>}, {transform_indices = @transform_1, window_bounds = array<i64: 1, 640, 1024>}]} {
    %c0 = arith.constant 0 : index
    %c0_0 = arith.constant 0 : index
    %c0_1 = arith.constant 0 : index
    %0 = vector.load %arg3[%c0, %c0_0, %c0_1] : memref<1x1024x640xf32, #tpu.memory_space<vmem>>, vector<1x1024x640xf32>
    %1 = tpu.transpose %0, [0, 2, 1] : vector<1x1024x640xf32> -> vector<1x640x1024xf32>
    %c0_2 = arith.constant 0 : index
    %c0_3 = arith.constant 0 : index
    %c0_4 = arith.constant 0 : index
    %2 = vector.load %arg4[%c0_2, %c0_3, %c0_4] : memref<1x640x1024xf32, #tpu.memory_space<vmem>>, vector<1x640x1024xf32>
    tpu.vector_store %arg4[%c0_2, %c0_3, %c0_4], %1 {strides = array<i32>} : memref<1x640x1024xf32, #tpu.memory_space<vmem>>, vector<1x640x1024xf32>,
    return
  }
  func.func @transform_0(%arg0: i32, %arg1: i32, %arg2: i32) -> (i32, i32, i32) {
    %c0_i32 = arith.constant 0 : i32
    return %arg0, %arg1, %arg2 : i32, i32, i32
  }
  func.func @transform_1(%arg0: i32, %arg1: i32, %arg2: i32) -> (i32, i32, i32) {
    %c0_i32 = arith.constant 0 : i32
    return %arg0, %arg2, %arg1 : i32, i32, i32
  }
}

</mosaic_0001>

<bundles_post_ra>
// kernel: tpu_custom_call.1
= control target key start
LH: loop header
LB: loop body
LE: loop exit
PB: predicated region body
PF: predicated region fallthrough
CT: control target
= control target key end

     0   :  { %6 = vsyncpa [#allocation3], 0  ;;  %s4464_s0 = inlined_call_operand.hbm [shape: f32[2,1024,640], index: 0, kind: input, shape index: {}]   ;;  %s4465_s1 = inlined_call_operand.hbm [shape: f32[2,640,1024], index: 1, kind: output, shape index: {}]  }
   0x1   :  { %8 = vsyncpa [#allocation3 + $0x1], 0 }
   0x2   :  { %9 = vsyncpa [#allocation4], 0 }
   0x3   :  { %11 = vsyncpa [#allocation4 + $0x1], 0  ;;  %s3055_s6 = smov 0   ;;  %s3057_s7 = smov 0  }
   0x4   :  { %s3059_s8 = smov 0   ;;  %s3061_s9 = smov 0  }
   0x5   :  { %s3063_s10 = smov 0   ;;  %s3065_s11 = smov 0  }
   0x6 LB: > { %s2848_s12 = sadd.s32 4294967295, %s3039_s11   ;;  %s2849_s13 = sadd.s32 4294967294, %s3039_s11   ;;  %s3039_s11 = sphi %s3065_s11, %s17_s11   ;;  %s3035_s10 = sphi %s3063_s10, %s4474_s10   ;;  %s3031_s9 = sphi %s3061_s9, %s4473_s9   ;;  %s3027_s8 = sphi %s3059_s8, %s4472_s8   ;;  %s3023_s7 = sphi %s3057_s7, %s4471_s7   ;;  %s3019_s6 = sphi %s3055_s6, %s4470_s6  }
   0x7   : > { %s36_s14 = sadd.s32 1, %s3035_s10  ;;  %s47_s15 = sadd.s32 1, %s3027_s8 }
   0x8   : > { %p38_p0 = scmp.ge.s32.totalorder %s36_s14, 2  ;;  %p54_p1 = scmp.ne.s32.totalorder %s3027_s8, %s3023_s7 }
   0x9   : > { %p55_p2 = scmp.eq.s32.totalorder %s3039_s11, 0  ;;  %p60_p3 = scmp.ne.s32.totalorder %s3023_s7, %s3019_s6 }
   0xa   : > { %s4476_s14 = smov (%p38_p0, %s36_s14), 0  ;;  %p61_p5 = scmp.eq.s32.totalorder %s2848_s12, 0 }
   0xb   : > { %p3096_p4 = por %p55_p2, %p54_p1  ;;  %s40_s17 = ssub.s32 %s3035_s10, %s4476_s14 }
   0xc   : > { %p88_p6 = scmp.eq.s32.totalorder %s2848_s12, 1  ;;  %p45_p7 = scmp.eq.s32.totalorder %s40_s17, 0 }
   0xd   : > { %p3102_p8 = por %p61_p5, %p60_p3  ;;  %p94_p10 = scmp.eq.s32.totalorder %s2849_s13, 1 }
   0xe   : > { %p3106_p9 = por %p88_p6, %p54_p1  ;;  %p2851_p12 = scmp.ge.s32.totalorder %s3039_s11, 2 }
   0xf   : > { %s3111_s20 = scalar_select %p45_p7, %s3027_s8, %s47_s15  }
  0x10   : > { %p3113_p11 = por %p94_p10, %p60_p3  ;;  %p2873_p13 = scmp.lt.s32.totalorder %s3039_s11, 2 }
  0x11   : > { %s114_s22 = sand.u32 1, %s3027_s8   ;;  %s2858_s24 = smul.u32 5120, %s3035_s10 }
  0x12   : > { %s2857_s23 = smul.u32 5120, %s114_s22  ;;  %p2866_p0 = pnand %p2873_p13, %p3096_p4 }
  0x13   : > { %s128_s27 = scalar_lea.hbm %s4464_s0, %s2858_s24  ;;  %p2853_p1 = scmp.ge.s32.totalorder %s3039_s11, 1 }
  0x14   : > { %s118_s28 = scalar_lea.vmem [#allocation2], %s2857_s23  ;;  %s129_s30 = sshll.u32 %s128_s27, 4  ;;  %s130_s30 = int_to_ptr.hbm [resolvable:$true] %s129_s30 }
  0x15   : > { %s131_s29 = sshll.u32 %s118_s28, 4  ;;  %s115_s2 = scalar_lea.sflag [#allocation3], %s114_s22  ;;  %s132_s29 = int_to_ptr.vmem [resolvable:$true] %s131_s29 }
  0x16   : > { %s3041_s3 = smov 640   ;;  %s3042_s4 = smov 40  }
  0x17   : > { %2868 = dma.hbm_to_vmem [thread:$0]  (!%p2866_p0), %s130_s30, 81920, %s132_s29, %s115_s2, %s3041_s3, %s3041_s3, %s3042_s4  }
  0x18   : > { %p139_p2 = scmp.lt.s32.totalorder %s3039_s11, 3 }
  0x1a   : > { %p140_p3 = pnand %p2853_p1, %p139_p2 }
  0x1b   : > { %s3129_s5 = sand.u32 (!%p140_p3), 1, %s3023_s7  }
  0x1c   : > { %143 = sbr.rel (%p140_p3) target bundleno = 1988 (0x7c4), region = 24  ;;  %s146_s13 = scalar_lea.sflag (!%p140_p3), [#allocation3], %s3129_s5 }
  0x1d   : > { %s2859_s12 = smul.u32 (!%p140_p3), 5120, %s3129_s5 }
  0x1f   : > { %s3135_s15 = scalar_lea.vmem (!%p140_p3), [#allocation2], %s2859_s12 }
  0x21   : > { %3010 = dma.done.wait (%p3102_p8), %s146_s13, 81920  }
  0x22   : > { %3012 = vsyncadd (%p3102_p8), %s146_s13, 4294885376  ;;  %v173_v0 = vld [vmem:[%s3135_s15] sm:$0xff]  ;;  %v178_v1 = vld [vmem:[%s3135_s15 + $0x28] sm:$0xff]  ;;  %s3181_s16 = scalar_lea.vmem [#allocation5], %s2859_s12  ;;  %s2860_s17 = smul.u32 5120, %s3031_s9 }
  0x23   : > { %813 = vxpose.xlu0.b32.start [1/16] %v173_v0, 128  ;;  %v183_v2 = vld [vmem:[%s3135_s15 + $0x50] sm:$0xff]  ;;  %v188_v3 = vld [vmem:[%s3135_s15 + $0x78] sm:$0xff]  ;;  %v193_v4 = vld [vmem:[%s3135_s15 + $0xa0] sm:$0xff]  ;;  %s2751_s24 = sshll.u32 %s3181_s16, 4  ;;  %s2734_s26 = scalar_lea.sflag [#allocation4], %s3129_s5  ;;  %s2752_s24 = int_to_ptr.vmem [resolvable:$true] %s2751_s24 }
  0x24   : > { %v198_v5 = vld [vmem:[%s3135_s15 + $0xc8] sm:$0xff]  ;;  %v203_v6 = vld [vmem:[%s3135_s15 + $0xf0] sm:$0xff]  ;;  %v208_v7 = vld [vmem:[%s3135_s15 + $0x118] sm:$0xff]  ;;  %s2750_s23 = scalar_lea.hbm %s4465_s1, %s2860_s17  ;;  %s2977_s30 = scalar_lea.hbm %s4465_s1, 10240 }
  0x25   : > { %v213_v8 = vld [vmem:[%s3135_s15 + $0x140] sm:$0xff]  ;;  %v218_v9 = vld [vmem:[%s3135_s15 + $0x168] sm:$0xff]  ;;  %v223_v10 = vld [vmem:[%s3135_s15 + $0x190] sm:$0xff]  ;;  %s2753_s25 = sshll.u32 %s2750_s23, 4  ;;  %s2754_s25 = int_to_ptr.hbm [resolvable:$true] %s2753_s25 }
  0x26   : > { %v228_v11 = vld [vmem:[%s3135_s15 + $0x1b8] sm:$0xff]  ;;  %v174_v12 = vld [vmem:[%s3135_s15 + $0x8] sm:$0xff]  ;;  %v233_v13 = vld [vmem:[%s3135_s15 + $0x1e0] sm:$0xff]  ;;  %s2971_s27 = sshra.s32 %s2754_s25, 4  ;;  %s2972_s27 = int_to_ptr.hbm [resolvable:$true] %s2971_s27 }
  0x27   : > { %845 = vxpose.xlu1.b32.start [1/16] %v174_v12, 128  ;;  %v179_v14 = vld [vmem:[%s3135_s15 + $0x30] sm:$0xff]  ;;  %v238_v15 = vld [vmem:[%s3135_s15 + $0x208] sm:$0xff]  ;;  %v184_v17 = vld [vmem:[%s3135_s15 + $0x58] sm:$0xff]  ;;  %s2973_s28 = scalar_lea.hbm %s2972_s27, 5120  ;;  %p2978_p7 = scmp.lt.s32.totalorder %s2972_s27, %s4465_s1 }
  0x28   : > { %v175_v16 = vld [vmem:[%s3135_s15 + $0x10] sm:$0xff]  ;;  %v180_v19 = vld [vmem:[%s3135_s15 + $0x38] sm:$0xff]  ;;  %v189_v20 = vld [vmem:[%s3135_s15 + $0x80] sm:$0xff]  ;;  %p2974_p4 = scmp.ne.s32.totalorder %s2972_s27, %s2973_s28  ;;  %p2979_p8 = scmp.lt.s32.totalorder %s2977_s30, %s2973_s28 }
  0x29   : > { %877 = vxpose.xlu2.b32.start [1/16] %v175_v16, 128  ;;  %v243_v18 = vld [vmem:[%s3135_s15 + $0x230] sm:$0xff]  ;;  %v248_v21 = vld [vmem:[%s3135_s15 + $0x258] sm:$0xff]  ;;  %v185_v22 = vld [vmem:[%s3135_s15 + $0x60] sm:$0xff] }
  0x2a   : > { %v194_v23 = vld [vmem:[%s3135_s15 + $0xa8] sm:$0xff]  ;;  %v176_v24 = vld [vmem:[%s3135_s15 + $0x18] sm:$0xff]  ;;  %v181_v26 = vld [vmem:[%s3135_s15 + $0x40] sm:$0xff]  ;;  %p2975_p5 = pnand %p2974_p4, %p3106_p9  ;;  %p2980_p10 = por %p2979_p8, %p2978_p7 }
  0x2b   : > { %814 = vxpose.xlu0.b32.cont [2/16] %v178_v1, 128  ;;  %v190_v25 = vld [vmem:[%s3135_s15 + $0x88] sm:$0xff]  ;;  %v199_v27 = vld [vmem:[%s3135_s15 + $0xd0] sm:$0xff]  ;;  %v204_v30 = vld [vmem:[%s3135_s15 + $0xf8] sm:$0xff] }
  0x2c   : > { %v195_v28 = vld [vmem:[%s3135_s15 + $0xb0] sm:$0xff]  ;;  %v186_v29 = vld [vmem:[%s3135_s15 + $0x68] sm:$0xff]  ;;  %v200_v31 = vld [vmem:[%s3135_s15 + $0xd8] sm:$0xff]  ;;  %p2976_p6 = pneg %p2975_p5 }
  0x2d   : > { %v191_v32 = vld [vmem:[%s3135_s15 + $0x90] sm:$0xff]  ;;  %v209_v33 = vld [vmem:[%s3135_s15 + $0x120] sm:$0xff]  ;;  %v196_v35 = vld [vmem:[%s3135_s15 + $0xb8] sm:$0xff] }
  0x2e   : > { %v205_v34 = vld [vmem:[%s3135_s15 + $0x100] sm:$0xff]  ;;  %v214_v36 = vld [vmem:[%s3135_s15 + $0x148] sm:$0xff]  ;;  %v219_v40 = vld [vmem:[%s3135_s15 + $0x170] sm:$0xff]  ;;  %p2981_p13 = pnand %p2980_p10, %p2976_p6 }
  0x2f   : > { %846 = vxpose.xlu1.b32.cont [2/16] %v179_v14, 128  ;;  %v210_v37 = vld [vmem:[%s3135_s15 + $0x128] sm:$0xff]  ;;  %v201_v39 = vld [vmem:[%s3135_s15 + $0xe0] sm:$0xff]  ;;  %v215_v41 = vld [vmem:[%s3135_s15 + $0x150] sm:$0xff] }
  0x30   : > { %v206_v43 = vld [vmem:[%s3135_s15 + $0x108] sm:$0xff]  ;;  %v224_v44 = vld [vmem:[%s3135_s15 + $0x198] sm:$0xff]  ;;  %v211_v47 = vld [vmem:[%s3135_s15 + $0x130] sm:$0xff] }
  0x31   : > { %878 = vxpose.xlu2.b32.cont [2/16] %v180_v19, 128  ;;  %v220_v45 = vld [vmem:[%s3135_s15 + $0x178] sm:$0xff]  ;;  %v229_v48 = vld [vmem:[%s3135_s15 + $0x1c0] sm:$0xff]  ;;  %v234_v52 = vld [vmem:[%s3135_s15 + $0x1e8] sm:$0xff] }
  0x32   : > { %v225_v49 = vld [vmem:[%s3135_s15 + $0x1a0] sm:$0xff]  ;;  %v216_v51 = vld [vmem:[%s3135_s15 + $0x158] sm:$0xff]  ;;  %v230_v53 = vld [vmem:[%s3135_s15 + $0x1c8] sm:$0xff] }
  0x33   : > { %815 = vxpose.xlu0.b32.cont [3/16] %v183_v2, 128  ;;  %v221_v55 = vld [vmem:[%s3135_s15 + $0x180] sm:$0xff]  ;;  %v239_v56 = vld [vmem:[%s3135_s15 + $0x210] sm:$0xff]  ;;  %v226_v59 = vld [vmem:[%s3135_s15 + $0x1a8] sm:$0xff] }
  0x34   : > { %v235_v57 = vld [vmem:[%s3135_s15 + $0x1f0] sm:$0xff]  ;;  %v244_v60 = vld [vmem:[%s3135_s15 + $0x238] sm:$0xff]  ;;  %v249_v0 = vld [vmem:[%s3135_s15 + $0x260] sm:$0xff] }
  0x35   : > { %v240_v61 = vld [vmem:[%s3135_s15 + $0x218] sm:$0xff]  ;;  %v231_v63 = vld [vmem:[%s3135_s15 + $0x1d0] sm:$0xff]  ;;  %v245_v1 = vld [vmem:[%s3135_s15 + $0x240] sm:$0xff] }
  0x36   : > { %v187_v12 = vld [vmem:[%s3135_s15 + $0x70] sm:$0xff]  ;;  %v192_v16 = vld [vmem:[%s3135_s15 + $0x98] sm:$0xff]  ;;  %v254_v19 = vld [vmem:[%s3135_s15 + $0x288] sm:$0xff] }
  0x37   : > { %847 = vxpose.xlu1.b32.cont [3/16] %v184_v17, 128  ;;  %v263_v17 = vld [vmem:[%s3135_s15 + $0x2d0] sm:$0xff] }
  0x39   : > { %879 = vxpose.xlu2.b32.cont [3/16] %v185_v22, 128 }
  0x3b   : > { %816 = vxpose.xlu0.b32.cont [4/16] %v188_v3, 128  ;;  %v236_v3 = vld [vmem:[%s3135_s15 + $0x1f8] sm:$0xff] }
  0x3f   : > { %848 = vxpose.xlu1.b32.cont [4/16] %v189_v20, 128  ;;  %v197_v20 = vld [vmem:[%s3135_s15 + $0xc0] sm:$0xff] }
  0x41   : > { %880 = vxpose.xlu2.b32.cont [4/16] %v190_v25, 128  ;;  %v259_v25 = vld [vmem:[%s3135_s15 + $0x2b0] sm:$0xff] }
  0x43   : > { %817 = vxpose.xlu0.b32.cont [5/16] %v193_v4, 128  ;;  %v177_v4 = vld [vmem:[%s3135_s15 + $0x20] sm:$0xff] }
  0x47   : > { %849 = vxpose.xlu1.b32.cont [5/16] %v194_v23, 128 }
  0x49   : > { %881 = vxpose.xlu2.b32.cont [5/16] %v195_v28, 128 }
  0x4b   : > { %818 = vxpose.xlu0.b32.cont [6/16] %v198_v5, 128  ;;  %v250_v5 = vld [vmem:[%s3135_s15 + $0x268] sm:$0xff] }
  0x4f   : > { %850 = vxpose.xlu1.b32.cont [6/16] %v199_v27, 128  ;;  %v273_v27 = vld [vmem:[%s3135_s15 + $0x320] sm:$0xff] }
  0x51   : > { %882 = vxpose.xlu2.b32.cont [6/16] %v200_v31, 128  ;;  %v264_v31 = vld [vmem:[%s3135_s15 + $0x2d8] sm:$0xff] }
  0x53   : > { %819 = vxpose.xlu0.b32.cont [7/16] %v203_v6, 128 }
  0x57   : > { %851 = vxpose.xlu1.b32.cont [7/16] %v204_v30, 128 }
  0x59   : > { %883 = vxpose.xlu2.b32.cont [7/16] %v205_v34, 128 }
  0x5b   : > { %820 = vxpose.xlu0.b32.cont [8/16] %v208_v7, 128  ;;  %v241_v7 = vld [vmem:[%s3135_s15 + $0x220] sm:$0xff] }
  0x5f   : > { %852 = vxpose.xlu1.b32.cont [8/16] %v209_v33, 128  ;;  %v278_v33 = vld [vmem:[%s3135_s15 + $0x348] sm:$0xff] }
  0x61   : > { %884 = vxpose.xlu2.b32.cont [8/16] %v210_v37, 128  ;;  %v269_v37 = vld [vmem:[%s3135_s15 + $0x300] sm:$0xff] }
  0x63   : > { %821 = vxpose.xlu0.b32.cont [9/16] %v213_v8, 128  ;;  %v182_v8 = vld [vmem:[%s3135_s15 + $0x48] sm:$0xff] }
  0x67   : > { %853 = vxpose.xlu1.b32.cont [9/16] %v214_v36, 128 }
  0x69   : > { %885 = vxpose.xlu2.b32.cont [9/16] %v215_v41, 128 }
  0x6b   : > { %822 = vxpose.xlu0.b32.cont [10/16] %v218_v9, 128  ;;  %v253_v9 = vld [vmem:[%s3135_s15 + $0x280] sm:$0xff] }
  0x6f   : > { %854 = vxpose.xlu1.b32.cont [10/16] %v219_v40, 128 }
  0x71   : > { %886 = vxpose.xlu2.b32.cont [10/16] %v220_v45, 128  ;;  %v288_v45 = vld [vmem:[%s3135_s15 + $0x398] sm:$0xff] }
  0x73   : > { %823 = vxpose.xlu0.b32.cont [11/16] %v223_v10, 128 }
  0x77   : > { %855 = vxpose.xlu1.b32.cont [11/16] %v224_v44, 128  ;;  %v217_v44 = vld [vmem:[%s3135_s15 + $0x160] sm:$0xff] }
  0x79   : > { %887 = vxpose.xlu2.b32.cont [11/16] %v225_v49, 128  ;;  %v279_v49 = vld [vmem:[%s3135_s15 + $0x350] sm:$0xff] }
  0x7b   : > { %824 = vxpose.xlu0.b32.cont [12/16] %v228_v11, 128  ;;  %v246_v11 = vld [vmem:[%s3135_s15 + $0x248] sm:$0xff] }
  0x7f   : > { %856 = vxpose.xlu1.b32.cont [12/16] %v229_v48, 128 }
  0x81   : > { %888 = vxpose.xlu2.b32.cont [12/16] %v230_v53, 128 }
  0x83   : > { %825 = vxpose.xlu0.b32.cont [13/16] %v233_v13, 128  ;;  %v258_v13 = vld [vmem:[%s3135_s15 + $0x2a8] sm:$0xff] }
  0x87   : > { %857 = vxpose.xlu1.b32.cont [13/16] %v234_v52, 128 }
  0x89   : > { %889 = vxpose.xlu2.b32.cont [13/16] %v235_v57, 128  ;;  %v298_v57 = vld [vmem:[%s3135_s15 + $0x3e8] sm:$0xff] }
  0x8b   : > { %826 = vxpose.xlu0.b32.cont [14/16] %v238_v15, 128  ;;  %v251_v15 = vld [vmem:[%s3135_s15 + $0x270] sm:$0xff] }
  0x8f   : > { %858 = vxpose.xlu1.b32.cont [14/16] %v239_v56, 128  ;;  %v227_v56 = vld [vmem:[%s3135_s15 + $0x1b0] sm:$0xff] }
  0x91   : > { %890 = vxpose.xlu2.b32.cont [14/16] %v240_v61, 128  ;;  %v289_v61 = vld [vmem:[%s3135_s15 + $0x3a0] sm:$0xff] }
  0x93   : > { %827 = vxpose.xlu0.b32.cont [15/16] %v243_v18, 128 }
  0x97   : > { %859 = vxpose.xlu1.b32.cont [15/16] %v244_v60, 128 }
  0x99   : > { %891 = vxpose.xlu2.b32.cont [15/16] %v245_v1, 128 }
  0x9b   : > { %828 = vxpose.xlu0.b32.end [16/16] %v248_v21, 128  ;;  %v268_v21 = vld [vmem:[%s3135_s15 + $0x2f8] sm:$0xff] }
  0x9f   : > { %860 = vxpose.xlu1.b32.end [16/16] %v249_v0, 128 }
  0xa1   : > { %892 = vxpose.xlu2.b32.end [16/16] %v250_v5, 128  ;;  %v308_v5 = vld [vmem:[%s3135_s15 + $0x438] sm:$0xff] }
  0xa3   : > { %909 = vxpose.xlu0.b32.start [1/16] %v176_v24, 128 }
  0xa7   : > { %941 = vxpose.xlu1.b32.start [1/16] %v177_v4, 128  ;;  %v237_v4 = vld [vmem:[%s3135_s15 + $0x200] sm:$0xff] }
  0xa9   : > { %973 = vxpose.xlu2.b32.start [1/16] %v253_v9, 128  ;;  %v299_v9 = vld [vmem:[%s3135_s15 + $0x3f0] sm:$0xff] }
  0xab   : > { %910 = vxpose.xlu0.b32.cont [2/16] %v181_v26, 128  ;;  %v202_v26 = vld [vmem:[%s3135_s15 + $0xe8] sm:$0xff] }
  0xaf   : > { %942 = vxpose.xlu1.b32.cont [2/16] %v182_v8, 128 }
  0xb1   : > { %974 = vxpose.xlu2.b32.cont [2/16] %v258_v13, 128 }
  0xb3   : > { %911 = vxpose.xlu0.b32.cont [3/16] %v186_v29, 128 }
  0xb7   : > { %943 = vxpose.xlu1.b32.cont [3/16] %v187_v12, 128 }
  0xb9   : > { %975 = vxpose.xlu2.b32.cont [3/16] %v263_v17, 128  ;;  %v318_v17 = vld [vmem:[%s3135_s15 + $0x488] sm:$0xff] }
  0xbb   : > { %912 = vxpose.xlu0.b32.cont [4/16] %v191_v32, 128  ;;  %v207_v32 = vld [vmem:[%s3135_s15 + $0x110] sm:$0xff] }
  0xbf   : > { %944 = vxpose.xlu1.b32.cont [4/16] %v192_v16, 128  ;;  %v247_v16 = vld [vmem:[%s3135_s15 + $0x250] sm:$0xff] }
  0xc1   : > { %976 = vxpose.xlu2.b32.cont [4/16] %v268_v21, 128  ;;  %v309_v21 = vld [vmem:[%s3135_s15 + $0x440] sm:$0xff] }
  0xc2   : > { %v893_v22 = vpop.trf.xlu2 }
  0xc3   : > { %913 = vxpose.xlu0.b32.cont [5/16] %v196_v35, 128  ;;  %2349 = vst [vmem:[%s3181_s16 + $0x800] sm:$0xff] %v893_v22  ;;  %v252_v22 = vld [vmem:[%s3135_s15 + $0x278] sm:$0xff] }
  0xc7   : > { %v829_v38 = vpop.trf.xlu0  ;;  %945 = vxpose.xlu1.b32.cont [5/16] %v197_v20, 128 }
  0xc8   : > { %2093 = vst [vmem:[%s3181_s16] sm:$0xff] %v829_v38  ;;  %v212_v38 = vld [vmem:[%s3135_s15 + $0x138] sm:$0xff] }
  0xc9   : > { %977 = vxpose.xlu2.b32.cont [5/16] %v273_v27, 128  ;;  %v314_v27 = vld [vmem:[%s3135_s15 + $0x468] sm:$0xff] }
  0xca   : > { %v894_v28 = vpop.trf.xlu2 }
  0xcb   : > { %914 = vxpose.xlu0.b32.cont [6/16] %v201_v39, 128  ;;  %v861_v23 = vpop.trf.xlu1  ;;  %2357 = vst [vmem:[%s3181_s16 + $0x840] sm:$0xff] %v894_v28  ;;  %v283_v39 = vld [vmem:[%s3135_s15 + $0x370] sm:$0xff] }
  0xcc   : > { %2221 = vst [vmem:[%s3181_s16 + $0x400] sm:$0xff] %v861_v23  ;;  %v323_v23 = vld [vmem:[%s3135_s15 + $0x4b0] sm:$0xff] }
  0xcd   : > { %v255_v28 = vld [vmem:[%s3135_s15 + $0x290] sm:$0xff] }
  0xcf   : > { %v830_v42 = vpop.trf.xlu0  ;;  %946 = vxpose.xlu1.b32.cont [6/16] %v202_v26, 128 }
  0xd0   : > { %2101 = vst [vmem:[%s3181_s16 + $0x40] sm:$0xff] %v830_v42 }
  0xd1   : > { %978 = vxpose.xlu2.b32.cont [6/16] %v278_v33, 128  ;;  %v319_v33 = vld [vmem:[%s3135_s15 + $0x490] sm:$0xff] }
  0xd2   : > { %v895_v34 = vpop.trf.xlu2 }
  0xd3   : > { %915 = vxpose.xlu0.b32.cont [7/16] %v206_v43, 128  ;;  %v862_v29 = vpop.trf.xlu1  ;;  %2365 = vst [vmem:[%s3181_s16 + $0x880] sm:$0xff] %v895_v34  ;;  %v274_v43 = vld [vmem:[%s3135_s15 + $0x328] sm:$0xff]  ;;  %v260_v34 = vld [vmem:[%s3135_s15 + $0x2b8] sm:$0xff] }
  0xd4   : > { %2229 = vst [vmem:[%s3181_s16 + $0x440] sm:$0xff] %v862_v29  ;;  %v328_v29 = vld [vmem:[%s3135_s15 + $0x4d8] sm:$0xff] }
  0xd7   : > { %v831_v46 = vpop.trf.xlu0  ;;  %947 = vxpose.xlu1.b32.cont [7/16] %v207_v32, 128 }
  0xd8   : > { %2109 = vst [vmem:[%s3181_s16 + $0x80] sm:$0xff] %v831_v46 }
  0xd9   : > { %979 = vxpose.xlu2.b32.cont [7/16] %v283_v39, 128  ;;  %v324_v39 = vld [vmem:[%s3135_s15 + $0x4b8] sm:$0xff] }
  0xda   : > { %v896_v40 = vpop.trf.xlu2 }
  0xdb   : > { %916 = vxpose.xlu0.b32.cont [8/16] %v211_v47, 128  ;;  %v863_v35 = vpop.trf.xlu1  ;;  %2373 = vst [vmem:[%s3181_s16 + $0x8c0] sm:$0xff] %v896_v40  ;;  %v265_v40 = vld [vmem:[%s3135_s15 + $0x2e0] sm:$0xff] }
  0xdc   : > { %2237 = vst [vmem:[%s3181_s16 + $0x480] sm:$0xff] %v863_v35  ;;  %v256_v35 = vld [vmem:[%s3135_s15 + $0x298] sm:$0xff] }
  0xdf   : > { %v832_v50 = vpop.trf.xlu0  ;;  %948 = vxpose.xlu1.b32.cont [8/16] %v212_v38, 128 }
  0xe0   : > { %2117 = vst [vmem:[%s3181_s16 + $0xc0] sm:$0xff] %v832_v50  ;;  %v222_v50 = vld [vmem:[%s3135_s15 + $0x188] sm:$0xff] }
  0xe1   : > { %980 = vxpose.xlu2.b32.cont [8/16] %v288_v45, 128  ;;  %v329_v45 = vld [vmem:[%s3135_s15 + $0x4e0] sm:$0xff] }
  0xe2   : > { %v897_v46 = vpop.trf.xlu2 }
  0xe3   : > { %917 = vxpose.xlu0.b32.cont [9/16] %v216_v51, 128  ;;  %v864_v41 = vpop.trf.xlu1  ;;  %2381 = vst [vmem:[%s3181_s16 + $0x900] sm:$0xff] %v897_v46  ;;  %v293_v51 = vld [vmem:[%s3135_s15 + $0x3c0] sm:$0xff]  ;;  %v270_v46 = vld [vmem:[%s3135_s15 + $0x308] sm:$0xff] }
  0xe4   : > { %2245 = vst [vmem:[%s3181_s16 + $0x4c0] sm:$0xff] %v864_v41  ;;  %v261_v41 = vld [vmem:[%s3135_s15 + $0x2c0] sm:$0xff] }
  0xe7   : > { %v833_v54 = vpop.trf.xlu0  ;;  %949 = vxpose.xlu1.b32.cont [9/16] %v217_v44, 128 }
  0xe8   : > { %2125 = vst [vmem:[%s3181_s16 + $0x100] sm:$0xff] %v833_v54 }
  0xe9   : > { %981 = vxpose.xlu2.b32.cont [9/16] %v293_v51, 128  ;;  %v257_v51 = vld [vmem:[%s3135_s15 + $0x2a0] sm:$0xff] }
  0xea   : > { %v898_v52 = vpop.trf.xlu2 }
  0xeb   : > { %918 = vxpose.xlu0.b32.cont [10/16] %v221_v55, 128  ;;  %v865_v47 = vpop.trf.xlu1  ;;  %2389 = vst [vmem:[%s3181_s16 + $0x940] sm:$0xff] %v898_v52  ;;  %v284_v55 = vld [vmem:[%s3135_s15 + $0x378] sm:$0xff]  ;;  %v275_v52 = vld [vmem:[%s3135_s15 + $0x330] sm:$0xff] }
  0xec   : > { %2253 = vst [vmem:[%s3181_s16 + $0x500] sm:$0xff] %v865_v47  ;;  %v266_v47 = vld [vmem:[%s3135_s15 + $0x2e8] sm:$0xff] }
  0xef   : > { %v834_v58 = vpop.trf.xlu0  ;;  %950 = vxpose.xlu1.b32.cont [10/16] %v222_v50, 128 }
  0xf0   : > { %2133 = vst [vmem:[%s3181_s16 + $0x140] sm:$0xff] %v834_v58 }
  0xf1   : > { %982 = vxpose.xlu2.b32.cont [10/16] %v298_v57, 128  ;;  %v262_v57 = vld [vmem:[%s3135_s15 + $0x2c8] sm:$0xff] }
  0xf2   : > { %v899_v58 = vpop.trf.xlu2 }
  0xf3   : > { %919 = vxpose.xlu0.b32.cont [11/16] %v226_v59, 128  ;;  %v866_v53 = vpop.trf.xlu1  ;;  %2397 = vst [vmem:[%s3181_s16 + $0x980] sm:$0xff] %v899_v58  ;;  %v280_v58 = vld [vmem:[%s3135_s15 + $0x358] sm:$0xff] }
  0xf4   : > { %2261 = vst [vmem:[%s3181_s16 + $0x540] sm:$0xff] %v866_v53  ;;  %v271_v53 = vld [vmem:[%s3135_s15 + $0x310] sm:$0xff] }
  0xf7   : > { %v835_v62 = vpop.trf.xlu0  ;;  %951 = vxpose.xlu1.b32.cont [11/16] %v227_v56, 128 }
  0xf8   : > { %2141 = vst [vmem:[%s3181_s16 + $0x180] sm:$0xff] %v835_v62  ;;  %v232_v62 = vld [vmem:[%s3135_s15 + $0x1d8] sm:$0xff] }
  0xfa   : > { %v900_v0 = vpop.trf.xlu2 }
  0xfb   : > { %920 = vxpose.xlu0.b32.cont [12/16] %v231_v63, 128  ;;  %v867_v59 = vpop.trf.xlu1  ;;  %v303_v63 = vld [vmem:[%s3135_s15 + $0x410] sm:$0xff]  ;;  %2405 = vst [vmem:[%s3181_s16 + $0x9c0] sm:$0xff] %v900_v0  ;;  %v285_v0 = vld [vmem:[%s3135_s15 + $0x380] sm:$0xff] }
  0xfc   : > { %2269 = vst [vmem:[%s3181_s16 + $0x580] sm:$0xff] %v867_v59  ;;  %983 = vxpose.xlu2.b32.cont [11/16] %v303_v63, 128  ;;  %v276_v59 = vld [vmem:[%s3135_s15 + $0x338] sm:$0xff]  ;;  %v267_v63 = vld [vmem:[%s3135_s15 + $0x2f0] sm:$0xff] }
  0xff   : > { %v836_v2 = vpop.trf.xlu0  ;;  %952 = vxpose.xlu1.b32.cont [12/16] %v232_v62, 128 }
 0x100   : > { %2149 = vst [vmem:[%s3181_s16 + $0x1c0] sm:$0xff] %v836_v2 }
 0x103   : > { %921 = vxpose.xlu0.b32.cont [13/16] %v236_v3, 128  ;;  %v868_v1 = vpop.trf.xlu1  ;;  %v294_v3 = vld [vmem:[%s3135_s15 + $0x3c8] sm:$0xff] }
 0x104   : > { %2277 = vst [vmem:[%s3181_s16 + $0x5c0] sm:$0xff] %v868_v1  ;;  %984 = vxpose.xlu2.b32.cont [12/16] %v308_v5, 128  ;;  %v281_v1 = vld [vmem:[%s3135_s15 + $0x360] sm:$0xff]  ;;  %v272_v5 = vld [vmem:[%s3135_s15 + $0x318] sm:$0xff] }
 0x107   : > { %v837_v6 = vpop.trf.xlu0  ;;  %953 = vxpose.xlu1.b32.cont [13/16] %v237_v4, 128 }
 0x108   : > { %2157 = vst [vmem:[%s3181_s16 + $0x200] sm:$0xff] %v837_v6  ;;  %v901_v6 = vpop.trf.xlu2 }
 0x109   : > { %2413 = vst [vmem:[%s3181_s16 + $0xa00] sm:$0xff] %v901_v6  ;;  %v290_v6 = vld [vmem:[%s3135_s15 + $0x3a8] sm:$0xff] }
 0x10b   : > { %922 = vxpose.xlu0.b32.cont [14/16] %v241_v7, 128  ;;  %v869_v7 = vpop.trf.xlu1 }
 0x10c   : > { %2285 = vst [vmem:[%s3181_s16 + $0x600] sm:$0xff] %v869_v7  ;;  %v286_v7 = vld [vmem:[%s3135_s15 + $0x388] sm:$0xff] }
 0x10f   : > { %v838_v10 = vpop.trf.xlu0 }
 0x110   : > { %2165 = vst [vmem:[%s3181_s16 + $0x240] sm:$0xff] %v838_v10  ;;  %v242_v10 = vld [vmem:[%s3135_s15 + $0x228] sm:$0xff]  ;;  %v902_v12 = vpop.trf.xlu2 }
 0x111   : > { %954 = vxpose.xlu1.b32.cont [14/16] %v242_v10, 128  ;;  %2421 = vst [vmem:[%s3181_s16 + $0xa40] sm:$0xff] %v902_v12  ;;  %v295_v12 = vld [vmem:[%s3135_s15 + $0x3d0] sm:$0xff] }
 0x113   : > { %923 = vxpose.xlu0.b32.cont [15/16] %v246_v11, 128  ;;  %v313_v11 = vld [vmem:[%s3135_s15 + $0x460] sm:$0xff]  ;;  %v870_v13 = vpop.trf.xlu1 }
 0x114   : > { %985 = vxpose.xlu2.b32.cont [13/16] %v313_v11, 128  ;;  %2293 = vst [vmem:[%s3181_s16 + $0x640] sm:$0xff] %v870_v13  ;;  %v277_v11 = vld [vmem:[%s3135_s15 + $0x340] sm:$0xff]  ;;  %v291_v13 = vld [vmem:[%s3135_s15 + $0x3b0] sm:$0xff] }
 0x117   : > { %v839_v14 = vpop.trf.xlu0 }
 0x118   : > { %2173 = vst [vmem:[%s3181_s16 + $0x280] sm:$0xff] %v839_v14 }
 0x119   : > { %955 = vxpose.xlu1.b32.cont [15/16] %v247_v16, 128 }
 0x11b   : > { %924 = vxpose.xlu0.b32.end [16/16] %v251_v15, 128  ;;  %v304_v15 = vld [vmem:[%s3135_s15 + $0x418] sm:$0xff] }
 0x11c   : > { %986 = vxpose.xlu2.b32.cont [14/16] %v318_v17, 128  ;;  %v282_v17 = vld [vmem:[%s3135_s15 + $0x368] sm:$0xff] }
 0x11f   : > { %v840_v18 = vpop.trf.xlu0 }
 0x120   : > { %2181 = vst [vmem:[%s3181_s16 + $0x2c0] sm:$0xff] %v840_v18  ;;  %v903_v18 = vpop.trf.xlu2 }
 0x121   : > { %2429 = vst [vmem:[%s3181_s16 + $0xa80] sm:$0xff] %v903_v18  ;;  %956 = vxpose.xlu1.b32.end [16/16] %v252_v22, 128  ;;  %v300_v18 = vld [vmem:[%s3135_s15 + $0x3f8] sm:$0xff] }
 0x123   : > { %1005 = vxpose.xlu0.b32.start [1/16] %v254_v19, 128  ;;  %v871_v19 = vpop.trf.xlu1 }
 0x124   : > { %2301 = vst [vmem:[%s3181_s16 + $0x680] sm:$0xff] %v871_v19  ;;  %987 = vxpose.xlu2.b32.cont [15/16] %v323_v23, 128  ;;  %v296_v19 = vld [vmem:[%s3135_s15 + $0x3d8] sm:$0xff]  ;;  %v287_v23 = vld [vmem:[%s3135_s15 + $0x390] sm:$0xff] }
 0x127   : > { %v841_v24 = vpop.trf.xlu0 }
 0x128   : > { %2189 = vst [vmem:[%s3181_s16 + $0x300] sm:$0xff] %v841_v24  ;;  %v904_v24 = vpop.trf.xlu2 }
 0x129   : > { %2437 = vst [vmem:[%s3181_s16 + $0xac0] sm:$0xff] %v904_v24  ;;  %1037 = vxpose.xlu1.b32.start [1/16] %v255_v28, 128  ;;  %v305_v24 = vld [vmem:[%s3135_s15 + $0x420] sm:$0xff] }
 0x12b   : > { %1006 = vxpose.xlu0.b32.cont [2/16] %v259_v25, 128  ;;  %v872_v25 = vpop.trf.xlu1 }
 0x12c   : > { %2309 = vst [vmem:[%s3181_s16 + $0x6c0] sm:$0xff] %v872_v25  ;;  %988 = vxpose.xlu2.b32.end [16/16] %v328_v29, 128  ;;  %v301_v25 = vld [vmem:[%s3135_s15 + $0x400] sm:$0xff]  ;;  %v292_v29 = vld [vmem:[%s3135_s15 + $0x3b8] sm:$0xff] }
 0x12f   : > { %v842_v30 = vpop.trf.xlu0 }
 0x130   : > { %2197 = vst [vmem:[%s3181_s16 + $0x340] sm:$0xff] %v842_v30  ;;  %v905_v30 = vpop.trf.xlu2 }
 0x131   : > { %2445 = vst [vmem:[%s3181_s16 + $0xb00] sm:$0xff] %v905_v30  ;;  %1038 = vxpose.xlu1.b32.cont [2/16] %v260_v34, 128  ;;  %v310_v30 = vld [vmem:[%s3135_s15 + $0x448] sm:$0xff] }
 0x133   : > { %1007 = vxpose.xlu0.b32.cont [3/16] %v264_v31, 128  ;;  %v873_v31 = vpop.trf.xlu1 }
 0x134   : > { %2317 = vst [vmem:[%s3181_s16 + $0x700] sm:$0xff] %v873_v31  ;;  %1069 = vxpose.xlu2.b32.start [1/16] %v256_v35, 128  ;;  %v306_v31 = vld [vmem:[%s3135_s15 + $0x428] sm:$0xff]  ;;  %v297_v35 = vld [vmem:[%s3135_s15 + $0x3e0] sm:$0xff] }
 0x137   : > { %v843_v36 = vpop.trf.xlu0 }
 0x138   : > { %2205 = vst [vmem:[%s3181_s16 + $0x380] sm:$0xff] %v843_v36  ;;  %v906_v36 = vpop.trf.xlu2 }
 0x139   : > { %2453 = vst [vmem:[%s3181_s16 + $0xb40] sm:$0xff] %v906_v36  ;;  %1039 = vxpose.xlu1.b32.cont [3/16] %v265_v40, 128  ;;  %v315_v36 = vld [vmem:[%s3135_s15 + $0x470] sm:$0xff] }
 0x13b   : > { %1008 = vxpose.xlu0.b32.cont [4/16] %v269_v37, 128  ;;  %v874_v37 = vpop.trf.xlu1 }
 0x13c   : > { %2325 = vst [vmem:[%s3181_s16 + $0x740] sm:$0xff] %v874_v37  ;;  %1070 = vxpose.xlu2.b32.cont [2/16] %v261_v41, 128  ;;  %v311_v37 = vld [vmem:[%s3135_s15 + $0x450] sm:$0xff]  ;;  %v302_v41 = vld [vmem:[%s3135_s15 + $0x408] sm:$0xff] }
 0x13f   : > { %v844_v42 = vpop.trf.xlu0 }
 0x140   : > { %2213 = vst [vmem:[%s3181_s16 + $0x3c0] sm:$0xff] %v844_v42  ;;  %v907_v42 = vpop.trf.xlu2 }
 0x141   : > { %2461 = vst [vmem:[%s3181_s16 + $0xb80] sm:$0xff] %v907_v42  ;;  %1040 = vxpose.xlu1.b32.cont [4/16] %v270_v46, 128  ;;  %v320_v42 = vld [vmem:[%s3135_s15 + $0x498] sm:$0xff] }
 0x143   : > { %1009 = vxpose.xlu0.b32.cont [5/16] %v274_v43, 128  ;;  %v875_v43 = vpop.trf.xlu1 }
 0x144   : > { %2333 = vst [vmem:[%s3181_s16 + $0x780] sm:$0xff] %v875_v43  ;;  %1071 = vxpose.xlu2.b32.cont [3/16] %v266_v47, 128  ;;  %v316_v43 = vld [vmem:[%s3135_s15 + $0x478] sm:$0xff]  ;;  %v307_v47 = vld [vmem:[%s3135_s15 + $0x430] sm:$0xff] }
 0x147   : > { %v925_v48 = vpop.trf.xlu0 }
 0x148   : > { %2477 = vst [vmem:[%s3181_s16 + $0xc00] sm:$0xff] %v925_v48  ;;  %v908_v48 = vpop.trf.xlu2 }
 0x149   : > { %2469 = vst [vmem:[%s3181_s16 + $0xbc0] sm:$0xff] %v908_v48  ;;  %1041 = vxpose.xlu1.b32.cont [5/16] %v275_v52, 128  ;;  %v325_v48 = vld [vmem:[%s3135_s15 + $0x4c0] sm:$0xff] }
 0x14b   : > { %1010 = vxpose.xlu0.b32.cont [6/16] %v279_v49, 128  ;;  %v876_v49 = vpop.trf.xlu1 }
 0x14c   : > { %2341 = vst [vmem:[%s3181_s16 + $0x7c0] sm:$0xff] %v876_v49  ;;  %1072 = vxpose.xlu2.b32.cont [4/16] %v271_v53, 128  ;;  %v321_v49 = vld [vmem:[%s3135_s15 + $0x4a0] sm:$0xff]  ;;  %v312_v53 = vld [vmem:[%s3135_s15 + $0x458] sm:$0xff] }
 0x14f   : > { %v926_v54 = vpop.trf.xlu0 }
 0x150   : > { %2485 = vst [vmem:[%s3181_s16 + $0xc40] sm:$0xff] %v926_v54  ;;  %v989_v54 = vpop.trf.xlu2 }
 0x151   : > { %2094 = vst [vmem:[%s3181_s16 + $0x8] sm:$0xff] %v989_v54  ;;  %1042 = vxpose.xlu1.b32.cont [6/16] %v280_v58, 128  ;;  %v330_v54 = vld [vmem:[%s3135_s15 + $0x4e8] sm:$0xff] }
 0x153   : > { %1011 = vxpose.xlu0.b32.cont [7/16] %v284_v55, 128  ;;  %v957_v55 = vpop.trf.xlu1 }
 0x154   : > { %2605 = vst [vmem:[%s3181_s16 + $0x1000] sm:$0xff] %v957_v55  ;;  %1073 = vxpose.xlu2.b32.cont [5/16] %v276_v59, 128  ;;  %v326_v55 = vld [vmem:[%s3135_s15 + $0x4c8] sm:$0xff]  ;;  %v317_v59 = vld [vmem:[%s3135_s15 + $0x480] sm:$0xff] }
 0x157   : > { %v927_v60 = vpop.trf.xlu0 }
 0x158   : > { %2493 = vst [vmem:[%s3181_s16 + $0xc80] sm:$0xff] %v927_v60  ;;  %v990_v60 = vpop.trf.xlu2 }
 0x159   : > { %2102 = vst [vmem:[%s3181_s16 + $0x48] sm:$0xff] %v990_v60  ;;  %1043 = vxpose.xlu1.b32.cont [7/16] %v285_v0, 128  ;;  %v333_v60 = vld [vmem:[%s3135_s15 + $0x500] sm:$0xff] }
 0x15b   : > { %1012 = vxpose.xlu0.b32.cont [8/16] %v289_v61, 128  ;;  %v958_v61 = vpop.trf.xlu1 }
 0x15c   : > { %2613 = vst [vmem:[%s3181_s16 + $0x1040] sm:$0xff] %v958_v61  ;;  %1074 = vxpose.xlu2.b32.cont [6/16] %v281_v1, 128  ;;  %v331_v61 = vld [vmem:[%s3135_s15 + $0x4f0] sm:$0xff]  ;;  %v322_v1 = vld [vmem:[%s3135_s15 + $0x4a8] sm:$0xff] }
 0x15f   : > { %v928_v2 = vpop.trf.xlu0 }
 0x160   : > { %2501 = vst [vmem:[%s3181_s16 + $0xcc0] sm:$0xff] %v928_v2  ;;  %v991_v2 = vpop.trf.xlu2 }
 0x161   : > { %2110 = vst [vmem:[%s3181_s16 + $0x88] sm:$0xff] %v991_v2  ;;  %1044 = vxpose.xlu1.b32.cont [8/16] %v290_v6, 128  ;;  %v338_v2 = vld [vmem:[%s3135_s15 + $0x528] sm:$0xff] }
 0x163   : > { %1013 = vxpose.xlu0.b32.cont [9/16] %v294_v3, 128  ;;  %v959_v3 = vpop.trf.xlu1 }
 0x164   : > { %2621 = vst [vmem:[%s3181_s16 + $0x1080] sm:$0xff] %v959_v3  ;;  %1075 = vxpose.xlu2.b32.cont [7/16] %v286_v7, 128  ;;  %v334_v3 = vld [vmem:[%s3135_s15 + $0x508] sm:$0xff]  ;;  %v327_v7 = vld [vmem:[%s3135_s15 + $0x4d0] sm:$0xff] }
 0x167   : > { %v929_v8 = vpop.trf.xlu0 }
 0x168   : > { %2509 = vst [vmem:[%s3181_s16 + $0xd00] sm:$0xff] %v929_v8  ;;  %v992_v8 = vpop.trf.xlu2 }
 0x169   : > { %2118 = vst [vmem:[%s3181_s16 + $0xc8] sm:$0xff] %v992_v8  ;;  %1045 = vxpose.xlu1.b32.cont [9/16] %v295_v12, 128  ;;  %v343_v8 = vld [vmem:[%s3135_s15 + $0x550] sm:$0xff] }
 0x16b   : > { %1014 = vxpose.xlu0.b32.cont [10/16] %v299_v9, 128  ;;  %v960_v9 = vpop.trf.xlu1 }
 0x16c   : > { %2629 = vst [vmem:[%s3181_s16 + $0x10c0] sm:$0xff] %v960_v9  ;;  %1076 = vxpose.xlu2.b32.cont [8/16] %v291_v13, 128  ;;  %v339_v9 = vld [vmem:[%s3135_s15 + $0x530] sm:$0xff]  ;;  %v332_v13 = vld [vmem:[%s3135_s15 + $0x4f8] sm:$0xff] }
 0x16f   : > { %v930_v14 = vpop.trf.xlu0 }
 0x170   : > { %2517 = vst [vmem:[%s3181_s16 + $0xd40] sm:$0xff] %v930_v14  ;;  %v993_v14 = vpop.trf.xlu2 }
 0x171   : > { %2126 = vst [vmem:[%s3181_s16 + $0x108] sm:$0xff] %v993_v14  ;;  %1046 = vxpose.xlu1.b32.cont [10/16] %v300_v18, 128  ;;  %v348_v14 = vld [vmem:[%s3135_s15 + $0x578] sm:$0xff] }
 0x173   : > { %1015 = vxpose.xlu0.b32.cont [11/16] %v304_v15, 128  ;;  %v961_v15 = vpop.trf.xlu1 }
 0x174   : > { %2637 = vst [vmem:[%s3181_s16 + $0x1100] sm:$0xff] %v961_v15  ;;  %1077 = vxpose.xlu2.b32.cont [9/16] %v296_v19, 128  ;;  %v344_v15 = vld [vmem:[%s3135_s15 + $0x558] sm:$0xff]  ;;  %v335_v19 = vld [vmem:[%s3135_s15 + $0x510] sm:$0xff] }
 0x177   : > { %v931_v20 = vpop.trf.xlu0 }
 0x178   : > { %2525 = vst [vmem:[%s3181_s16 + $0xd80] sm:$0xff] %v931_v20  ;;  %v994_v20 = vpop.trf.xlu2 }
 0x179   : > { %2134 = vst [vmem:[%s3181_s16 + $0x148] sm:$0xff] %v994_v20  ;;  %1047 = vxpose.xlu1.b32.cont [11/16] %v305_v24, 128  ;;  %v353_v20 = vld [vmem:[%s3135_s15 + $0x5a0] sm:$0xff] }
 0x17b   : > { %1016 = vxpose.xlu0.b32.cont [12/16] %v309_v21, 128  ;;  %v962_v21 = vpop.trf.xlu1 }
 0x17c   : > { %2645 = vst [vmem:[%s3181_s16 + $0x1140] sm:$0xff] %v962_v21  ;;  %1078 = vxpose.xlu2.b32.cont [10/16] %v301_v25, 128  ;;  %v349_v21 = vld [vmem:[%s3135_s15 + $0x580] sm:$0xff]  ;;  %v340_v25 = vld [vmem:[%s3135_s15 + $0x538] sm:$0xff] }
 0x17f   : > { %v932_v26 = vpop.trf.xlu0 }
 0x180   : > { %2533 = vst [vmem:[%s3181_s16 + $0xdc0] sm:$0xff] %v932_v26  ;;  %v995_v26 = vpop.trf.xlu2 }
 0x181   : > { %2142 = vst [vmem:[%s3181_s16 + $0x188] sm:$0xff] %v995_v26  ;;  %1048 = vxpose.xlu1.b32.cont [12/16] %v310_v30, 128  ;;  %v358_v26 = vld [vmem:[%s3135_s15 + $0x5c8] sm:$0xff] }
 0x183   : > { %1017 = vxpose.xlu0.b32.cont [13/16] %v314_v27, 128  ;;  %v963_v27 = vpop.trf.xlu1 }
 0x184   : > { %2653 = vst [vmem:[%s3181_s16 + $0x1180] sm:$0xff] %v963_v27  ;;  %1079 = vxpose.xlu2.b32.cont [11/16] %v306_v31, 128  ;;  %v354_v27 = vld [vmem:[%s3135_s15 + $0x5a8] sm:$0xff]  ;;  %v345_v31 = vld [vmem:[%s3135_s15 + $0x560] sm:$0xff] }
 0x187   : > { %v933_v32 = vpop.trf.xlu0 }
 0x188   : > { %2541 = vst [vmem:[%s3181_s16 + $0xe00] sm:$0xff] %v933_v32  ;;  %v996_v32 = vpop.trf.xlu2 }
 0x189   : > { %2150 = vst [vmem:[%s3181_s16 + $0x1c8] sm:$0xff] %v996_v32  ;;  %1049 = vxpose.xlu1.b32.cont [13/16] %v315_v36, 128  ;;  %v363_v32 = vld [vmem:[%s3135_s15 + $0x5f0] sm:$0xff] }
 0x18b   : > { %1018 = vxpose.xlu0.b32.cont [14/16] %v319_v33, 128  ;;  %v964_v33 = vpop.trf.xlu1 }
 0x18c   : > { %2661 = vst [vmem:[%s3181_s16 + $0x11c0] sm:$0xff] %v964_v33  ;;  %1080 = vxpose.xlu2.b32.cont [12/16] %v311_v37, 128  ;;  %v359_v33 = vld [vmem:[%s3135_s15 + $0x5d0] sm:$0xff]  ;;  %v350_v37 = vld [vmem:[%s3135_s15 + $0x588] sm:$0xff] }
 0x18f   : > { %v934_v38 = vpop.trf.xlu0 }
 0x190   : > { %2549 = vst [vmem:[%s3181_s16 + $0xe40] sm:$0xff] %v934_v38  ;;  %v997_v38 = vpop.trf.xlu2 }
 0x191   : > { %2158 = vst [vmem:[%s3181_s16 + $0x208] sm:$0xff] %v997_v38  ;;  %1050 = vxpose.xlu1.b32.cont [14/16] %v320_v42, 128  ;;  %v368_v38 = vld [vmem:[%s3135_s15 + $0x618] sm:$0xff] }
 0x193   : > { %1019 = vxpose.xlu0.b32.cont [15/16] %v324_v39, 128  ;;  %v965_v39 = vpop.trf.xlu1 }
 0x194   : > { %2669 = vst [vmem:[%s3181_s16 + $0x1200] sm:$0xff] %v965_v39  ;;  %1081 = vxpose.xlu2.b32.cont [13/16] %v316_v43, 128  ;;  %v364_v39 = vld [vmem:[%s3135_s15 + $0x5f8] sm:$0xff]  ;;  %v355_v43 = vld [vmem:[%s3135_s15 + $0x5b0] sm:$0xff] }
 0x197   : > { %v935_v44 = vpop.trf.xlu0 }
 0x198   : > { %2557 = vst [vmem:[%s3181_s16 + $0xe80] sm:$0xff] %v935_v44  ;;  %v998_v44 = vpop.trf.xlu2 }
 0x199   : > { %2166 = vst [vmem:[%s3181_s16 + $0x248] sm:$0xff] %v998_v44  ;;  %1051 = vxpose.xlu1.b32.cont [15/16] %v325_v48, 128  ;;  %v373_v44 = vld [vmem:[%s3135_s15 + $0x640] sm:$0xff] }
 0x19b   : > { %1020 = vxpose.xlu0.b32.end [16/16] %v329_v45, 128  ;;  %v966_v45 = vpop.trf.xlu1 }
 0x19c   : > { %2677 = vst [vmem:[%s3181_s16 + $0x1240] sm:$0xff] %v966_v45  ;;  %1082 = vxpose.xlu2.b32.cont [14/16] %v321_v49, 128  ;;  %v369_v45 = vld [vmem:[%s3135_s15 + $0x620] sm:$0xff]  ;;  %v360_v49 = vld [vmem:[%s3135_s15 + $0x5d8] sm:$0xff] }
 0x19f   : > { %v936_v50 = vpop.trf.xlu0 }
 0x1a0   : > { %2565 = vst [vmem:[%s3181_s16 + $0xec0] sm:$0xff] %v936_v50  ;;  %v999_v50 = vpop.trf.xlu2 }
 0x1a1   : > { %2174 = vst [vmem:[%s3181_s16 + $0x288] sm:$0xff] %v999_v50  ;;  %1052 = vxpose.xlu1.b32.end [16/16] %v330_v54, 128  ;;  %v378_v50 = vld [vmem:[%s3135_s15 + $0x668] sm:$0xff] }
 0x1a3   : > { %1101 = vxpose.xlu0.b32.start [1/16] %v257_v51, 128  ;;  %v967_v51 = vpop.trf.xlu1 }
 0x1a4   : > { %2685 = vst [vmem:[%s3181_s16 + $0x1280] sm:$0xff] %v967_v51  ;;  %1083 = vxpose.xlu2.b32.cont [15/16] %v326_v55, 128  ;;  %v374_v51 = vld [vmem:[%s3135_s15 + $0x648] sm:$0xff]  ;;  %v365_v55 = vld [vmem:[%s3135_s15 + $0x600] sm:$0xff] }
 0x1a7   : > { %v937_v56 = vpop.trf.xlu0 }
 0x1a8   : > { %2573 = vst [vmem:[%s3181_s16 + $0xf00] sm:$0xff] %v937_v56  ;;  %v1000_v56 = vpop.trf.xlu2 }
 0x1a9   : > { %2182 = vst [vmem:[%s3181_s16 + $0x2c8] sm:$0xff] %v1000_v56  ;;  %1133 = vxpose.xlu1.b32.start [1/16] %v333_v60, 128  ;;  %v383_v56 = vld [vmem:[%s3135_s15 + $0x690] sm:$0xff] }
 0x1ab   : > { %1102 = vxpose.xlu0.b32.cont [2/16] %v262_v57, 128  ;;  %v968_v57 = vpop.trf.xlu1 }
 0x1ac   : > { %2693 = vst [vmem:[%s3181_s16 + $0x12c0] sm:$0xff] %v968_v57  ;;  %1084 = vxpose.xlu2.b32.end [16/16] %v331_v61, 128  ;;  %v379_v57 = vld [vmem:[%s3135_s15 + $0x670] sm:$0xff]  ;;  %v370_v61 = vld [vmem:[%s3135_s15 + $0x628] sm:$0xff] }
 0x1af   : > { %v938_v62 = vpop.trf.xlu0 }
 0x1b0   : > { %2581 = vst [vmem:[%s3181_s16 + $0xf40] sm:$0xff] %v938_v62  ;;  %v1001_v62 = vpop.trf.xlu2 }
 0x1b1   : > { %2190 = vst [vmem:[%s3181_s16 + $0x308] sm:$0xff] %v1001_v62  ;;  %1134 = vxpose.xlu1.b32.cont [2/16] %v338_v2, 128  ;;  %v388_v62 = vld [vmem:[%s3135_s15 + $0x6b8] sm:$0xff] }
 0x1b3   : > { %1103 = vxpose.xlu0.b32.cont [3/16] %v267_v63, 128  ;;  %v969_v63 = vpop.trf.xlu1 }
 0x1b4   : > { %2701 = vst [vmem:[%s3181_s16 + $0x1300] sm:$0xff] %v969_v63  ;;  %1165 = vxpose.xlu2.b32.start [1/16] %v334_v3, 128  ;;  %v384_v63 = vld [vmem:[%s3135_s15 + $0x698] sm:$0xff]  ;;  %v375_v3 = vld [vmem:[%s3135_s15 + $0x650] sm:$0xff] }
 0x1b7   : > { %v939_v4 = vpop.trf.xlu0 }
 0x1b8   : > { %2589 = vst [vmem:[%s3181_s16 + $0xf80] sm:$0xff] %v939_v4  ;;  %v1002_v4 = vpop.trf.xlu2 }
 0x1b9   : > { %2198 = vst [vmem:[%s3181_s16 + $0x348] sm:$0xff] %v1002_v4  ;;  %1135 = vxpose.xlu1.b32.cont [3/16] %v343_v8, 128  ;;  %v393_v4 = vld [vmem:[%s3135_s15 + $0x6e0] sm:$0xff] }
 0x1bb   : > { %1104 = vxpose.xlu0.b32.cont [4/16] %v272_v5, 128  ;;  %v970_v5 = vpop.trf.xlu1 }
 0x1bc   : > { %2709 = vst [vmem:[%s3181_s16 + $0x1340] sm:$0xff] %v970_v5  ;;  %1166 = vxpose.xlu2.b32.cont [2/16] %v339_v9, 128  ;;  %v389_v5 = vld [vmem:[%s3135_s15 + $0x6c0] sm:$0xff]  ;;  %v380_v9 = vld [vmem:[%s3135_s15 + $0x678] sm:$0xff] }
 0x1bf   : > { %v940_v10 = vpop.trf.xlu0 }
 0x1c0   : > { %2597 = vst [vmem:[%s3181_s16 + $0xfc0] sm:$0xff] %v940_v10  ;;  %v1003_v10 = vpop.trf.xlu2 }
 0x1c1   : > { %2206 = vst [vmem:[%s3181_s16 + $0x388] sm:$0xff] %v1003_v10  ;;  %1136 = vxpose.xlu1.b32.cont [4/16] %v348_v14, 128  ;;  %v398_v10 = vld [vmem:[%s3135_s15 + $0x708] sm:$0xff] }
 0x1c3   : > { %1105 = vxpose.xlu0.b32.cont [5/16] %v277_v11, 128  ;;  %v971_v11 = vpop.trf.xlu1 }
 0x1c4   : > { %2717 = vst [vmem:[%s3181_s16 + $0x1380] sm:$0xff] %v971_v11  ;;  %1167 = vxpose.xlu2.b32.cont [3/16] %v344_v15, 128  ;;  %v394_v11 = vld [vmem:[%s3135_s15 + $0x6e8] sm:$0xff]  ;;  %v385_v15 = vld [vmem:[%s3135_s15 + $0x6a0] sm:$0xff] }
 0x1c7   : > { %v1021_v16 = vpop.trf.xlu0 }
 0x1c8   : > { %2222 = vst [vmem:[%s3181_s16 + $0x408] sm:$0xff] %v1021_v16  ;;  %v1004_v16 = vpop.trf.xlu2 }
 0x1c9   : > { %2214 = vst [vmem:[%s3181_s16 + $0x3c8] sm:$0xff] %v1004_v16  ;;  %1137 = vxpose.xlu1.b32.cont [5/16] %v353_v20, 128  ;;  %v403_v16 = vld [vmem:[%s3135_s15 + $0x730] sm:$0xff] }
 0x1cb   : > { %1106 = vxpose.xlu0.b32.cont [6/16] %v282_v17, 128  ;;  %v972_v17 = vpop.trf.xlu1 }
 0x1cc   : > { %2725 = vst [vmem:[%s3181_s16 + $0x13c0] sm:$0xff] %v972_v17  ;;  %1168 = vxpose.xlu2.b32.cont [4/16] %v349_v21, 128  ;;  %v399_v17 = vld [vmem:[%s3135_s15 + $0x710] sm:$0xff]  ;;  %v390_v21 = vld [vmem:[%s3135_s15 + $0x6c8] sm:$0xff] }
 0x1cf   : > { %v1022_v22 = vpop.trf.xlu0 }
 0x1d0   : > { %2230 = vst [vmem:[%s3181_s16 + $0x448] sm:$0xff] %v1022_v22  ;;  %v1085_v22 = vpop.trf.xlu2 }
 0x1d1   : > { %2478 = vst [vmem:[%s3181_s16 + $0xc08] sm:$0xff] %v1085_v22  ;;  %1138 = vxpose.xlu1.b32.cont [6/16] %v358_v26, 128  ;;  %v408_v22 = vld [vmem:[%s3135_s15 + $0x758] sm:$0xff] }
 0x1d3   : > { %1107 = vxpose.xlu0.b32.cont [7/16] %v287_v23, 128  ;;  %v1053_v23 = vpop.trf.xlu1 }
 0x1d4   : > { %2350 = vst [vmem:[%s3181_s16 + $0x808] sm:$0xff] %v1053_v23  ;;  %1169 = vxpose.xlu2.b32.cont [5/16] %v354_v27, 128  ;;  %v404_v23 = vld [vmem:[%s3135_s15 + $0x738] sm:$0xff]  ;;  %v395_v27 = vld [vmem:[%s3135_s15 + $0x6f0] sm:$0xff] }
 0x1d7   : > { %v1023_v28 = vpop.trf.xlu0 }
 0x1d8   : > { %2238 = vst [vmem:[%s3181_s16 + $0x488] sm:$0xff] %v1023_v28  ;;  %v1086_v28 = vpop.trf.xlu2 }
 0x1d9   : > { %2486 = vst [vmem:[%s3181_s16 + $0xc48] sm:$0xff] %v1086_v28  ;;  %1139 = vxpose.xlu1.b32.cont [7/16] %v363_v32, 128  ;;  %v336_v28 = vld [vmem:[%s3135_s15 + $0x518] sm:$0xff] }
 0x1db   : > { %1108 = vxpose.xlu0.b32.cont [8/16] %v292_v29, 128  ;;  %v1054_v29 = vpop.trf.xlu1 }
 0x1dc   : > { %2358 = vst [vmem:[%s3181_s16 + $0x848] sm:$0xff] %v1054_v29  ;;  %1170 = vxpose.xlu2.b32.cont [6/16] %v359_v33, 128  ;;  %v409_v29 = vld [vmem:[%s3135_s15 + $0x760] sm:$0xff]  ;;  %v400_v33 = vld [vmem:[%s3135_s15 + $0x718] sm:$0xff] }
 0x1df   : > { %v1024_v34 = vpop.trf.xlu0 }
 0x1e0   : > { %2246 = vst [vmem:[%s3181_s16 + $0x4c8] sm:$0xff] %v1024_v34  ;;  %v1087_v34 = vpop.trf.xlu2 }
 0x1e1   : > { %2494 = vst [vmem:[%s3181_s16 + $0xc88] sm:$0xff] %v1087_v34  ;;  %1140 = vxpose.xlu1.b32.cont [8/16] %v368_v38, 128  ;;  %v341_v34 = vld [vmem:[%s3135_s15 + $0x540] sm:$0xff] }
 0x1e3   : > { %1109 = vxpose.xlu0.b32.cont [9/16] %v297_v35, 128  ;;  %v1055_v35 = vpop.trf.xlu1 }
 0x1e4   : > { %2366 = vst [vmem:[%s3181_s16 + $0x888] sm:$0xff] %v1055_v35  ;;  %1171 = vxpose.xlu2.b32.cont [7/16] %v364_v39, 128  ;;  %v337_v35 = vld [vmem:[%s3135_s15 + $0x520] sm:$0xff] }
 0x1e5   : > { %v405_v39 = vld [vmem:[%s3135_s15 + $0x740] sm:$0xff] }
 0x1e7   : > { %v1025_v40 = vpop.trf.xlu0 }
 0x1e8   : > { %2254 = vst [vmem:[%s3181_s16 + $0x508] sm:$0xff] %v1025_v40  ;;  %v1088_v40 = vpop.trf.xlu2 }
 0x1e9   : > { %2502 = vst [vmem:[%s3181_s16 + $0xcc8] sm:$0xff] %v1088_v40  ;;  %1141 = vxpose.xlu1.b32.cont [9/16] %v373_v44, 128  ;;  %v346_v40 = vld [vmem:[%s3135_s15 + $0x568] sm:$0xff] }
 0x1eb   : > { %1110 = vxpose.xlu0.b32.cont [10/16] %v302_v41, 128  ;;  %v1056_v41 = vpop.trf.xlu1 }
 0x1ec   : > { %2374 = vst [vmem:[%s3181_s16 + $0x8c8] sm:$0xff] %v1056_v41  ;;  %1172 = vxpose.xlu2.b32.cont [8/16] %v369_v45, 128  ;;  %v342_v41 = vld [vmem:[%s3135_s15 + $0x548] sm:$0xff] }
 0x1ed   : > { %v410_v45 = vld [vmem:[%s3135_s15 + $0x768] sm:$0xff] }
 0x1ef   : > { %v1026_v46 = vpop.trf.xlu0 }
 0x1f0   : > { %2262 = vst [vmem:[%s3181_s16 + $0x548] sm:$0xff] %v1026_v46  ;;  %v1089_v46 = vpop.trf.xlu2 }
 0x1f1   : > { %2510 = vst [vmem:[%s3181_s16 + $0xd08] sm:$0xff] %v1089_v46  ;;  %1142 = vxpose.xlu1.b32.cont [10/16] %v378_v50, 128  ;;  %v351_v46 = vld [vmem:[%s3135_s15 + $0x590] sm:$0xff] }
 0x1f3   : > { %1111 = vxpose.xlu0.b32.cont [11/16] %v307_v47, 128  ;;  %v1057_v47 = vpop.trf.xlu1 }
 0x1f4   : > { %2382 = vst [vmem:[%s3181_s16 + $0x908] sm:$0xff] %v1057_v47  ;;  %1173 = vxpose.xlu2.b32.cont [9/16] %v374_v51, 128  ;;  %v347_v47 = vld [vmem:[%s3135_s15 + $0x570] sm:$0xff]  ;;  %v413_v51 = vld [vmem:[%s3135_s15 + $0x780] sm:$0xff] }
 0x1f7   : > { %v1027_v52 = vpop.trf.xlu0 }
 0x1f8   : > { %2270 = vst [vmem:[%s3181_s16 + $0x588] sm:$0xff] %v1027_v52  ;;  %v1090_v52 = vpop.trf.xlu2 }
 0x1f9   : > { %2518 = vst [vmem:[%s3181_s16 + $0xd48] sm:$0xff] %v1090_v52  ;;  %1143 = vxpose.xlu1.b32.cont [11/16] %v383_v56, 128  ;;  %v356_v52 = vld [vmem:[%s3135_s15 + $0x5b8] sm:$0xff] }
 0x1fb   : > { %1112 = vxpose.xlu0.b32.cont [12/16] %v312_v53, 128  ;;  %v1058_v53 = vpop.trf.xlu1 }
 0x1fc   : > { %2390 = vst [vmem:[%s3181_s16 + $0x948] sm:$0xff] %v1058_v53  ;;  %1174 = vxpose.xlu2.b32.cont [10/16] %v379_v57, 128  ;;  %v352_v53 = vld [vmem:[%s3135_s15 + $0x598] sm:$0xff]  ;;  %v418_v57 = vld [vmem:[%s3135_s15 + $0x7a8] sm:$0xff] }
 0x1ff   : > { %v1028_v58 = vpop.trf.xlu0 }
 0x200   : > { %2278 = vst [vmem:[%s3181_s16 + $0x5c8] sm:$0xff] %v1028_v58  ;;  %v1091_v58 = vpop.trf.xlu2 }
 0x201   : > { %2526 = vst [vmem:[%s3181_s16 + $0xd88] sm:$0xff] %v1091_v58  ;;  %1144 = vxpose.xlu1.b32.cont [12/16] %v388_v62, 128  ;;  %v361_v58 = vld [vmem:[%s3135_s15 + $0x5e0] sm:$0xff] }
 0x203   : > { %1113 = vxpose.xlu0.b32.cont [13/16] %v317_v59, 128  ;;  %v1059_v59 = vpop.trf.xlu1 }
 0x204   : > { %2398 = vst [vmem:[%s3181_s16 + $0x988] sm:$0xff] %v1059_v59  ;;  %1175 = vxpose.xlu2.b32.cont [11/16] %v384_v63, 128  ;;  %v357_v59 = vld [vmem:[%s3135_s15 + $0x5c0] sm:$0xff]  ;;  %v423_v63 = vld [vmem:[%s3135_s15 + $0x7d0] sm:$0xff] }
 0x207   : > { %v1029_v0 = vpop.trf.xlu0 }
 0x208   : > { %2286 = vst [vmem:[%s3181_s16 + $0x608] sm:$0xff] %v1029_v0  ;;  %v1092_v0 = vpop.trf.xlu2 }
 0x209   : > { %2534 = vst [vmem:[%s3181_s16 + $0xdc8] sm:$0xff] %v1092_v0  ;;  %1145 = vxpose.xlu1.b32.cont [13/16] %v393_v4, 128  ;;  %v366_v0 = vld [vmem:[%s3135_s15 + $0x608] sm:$0xff] }
 0x20b   : > { %1114 = vxpose.xlu0.b32.cont [14/16] %v322_v1, 128  ;;  %v1060_v1 = vpop.trf.xlu1 }
 0x20c   : > { %2406 = vst [vmem:[%s3181_s16 + $0x9c8] sm:$0xff] %v1060_v1  ;;  %1176 = vxpose.xlu2.b32.cont [12/16] %v389_v5, 128  ;;  %v362_v1 = vld [vmem:[%s3135_s15 + $0x5e8] sm:$0xff]  ;;  %v428_v5 = vld [vmem:[%s3135_s15 + $0x7f8] sm:$0xff] }
 0x20f   : > { %v1030_v6 = vpop.trf.xlu0 }
 0x210   : > { %2294 = vst [vmem:[%s3181_s16 + $0x648] sm:$0xff] %v1030_v6  ;;  %v1093_v6 = vpop.trf.xlu2 }
 0x211   : > { %2542 = vst [vmem:[%s3181_s16 + $0xe08] sm:$0xff] %v1093_v6  ;;  %1146 = vxpose.xlu1.b32.cont [14/16] %v398_v10, 128  ;;  %v371_v6 = vld [vmem:[%s3135_s15 + $0x630] sm:$0xff] }
 0x213   : > { %1115 = vxpose.xlu0.b32.cont [15/16] %v327_v7, 128  ;;  %v1061_v7 = vpop.trf.xlu1 }
 0x214   : > { %2414 = vst [vmem:[%s3181_s16 + $0xa08] sm:$0xff] %v1061_v7  ;;  %1177 = vxpose.xlu2.b32.cont [13/16] %v394_v11, 128  ;;  %v367_v7 = vld [vmem:[%s3135_s15 + $0x610] sm:$0xff]  ;;  %v433_v11 = vld [vmem:[%s3135_s15 + $0x820] sm:$0xff] }
 0x217   : > { %v1031_v12 = vpop.trf.xlu0 }
 0x218   : > { %2302 = vst [vmem:[%s3181_s16 + $0x688] sm:$0xff] %v1031_v12  ;;  %v1094_v12 = vpop.trf.xlu2 }
 0x219   : > { %2550 = vst [vmem:[%s3181_s16 + $0xe48] sm:$0xff] %v1094_v12  ;;  %1147 = vxpose.xlu1.b32.cont [15/16] %v403_v16, 128  ;;  %v376_v12 = vld [vmem:[%s3135_s15 + $0x658] sm:$0xff] }
 0x21b   : > { %1116 = vxpose.xlu0.b32.end [16/16] %v332_v13, 128  ;;  %v1062_v13 = vpop.trf.xlu1 }
 0x21c   : > { %2422 = vst [vmem:[%s3181_s16 + $0xa48] sm:$0xff] %v1062_v13  ;;  %1178 = vxpose.xlu2.b32.cont [14/16] %v399_v17, 128  ;;  %v372_v13 = vld [vmem:[%s3135_s15 + $0x638] sm:$0xff]  ;;  %v438_v17 = vld [vmem:[%s3135_s15 + $0x848] sm:$0xff] }
 0x21f   : > { %v1032_v18 = vpop.trf.xlu0 }
 0x220   : > { %2310 = vst [vmem:[%s3181_s16 + $0x6c8] sm:$0xff] %v1032_v18  ;;  %v1095_v18 = vpop.trf.xlu2 }
 0x221   : > { %2558 = vst [vmem:[%s3181_s16 + $0xe88] sm:$0xff] %v1095_v18  ;;  %1148 = vxpose.xlu1.b32.end [16/16] %v408_v22, 128  ;;  %v381_v18 = vld [vmem:[%s3135_s15 + $0x680] sm:$0xff] }
 0x223   : > { %1197 = vxpose.xlu0.b32.start [1/16] %v335_v19, 128  ;;  %v1063_v19 = vpop.trf.xlu1 }
 0x224   : > { %2430 = vst [vmem:[%s3181_s16 + $0xa88] sm:$0xff] %v1063_v19  ;;  %1179 = vxpose.xlu2.b32.cont [15/16] %v404_v23, 128  ;;  %v377_v19 = vld [vmem:[%s3135_s15 + $0x660] sm:$0xff]  ;;  %v443_v23 = vld [vmem:[%s3135_s15 + $0x870] sm:$0xff] }
 0x227   : > { %v1033_v24 = vpop.trf.xlu0 }
 0x228   : > { %2318 = vst [vmem:[%s3181_s16 + $0x708] sm:$0xff] %v1033_v24  ;;  %v1096_v24 = vpop.trf.xlu2 }
 0x229   : > { %2566 = vst [vmem:[%s3181_s16 + $0xec8] sm:$0xff] %v1096_v24  ;;  %1229 = vxpose.xlu1.b32.start [1/16] %v336_v28, 128  ;;  %v386_v24 = vld [vmem:[%s3135_s15 + $0x6a8] sm:$0xff] }
 0x22b   : > { %1198 = vxpose.xlu0.b32.cont [2/16] %v340_v25, 128  ;;  %v1064_v25 = vpop.trf.xlu1 }
 0x22c   : > { %2438 = vst [vmem:[%s3181_s16 + $0xac8] sm:$0xff] %v1064_v25  ;;  %1180 = vxpose.xlu2.b32.end [16/16] %v409_v29, 128  ;;  %v382_v25 = vld [vmem:[%s3135_s15 + $0x688] sm:$0xff]  ;;  %v448_v29 = vld [vmem:[%s3135_s15 + $0x898] sm:$0xff] }
 0x22f   : > { %v1034_v30 = vpop.trf.xlu0 }
 0x230   : > { %2326 = vst [vmem:[%s3181_s16 + $0x748] sm:$0xff] %v1034_v30  ;;  %v1097_v30 = vpop.trf.xlu2 }
 0x231   : > { %2574 = vst [vmem:[%s3181_s16 + $0xf08] sm:$0xff] %v1097_v30  ;;  %1230 = vxpose.xlu1.b32.cont [2/16] %v341_v34, 128  ;;  %v391_v30 = vld [vmem:[%s3135_s15 + $0x6d0] sm:$0xff] }
 0x233   : > { %1199 = vxpose.xlu0.b32.cont [3/16] %v345_v31, 128  ;;  %v1065_v31 = vpop.trf.xlu1 }
 0x234   : > { %2446 = vst [vmem:[%s3181_s16 + $0xb08] sm:$0xff] %v1065_v31  ;;  %1261 = vxpose.xlu2.b32.start [1/16] %v337_v35, 128  ;;  %v387_v31 = vld [vmem:[%s3135_s15 + $0x6b0] sm:$0xff]  ;;  %v453_v35 = vld [vmem:[%s3135_s15 + $0x8c0] sm:$0xff] }
 0x237   : > { %v1035_v36 = vpop.trf.xlu0 }
 0x238   : > { %2334 = vst [vmem:[%s3181_s16 + $0x788] sm:$0xff] %v1035_v36  ;;  %v1098_v36 = vpop.trf.xlu2 }
 0x239   : > { %2582 = vst [vmem:[%s3181_s16 + $0xf48] sm:$0xff] %v1098_v36  ;;  %1231 = vxpose.xlu1.b32.cont [3/16] %v346_v40, 128  ;;  %v396_v36 = vld [vmem:[%s3135_s15 + $0x6f8] sm:$0xff] }
 0x23b   : > { %1200 = vxpose.xlu0.b32.cont [4/16] %v350_v37, 128  ;;  %v1066_v37 = vpop.trf.xlu1 }
 0x23c   : > { %2454 = vst [vmem:[%s3181_s16 + $0xb48] sm:$0xff] %v1066_v37  ;;  %1262 = vxpose.xlu2.b32.cont [2/16] %v342_v41, 128  ;;  %v392_v37 = vld [vmem:[%s3135_s15 + $0x6d8] sm:$0xff]  ;;  %v458_v41 = vld [vmem:[%s3135_s15 + $0x8e8] sm:$0xff] }
 0x23f   : > { %v1036_v42 = vpop.trf.xlu0 }
 0x240   : > { %2342 = vst [vmem:[%s3181_s16 + $0x7c8] sm:$0xff] %v1036_v42  ;;  %v1099_v42 = vpop.trf.xlu2 }
 0x241   : > { %2590 = vst [vmem:[%s3181_s16 + $0xf88] sm:$0xff] %v1099_v42  ;;  %1232 = vxpose.xlu1.b32.cont [4/16] %v351_v46, 128  ;;  %v401_v42 = vld [vmem:[%s3135_s15 + $0x720] sm:$0xff] }
 0x243   : > { %1201 = vxpose.xlu0.b32.cont [5/16] %v355_v43, 128  ;;  %v1067_v43 = vpop.trf.xlu1 }
 0x244   : > { %2462 = vst [vmem:[%s3181_s16 + $0xb88] sm:$0xff] %v1067_v43  ;;  %1263 = vxpose.xlu2.b32.cont [3/16] %v347_v47, 128  ;;  %v397_v43 = vld [vmem:[%s3135_s15 + $0x700] sm:$0xff]  ;;  %v463_v47 = vld [vmem:[%s3135_s15 + $0x910] sm:$0xff] }
 0x247   : > { %v1117_v48 = vpop.trf.xlu0 }
 0x248   : > { %2606 = vst [vmem:[%s3181_s16 + $0x1008] sm:$0xff] %v1117_v48  ;;  %v1100_v48 = vpop.trf.xlu2 }
 0x249   : > { %2598 = vst [vmem:[%s3181_s16 + $0xfc8] sm:$0xff] %v1100_v48  ;;  %1233 = vxpose.xlu1.b32.cont [5/16] %v356_v52, 128  ;;  %v406_v48 = vld [vmem:[%s3135_s15 + $0x748] sm:$0xff] }
 0x24b   : > { %1202 = vxpose.xlu0.b32.cont [6/16] %v360_v49, 128  ;;  %v1068_v49 = vpop.trf.xlu1 }
 0x24c   : > { %2470 = vst [vmem:[%s3181_s16 + $0xbc8] sm:$0xff] %v1068_v49  ;;  %1264 = vxpose.xlu2.b32.cont [4/16] %v352_v53, 128  ;;  %v402_v49 = vld [vmem:[%s3135_s15 + $0x728] sm:$0xff]  ;;  %v468_v53 = vld [vmem:[%s3135_s15 + $0x938] sm:$0xff] }
 0x24f   : > { %v1118_v54 = vpop.trf.xlu0 }
 0x250   : > { %2614 = vst [vmem:[%s3181_s16 + $0x1048] sm:$0xff] %v1118_v54  ;;  %v1181_v54 = vpop.trf.xlu2 }
 0x251   : > { %2223 = vst [vmem:[%s3181_s16 + $0x410] sm:$0xff] %v1181_v54  ;;  %1234 = vxpose.xlu1.b32.cont [6/16] %v361_v58, 128  ;;  %v411_v54 = vld [vmem:[%s3135_s15 + $0x770] sm:$0xff] }
 0x253   : > { %1203 = vxpose.xlu0.b32.cont [7/16] %v365_v55, 128  ;;  %v1149_v55 = vpop.trf.xlu1 }
 0x254   : > { %2095 = vst [vmem:[%s3181_s16 + $0x10] sm:$0xff] %v1149_v55  ;;  %1265 = vxpose.xlu2.b32.cont [5/16] %v357_v59, 128  ;;  %v407_v55 = vld [vmem:[%s3135_s15 + $0x750] sm:$0xff]  ;;  %v473_v59 = vld [vmem:[%s3135_s15 + $0x960] sm:$0xff] }
 0x257   : > { %v1119_v60 = vpop.trf.xlu0 }
 0x258   : > { %2622 = vst [vmem:[%s3181_s16 + $0x1088] sm:$0xff] %v1119_v60  ;;  %v1182_v60 = vpop.trf.xlu2 }
 0x259   : > { %2231 = vst [vmem:[%s3181_s16 + $0x450] sm:$0xff] %v1182_v60  ;;  %1235 = vxpose.xlu1.b32.cont [7/16] %v366_v0, 128  ;;  %v414_v60 = vld [vmem:[%s3135_s15 + $0x788] sm:$0xff] }
 0x25b   : > { %1204 = vxpose.xlu0.b32.cont [8/16] %v370_v61, 128  ;;  %v1150_v61 = vpop.trf.xlu1 }
 0x25c   : > { %2103 = vst [vmem:[%s3181_s16 + $0x50] sm:$0xff] %v1150_v61  ;;  %1266 = vxpose.xlu2.b32.cont [6/16] %v362_v1, 128  ;;  %v412_v61 = vld [vmem:[%s3135_s15 + $0x778] sm:$0xff]  ;;  %v478_v1 = vld [vmem:[%s3135_s15 + $0x988] sm:$0xff] }
 0x25f   : > { %v1120_v2 = vpop.trf.xlu0 }
 0x260   : > { %2630 = vst [vmem:[%s3181_s16 + $0x10c8] sm:$0xff] %v1120_v2  ;;  %v1183_v2 = vpop.trf.xlu2 }
 0x261   : > { %2239 = vst [vmem:[%s3181_s16 + $0x490] sm:$0xff] %v1183_v2  ;;  %1236 = vxpose.xlu1.b32.cont [8/16] %v371_v6, 128  ;;  %v419_v2 = vld [vmem:[%s3135_s15 + $0x7b0] sm:$0xff] }
 0x263   : > { %1205 = vxpose.xlu0.b32.cont [9/16] %v375_v3, 128  ;;  %v1151_v3 = vpop.trf.xlu1 }
 0x264   : > { %2111 = vst [vmem:[%s3181_s16 + $0x90] sm:$0xff] %v1151_v3  ;;  %1267 = vxpose.xlu2.b32.cont [7/16] %v367_v7, 128  ;;  %v415_v3 = vld [vmem:[%s3135_s15 + $0x790] sm:$0xff] }
 0x265   : > { %v483_v7 = vld [vmem:[%s3135_s15 + $0x9b0] sm:$0xff] }
 0x267   : > { %v1121_v8 = vpop.trf.xlu0 }
 0x268   : > { %2638 = vst [vmem:[%s3181_s16 + $0x1108] sm:$0xff] %v1121_v8  ;;  %v1184_v8 = vpop.trf.xlu2 }
 0x269   : > { %2247 = vst [vmem:[%s3181_s16 + $0x4d0] sm:$0xff] %v1184_v8  ;;  %1237 = vxpose.xlu1.b32.cont [9/16] %v376_v12, 128  ;;  %v424_v8 = vld [vmem:[%s3135_s15 + $0x7d8] sm:$0xff] }
 0x26b   : > { %1206 = vxpose.xlu0.b32.cont [10/16] %v380_v9, 128  ;;  %v1152_v9 = vpop.trf.xlu1 }
 0x26c   : > { %2119 = vst [vmem:[%s3181_s16 + $0xd0] sm:$0xff] %v1152_v9  ;;  %1268 = vxpose.xlu2.b32.cont [8/16] %v372_v13, 128  ;;  %v420_v9 = vld [vmem:[%s3135_s15 + $0x7b8] sm:$0xff] }
 0x26d   : > { %v488_v13 = vld [vmem:[%s3135_s15 + $0x9d8] sm:$0xff] }
 0x26f   : > { %v1122_v14 = vpop.trf.xlu0 }
 0x270   : > { %2646 = vst [vmem:[%s3181_s16 + $0x1148] sm:$0xff] %v1122_v14  ;;  %v1185_v14 = vpop.trf.xlu2 }
 0x271   : > { %2255 = vst [vmem:[%s3181_s16 + $0x510] sm:$0xff] %v1185_v14  ;;  %1238 = vxpose.xlu1.b32.cont [10/16] %v381_v18, 128  ;;  %v429_v14 = vld [vmem:[%s3135_s15 + $0x800] sm:$0xff] }
 0x273   : > { %1207 = vxpose.xlu0.b32.cont [11/16] %v385_v15, 128  ;;  %v1153_v15 = vpop.trf.xlu1 }
 0x274   : > { %2127 = vst [vmem:[%s3181_s16 + $0x110] sm:$0xff] %v1153_v15  ;;  %1269 = vxpose.xlu2.b32.cont [9/16] %v377_v19, 128  ;;  %v425_v15 = vld [vmem:[%s3135_s15 + $0x7e0] sm:$0xff]  ;;  %v416_v19 = vld [vmem:[%s3135_s15 + $0x798] sm:$0xff] }
 0x277   : > { %v1123_v20 = vpop.trf.xlu0 }
 0x278   : > { %2654 = vst [vmem:[%s3181_s16 + $0x1188] sm:$0xff] %v1123_v20  ;;  %v1186_v20 = vpop.trf.xlu2 }
 0x279   : > { %2263 = vst [vmem:[%s3181_s16 + $0x550] sm:$0xff] %v1186_v20  ;;  %1239 = vxpose.xlu1.b32.cont [11/16] %v386_v24, 128  ;;  %v434_v20 = vld [vmem:[%s3135_s15 + $0x828] sm:$0xff] }
 0x27b   : > { %1208 = vxpose.xlu0.b32.cont [12/16] %v390_v21, 128  ;;  %v1154_v21 = vpop.trf.xlu1 }
 0x27c   : > { %2135 = vst [vmem:[%s3181_s16 + $0x150] sm:$0xff] %v1154_v21  ;;  %1270 = vxpose.xlu2.b32.cont [10/16] %v382_v25, 128  ;;  %v430_v21 = vld [vmem:[%s3135_s15 + $0x808] sm:$0xff]  ;;  %v421_v25 = vld [vmem:[%s3135_s15 + $0x7c0] sm:$0xff] }
 0x27f   : > { %v1124_v26 = vpop.trf.xlu0 }
 0x280   : > { %2662 = vst [vmem:[%s3181_s16 + $0x11c8] sm:$0xff] %v1124_v26  ;;  %v1187_v26 = vpop.trf.xlu2 }
 0x281   : > { %2271 = vst [vmem:[%s3181_s16 + $0x590] sm:$0xff] %v1187_v26  ;;  %1240 = vxpose.xlu1.b32.cont [12/16] %v391_v30, 128  ;;  %v439_v26 = vld [vmem:[%s3135_s15 + $0x850] sm:$0xff] }
 0x283   : > { %1209 = vxpose.xlu0.b32.cont [13/16] %v395_v27, 128  ;;  %v1155_v27 = vpop.trf.xlu1 }
 0x284   : > { %2143 = vst [vmem:[%s3181_s16 + $0x190] sm:$0xff] %v1155_v27  ;;  %1271 = vxpose.xlu2.b32.cont [11/16] %v387_v31, 128  ;;  %v435_v27 = vld [vmem:[%s3135_s15 + $0x830] sm:$0xff]  ;;  %v426_v31 = vld [vmem:[%s3135_s15 + $0x7e8] sm:$0xff] }
 0x287   : > { %v1125_v32 = vpop.trf.xlu0 }
 0x288   : > { %2670 = vst [vmem:[%s3181_s16 + $0x1208] sm:$0xff] %v1125_v32  ;;  %v1188_v32 = vpop.trf.xlu2 }
 0x289   : > { %2279 = vst [vmem:[%s3181_s16 + $0x5d0] sm:$0xff] %v1188_v32  ;;  %1241 = vxpose.xlu1.b32.cont [13/16] %v396_v36, 128  ;;  %v444_v32 = vld [vmem:[%s3135_s15 + $0x878] sm:$0xff] }
 0x28b   : > { %1210 = vxpose.xlu0.b32.cont [14/16] %v400_v33, 128  ;;  %v1156_v33 = vpop.trf.xlu1 }
 0x28c   : > { %2151 = vst [vmem:[%s3181_s16 + $0x1d0] sm:$0xff] %v1156_v33  ;;  %1272 = vxpose.xlu2.b32.cont [12/16] %v392_v37, 128  ;;  %v440_v33 = vld [vmem:[%s3135_s15 + $0x858] sm:$0xff]  ;;  %v431_v37 = vld [vmem:[%s3135_s15 + $0x810] sm:$0xff] }
 0x28f   : > { %v1126_v38 = vpop.trf.xlu0 }
 0x290   : > { %2678 = vst [vmem:[%s3181_s16 + $0x1248] sm:$0xff] %v1126_v38  ;;  %v1189_v38 = vpop.trf.xlu2 }
 0x291   : > { %2287 = vst [vmem:[%s3181_s16 + $0x610] sm:$0xff] %v1189_v38  ;;  %1242 = vxpose.xlu1.b32.cont [14/16] %v401_v42, 128  ;;  %v449_v38 = vld [vmem:[%s3135_s15 + $0x8a0] sm:$0xff] }
 0x293   : > { %1211 = vxpose.xlu0.b32.cont [15/16] %v405_v39, 128  ;;  %v1157_v39 = vpop.trf.xlu1 }
 0x294   : > { %2159 = vst [vmem:[%s3181_s16 + $0x210] sm:$0xff] %v1157_v39  ;;  %1273 = vxpose.xlu2.b32.cont [13/16] %v397_v43, 128  ;;  %v445_v39 = vld [vmem:[%s3135_s15 + $0x880] sm:$0xff]  ;;  %v436_v43 = vld [vmem:[%s3135_s15 + $0x838] sm:$0xff] }
 0x297   : > { %v1127_v44 = vpop.trf.xlu0 }
 0x298   : > { %2686 = vst [vmem:[%s3181_s16 + $0x1288] sm:$0xff] %v1127_v44  ;;  %v1190_v44 = vpop.trf.xlu2 }
 0x299   : > { %2295 = vst [vmem:[%s3181_s16 + $0x650] sm:$0xff] %v1190_v44  ;;  %1243 = vxpose.xlu1.b32.cont [15/16] %v406_v48, 128  ;;  %v454_v44 = vld [vmem:[%s3135_s15 + $0x8c8] sm:$0xff] }
 0x29b   : > { %1212 = vxpose.xlu0.b32.end [16/16] %v410_v45, 128  ;;  %v1158_v45 = vpop.trf.xlu1 }
 0x29c   : > { %2167 = vst [vmem:[%s3181_s16 + $0x250] sm:$0xff] %v1158_v45  ;;  %1274 = vxpose.xlu2.b32.cont [14/16] %v402_v49, 128  ;;  %v450_v45 = vld [vmem:[%s3135_s15 + $0x8a8] sm:$0xff]  ;;  %v441_v49 = vld [vmem:[%s3135_s15 + $0x860] sm:$0xff] }
 0x29f   : > { %v1128_v50 = vpop.trf.xlu0 }
 0x2a0   : > { %2694 = vst [vmem:[%s3181_s16 + $0x12c8] sm:$0xff] %v1128_v50  ;;  %v1191_v50 = vpop.trf.xlu2 }
 0x2a1   : > { %2303 = vst [vmem:[%s3181_s16 + $0x690] sm:$0xff] %v1191_v50  ;;  %1244 = vxpose.xlu1.b32.end [16/16] %v411_v54, 128  ;;  %v459_v50 = vld [vmem:[%s3135_s15 + $0x8f0] sm:$0xff] }
 0x2a3   : > { %1293 = vxpose.xlu0.b32.start [1/16] %v413_v51, 128  ;;  %v1159_v51 = vpop.trf.xlu1 }
 0x2a4   : > { %2175 = vst [vmem:[%s3181_s16 + $0x290] sm:$0xff] %v1159_v51  ;;  %1275 = vxpose.xlu2.b32.cont [15/16] %v407_v55, 128  ;;  %v455_v51 = vld [vmem:[%s3135_s15 + $0x8d0] sm:$0xff]  ;;  %v446_v55 = vld [vmem:[%s3135_s15 + $0x888] sm:$0xff] }
 0x2a7   : > { %v1129_v56 = vpop.trf.xlu0 }
 0x2a8   : > { %2702 = vst [vmem:[%s3181_s16 + $0x1308] sm:$0xff] %v1129_v56  ;;  %v1192_v56 = vpop.trf.xlu2 }
 0x2a9   : > { %2311 = vst [vmem:[%s3181_s16 + $0x6d0] sm:$0xff] %v1192_v56  ;;  %1325 = vxpose.xlu1.b32.start [1/16] %v414_v60, 128  ;;  %v464_v56 = vld [vmem:[%s3135_s15 + $0x918] sm:$0xff] }
 0x2ab   : > { %1294 = vxpose.xlu0.b32.cont [2/16] %v418_v57, 128  ;;  %v1160_v57 = vpop.trf.xlu1 }
 0x2ac   : > { %2183 = vst [vmem:[%s3181_s16 + $0x2d0] sm:$0xff] %v1160_v57  ;;  %1276 = vxpose.xlu2.b32.end [16/16] %v412_v61, 128  ;;  %v460_v57 = vld [vmem:[%s3135_s15 + $0x8f8] sm:$0xff]  ;;  %v451_v61 = vld [vmem:[%s3135_s15 + $0x8b0] sm:$0xff] }
 0x2af   : > { %v1130_v62 = vpop.trf.xlu0 }
 0x2b0   : > { %2710 = vst [vmem:[%s3181_s16 + $0x1348] sm:$0xff] %v1130_v62  ;;  %v1193_v62 = vpop.trf.xlu2 }
 0x2b1   : > { %2319 = vst [vmem:[%s3181_s16 + $0x710] sm:$0xff] %v1193_v62  ;;  %1326 = vxpose.xlu1.b32.cont [2/16] %v419_v2, 128  ;;  %v469_v62 = vld [vmem:[%s3135_s15 + $0x940] sm:$0xff] }
 0x2b3   : > { %1295 = vxpose.xlu0.b32.cont [3/16] %v423_v63, 128  ;;  %v1161_v63 = vpop.trf.xlu1 }
 0x2b4   : > { %2191 = vst [vmem:[%s3181_s16 + $0x310] sm:$0xff] %v1161_v63  ;;  %1357 = vxpose.xlu2.b32.start [1/16] %v415_v3, 128  ;;  %v465_v63 = vld [vmem:[%s3135_s15 + $0x920] sm:$0xff]  ;;  %v456_v3 = vld [vmem:[%s3135_s15 + $0x8d8] sm:$0xff] }
 0x2b7   : > { %v1131_v4 = vpop.trf.xlu0 }
 0x2b8   : > { %2718 = vst [vmem:[%s3181_s16 + $0x1388] sm:$0xff] %v1131_v4  ;;  %v1194_v4 = vpop.trf.xlu2 }
 0x2b9   : > { %2327 = vst [vmem:[%s3181_s16 + $0x750] sm:$0xff] %v1194_v4  ;;  %1327 = vxpose.xlu1.b32.cont [3/16] %v424_v8, 128  ;;  %v474_v4 = vld [vmem:[%s3135_s15 + $0x968] sm:$0xff] }
 0x2bb   : > { %1296 = vxpose.xlu0.b32.cont [4/16] %v428_v5, 128  ;;  %v1162_v5 = vpop.trf.xlu1 }
 0x2bc   : > { %2199 = vst [vmem:[%s3181_s16 + $0x350] sm:$0xff] %v1162_v5  ;;  %1358 = vxpose.xlu2.b32.cont [2/16] %v420_v9, 128  ;;  %v470_v5 = vld [vmem:[%s3135_s15 + $0x948] sm:$0xff]  ;;  %v461_v9 = vld [vmem:[%s3135_s15 + $0x900] sm:$0xff] }
 0x2bf   : > { %v1132_v10 = vpop.trf.xlu0 }
 0x2c0   : > { %2726 = vst [vmem:[%s3181_s16 + $0x13c8] sm:$0xff] %v1132_v10  ;;  %v1195_v10 = vpop.trf.xlu2 }
 0x2c1   : > { %2335 = vst [vmem:[%s3181_s16 + $0x790] sm:$0xff] %v1195_v10  ;;  %1328 = vxpose.xlu1.b32.cont [4/16] %v429_v14, 128  ;;  %v479_v10 = vld [vmem:[%s3135_s15 + $0x990] sm:$0xff] }
 0x2c3   : > { %1297 = vxpose.xlu0.b32.cont [5/16] %v433_v11, 128  ;;  %v1163_v11 = vpop.trf.xlu1 }
 0x2c4   : > { %2207 = vst [vmem:[%s3181_s16 + $0x390] sm:$0xff] %v1163_v11  ;;  %1359 = vxpose.xlu2.b32.cont [3/16] %v425_v15, 128  ;;  %v475_v11 = vld [vmem:[%s3135_s15 + $0x970] sm:$0xff]  ;;  %v466_v15 = vld [vmem:[%s3135_s15 + $0x928] sm:$0xff] }
 0x2c7   : > { %v1213_v16 = vpop.trf.xlu0 }
 0x2c8   : > { %2351 = vst [vmem:[%s3181_s16 + $0x810] sm:$0xff] %v1213_v16  ;;  %v1196_v16 = vpop.trf.xlu2 }
 0x2c9   : > { %2343 = vst [vmem:[%s3181_s16 + $0x7d0] sm:$0xff] %v1196_v16  ;;  %1329 = vxpose.xlu1.b32.cont [5/16] %v434_v20, 128  ;;  %v484_v16 = vld [vmem:[%s3135_s15 + $0x9b8] sm:$0xff] }
 0x2cb   : > { %1298 = vxpose.xlu0.b32.cont [6/16] %v438_v17, 128  ;;  %v1164_v17 = vpop.trf.xlu1 }
 0x2cc   : > { %2215 = vst [vmem:[%s3181_s16 + $0x3d0] sm:$0xff] %v1164_v17  ;;  %1360 = vxpose.xlu2.b32.cont [4/16] %v430_v21, 128  ;;  %v480_v17 = vld [vmem:[%s3135_s15 + $0x998] sm:$0xff]  ;;  %v471_v21 = vld [vmem:[%s3135_s15 + $0x950] sm:$0xff] }
 0x2cf   : > { %v1214_v22 = vpop.trf.xlu0 }
 0x2d0   : > { %2359 = vst [vmem:[%s3181_s16 + $0x850] sm:$0xff] %v1214_v22  ;;  %v1277_v22 = vpop.trf.xlu2 }
 0x2d1   : > { %2607 = vst [vmem:[%s3181_s16 + $0x1010] sm:$0xff] %v1277_v22  ;;  %1330 = vxpose.xlu1.b32.cont [6/16] %v439_v26, 128  ;;  %v489_v22 = vld [vmem:[%s3135_s15 + $0x9e0] sm:$0xff] }
 0x2d3   : > { %1299 = vxpose.xlu0.b32.cont [7/16] %v443_v23, 128  ;;  %v1245_v23 = vpop.trf.xlu1 }
 0x2d4   : > { %2479 = vst [vmem:[%s3181_s16 + $0xc10] sm:$0xff] %v1245_v23  ;;  %1361 = vxpose.xlu2.b32.cont [5/16] %v435_v27, 128  ;;  %v485_v23 = vld [vmem:[%s3135_s15 + $0x9c0] sm:$0xff]  ;;  %v476_v27 = vld [vmem:[%s3135_s15 + $0x978] sm:$0xff] }
 0x2d7   : > { %v1215_v28 = vpop.trf.xlu0 }
 0x2d8   : > { %2367 = vst [vmem:[%s3181_s16 + $0x890] sm:$0xff] %v1215_v28  ;;  %v1278_v28 = vpop.trf.xlu2 }
 0x2d9   : > { %2615 = vst [vmem:[%s3181_s16 + $0x1050] sm:$0xff] %v1278_v28  ;;  %1331 = vxpose.xlu1.b32.cont [7/16] %v444_v32, 128  ;;  %v417_v28 = vld [vmem:[%s3135_s15 + $0x7a0] sm:$0xff] }
 0x2db   : > { %1300 = vxpose.xlu0.b32.cont [8/16] %v448_v29, 128  ;;  %v1246_v29 = vpop.trf.xlu1 }
 0x2dc   : > { %2487 = vst [vmem:[%s3181_s16 + $0xc50] sm:$0xff] %v1246_v29  ;;  %1362 = vxpose.xlu2.b32.cont [6/16] %v440_v33, 128  ;;  %v490_v29 = vld [vmem:[%s3135_s15 + $0x9e8] sm:$0xff]  ;;  %v481_v33 = vld [vmem:[%s3135_s15 + $0x9a0] sm:$0xff] }
 0x2df   : > { %v1216_v34 = vpop.trf.xlu0 }
 0x2e0   : > { %2375 = vst [vmem:[%s3181_s16 + $0x8d0] sm:$0xff] %v1216_v34  ;;  %v1279_v34 = vpop.trf.xlu2 }
 0x2e1   : > { %2623 = vst [vmem:[%s3181_s16 + $0x1090] sm:$0xff] %v1279_v34  ;;  %1332 = vxpose.xlu1.b32.cont [8/16] %v449_v38, 128  ;;  %v422_v34 = vld [vmem:[%s3135_s15 + $0x7c8] sm:$0xff] }
 0x2e3   : > { %1301 = vxpose.xlu0.b32.cont [9/16] %v453_v35, 128  ;;  %v1247_v35 = vpop.trf.xlu1 }
 0x2e4   : > { %2495 = vst [vmem:[%s3181_s16 + $0xc90] sm:$0xff] %v1247_v35  ;;  %1363 = vxpose.xlu2.b32.cont [7/16] %v445_v39, 128  ;;  %v493_v35 = vld [vmem:[%s3135_s15 + $0xa00] sm:$0xff]  ;;  %v486_v39 = vld [vmem:[%s3135_s15 + $0x9c8] sm:$0xff] }
 0x2e7   : > { %v1217_v40 = vpop.trf.xlu0 }
 0x2e8   : > { %2383 = vst [vmem:[%s3181_s16 + $0x910] sm:$0xff] %v1217_v40  ;;  %v1280_v40 = vpop.trf.xlu2 }
 0x2e9   : > { %2631 = vst [vmem:[%s3181_s16 + $0x10d0] sm:$0xff] %v1280_v40  ;;  %1333 = vxpose.xlu1.b32.cont [9/16] %v454_v44, 128  ;;  %v427_v40 = vld [vmem:[%s3135_s15 + $0x7f0] sm:$0xff] }
 0x2eb   : > { %1302 = vxpose.xlu0.b32.cont [10/16] %v458_v41, 128  ;;  %v1248_v41 = vpop.trf.xlu1 }
 0x2ec   : > { %2503 = vst [vmem:[%s3181_s16 + $0xcd0] sm:$0xff] %v1248_v41  ;;  %1364 = vxpose.xlu2.b32.cont [8/16] %v450_v45, 128  ;;  %v498_v41 = vld [vmem:[%s3135_s15 + $0xa28] sm:$0xff]  ;;  %v491_v45 = vld [vmem:[%s3135_s15 + $0x9f0] sm:$0xff] }
 0x2ef   : > { %v1218_v46 = vpop.trf.xlu0 }
 0x2f0   : > { %2391 = vst [vmem:[%s3181_s16 + $0x950] sm:$0xff] %v1218_v46  ;;  %v1281_v46 = vpop.trf.xlu2 }
 0x2f1   : > { %2639 = vst [vmem:[%s3181_s16 + $0x1110] sm:$0xff] %v1281_v46  ;;  %1334 = vxpose.xlu1.b32.cont [10/16] %v459_v50, 128  ;;  %v432_v46 = vld [vmem:[%s3135_s15 + $0x818] sm:$0xff] }
 0x2f3   : > { %1303 = vxpose.xlu0.b32.cont [11/16] %v463_v47, 128  ;;  %v1249_v47 = vpop.trf.xlu1 }
 0x2f4   : > { %2511 = vst [vmem:[%s3181_s16 + $0xd10] sm:$0xff] %v1249_v47  ;;  %1365 = vxpose.xlu2.b32.cont [9/16] %v455_v51, 128  ;;  %v503_v47 = vld [vmem:[%s3135_s15 + $0xa50] sm:$0xff]  ;;  %v494_v51 = vld [vmem:[%s3135_s15 + $0xa08] sm:$0xff] }
 0x2f7   : > { %v1219_v52 = vpop.trf.xlu0 }
 0x2f8   : > { %2399 = vst [vmem:[%s3181_s16 + $0x990] sm:$0xff] %v1219_v52  ;;  %v1282_v52 = vpop.trf.xlu2 }
 0x2f9   : > { %2647 = vst [vmem:[%s3181_s16 + $0x1150] sm:$0xff] %v1282_v52  ;;  %1335 = vxpose.xlu1.b32.cont [11/16] %v464_v56, 128  ;;  %v437_v52 = vld [vmem:[%s3135_s15 + $0x840] sm:$0xff] }
 0x2fb   : > { %1304 = vxpose.xlu0.b32.cont [12/16] %v468_v53, 128  ;;  %v1250_v53 = vpop.trf.xlu1 }
 0x2fc   : > { %2519 = vst [vmem:[%s3181_s16 + $0xd50] sm:$0xff] %v1250_v53  ;;  %1366 = vxpose.xlu2.b32.cont [10/16] %v460_v57, 128  ;;  %v508_v53 = vld [vmem:[%s3135_s15 + $0xa78] sm:$0xff]  ;;  %v499_v57 = vld [vmem:[%s3135_s15 + $0xa30] sm:$0xff] }
 0x2ff   : > { %v1220_v58 = vpop.trf.xlu0 }
 0x300   : > { %2407 = vst [vmem:[%s3181_s16 + $0x9d0] sm:$0xff] %v1220_v58  ;;  %v1283_v58 = vpop.trf.xlu2 }
 0x301   : > { %2655 = vst [vmem:[%s3181_s16 + $0x1190] sm:$0xff] %v1283_v58  ;;  %1336 = vxpose.xlu1.b32.cont [12/16] %v469_v62, 128  ;;  %v442_v58 = vld [vmem:[%s3135_s15 + $0x868] sm:$0xff] }
 0x303   : > { %1305 = vxpose.xlu0.b32.cont [13/16] %v473_v59, 128  ;;  %v1251_v59 = vpop.trf.xlu1 }
 0x304   : > { %2527 = vst [vmem:[%s3181_s16 + $0xd90] sm:$0xff] %v1251_v59  ;;  %1367 = vxpose.xlu2.b32.cont [11/16] %v465_v63, 128  ;;  %v513_v59 = vld [vmem:[%s3135_s15 + $0xaa0] sm:$0xff]  ;;  %v504_v63 = vld [vmem:[%s3135_s15 + $0xa58] sm:$0xff] }
 0x307   : > { %v1221_v0 = vpop.trf.xlu0 }
 0x308   : > { %2415 = vst [vmem:[%s3181_s16 + $0xa10] sm:$0xff] %v1221_v0  ;;  %v1284_v0 = vpop.trf.xlu2 }
 0x309   : > { %2663 = vst [vmem:[%s3181_s16 + $0x11d0] sm:$0xff] %v1284_v0  ;;  %1337 = vxpose.xlu1.b32.cont [13/16] %v474_v4, 128  ;;  %v447_v0 = vld [vmem:[%s3135_s15 + $0x890] sm:$0xff] }
 0x30b   : > { %1306 = vxpose.xlu0.b32.cont [14/16] %v478_v1, 128  ;;  %v1252_v1 = vpop.trf.xlu1 }
 0x30c   : > { %2535 = vst [vmem:[%s3181_s16 + $0xdd0] sm:$0xff] %v1252_v1  ;;  %1368 = vxpose.xlu2.b32.cont [12/16] %v470_v5, 128  ;;  %v518_v1 = vld [vmem:[%s3135_s15 + $0xac8] sm:$0xff]  ;;  %v509_v5 = vld [vmem:[%s3135_s15 + $0xa80] sm:$0xff] }
 0x30f   : > { %v1222_v6 = vpop.trf.xlu0 }
 0x310   : > { %2423 = vst [vmem:[%s3181_s16 + $0xa50] sm:$0xff] %v1222_v6  ;;  %v1285_v6 = vpop.trf.xlu2 }
 0x311   : > { %2671 = vst [vmem:[%s3181_s16 + $0x1210] sm:$0xff] %v1285_v6  ;;  %1338 = vxpose.xlu1.b32.cont [14/16] %v479_v10, 128  ;;  %v452_v6 = vld [vmem:[%s3135_s15 + $0x8b8] sm:$0xff] }
 0x313   : > { %1307 = vxpose.xlu0.b32.cont [15/16] %v483_v7, 128  ;;  %v1253_v7 = vpop.trf.xlu1 }
 0x314   : > { %2543 = vst [vmem:[%s3181_s16 + $0xe10] sm:$0xff] %v1253_v7  ;;  %1369 = vxpose.xlu2.b32.cont [13/16] %v475_v11, 128  ;;  %v523_v7 = vld [vmem:[%s3135_s15 + $0xaf0] sm:$0xff]  ;;  %v514_v11 = vld [vmem:[%s3135_s15 + $0xaa8] sm:$0xff] }
 0x317   : > { %v1223_v12 = vpop.trf.xlu0 }
 0x318   : > { %2431 = vst [vmem:[%s3181_s16 + $0xa90] sm:$0xff] %v1223_v12  ;;  %v1286_v12 = vpop.trf.xlu2 }
 0x319   : > { %2679 = vst [vmem:[%s3181_s16 + $0x1250] sm:$0xff] %v1286_v12  ;;  %1339 = vxpose.xlu1.b32.cont [15/16] %v484_v16, 128  ;;  %v457_v12 = vld [vmem:[%s3135_s15 + $0x8e0] sm:$0xff] }
 0x31b   : > { %1308 = vxpose.xlu0.b32.end [16/16] %v488_v13, 128  ;;  %v1254_v13 = vpop.trf.xlu1 }
 0x31c   : > { %2551 = vst [vmem:[%s3181_s16 + $0xe50] sm:$0xff] %v1254_v13  ;;  %1370 = vxpose.xlu2.b32.cont [14/16] %v480_v17, 128  ;;  %v528_v13 = vld [vmem:[%s3135_s15 + $0xb18] sm:$0xff]  ;;  %v519_v17 = vld [vmem:[%s3135_s15 + $0xad0] sm:$0xff] }
 0x31f   : > { %v1224_v18 = vpop.trf.xlu0 }
 0x320   : > { %2439 = vst [vmem:[%s3181_s16 + $0xad0] sm:$0xff] %v1224_v18  ;;  %v1287_v18 = vpop.trf.xlu2 }
 0x321   : > { %2687 = vst [vmem:[%s3181_s16 + $0x1290] sm:$0xff] %v1287_v18  ;;  %1340 = vxpose.xlu1.b32.end [16/16] %v489_v22, 128  ;;  %v462_v18 = vld [vmem:[%s3135_s15 + $0x908] sm:$0xff] }
 0x323   : > { %1389 = vxpose.xlu0.b32.start [1/16] %v416_v19, 128  ;;  %v1255_v19 = vpop.trf.xlu1 }
 0x324   : > { %2559 = vst [vmem:[%s3181_s16 + $0xe90] sm:$0xff] %v1255_v19  ;;  %1371 = vxpose.xlu2.b32.cont [15/16] %v485_v23, 128  ;;  %v533_v19 = vld [vmem:[%s3135_s15 + $0xb40] sm:$0xff]  ;;  %v524_v23 = vld [vmem:[%s3135_s15 + $0xaf8] sm:$0xff] }
 0x327   : > { %v1225_v24 = vpop.trf.xlu0 }
 0x328   : > { %2447 = vst [vmem:[%s3181_s16 + $0xb10] sm:$0xff] %v1225_v24  ;;  %v1288_v24 = vpop.trf.xlu2 }
 0x329   : > { %2695 = vst [vmem:[%s3181_s16 + $0x12d0] sm:$0xff] %v1288_v24  ;;  %1421 = vxpose.xlu1.b32.start [1/16] %v417_v28, 128  ;;  %v467_v24 = vld [vmem:[%s3135_s15 + $0x930] sm:$0xff] }
 0x32b   : > { %1390 = vxpose.xlu0.b32.cont [2/16] %v421_v25, 128  ;;  %v1256_v25 = vpop.trf.xlu1 }
 0x32c   : > { %2567 = vst [vmem:[%s3181_s16 + $0xed0] sm:$0xff] %v1256_v25  ;;  %1372 = vxpose.xlu2.b32.end [16/16] %v490_v29, 128  ;;  %v538_v25 = vld [vmem:[%s3135_s15 + $0xb68] sm:$0xff]  ;;  %v529_v29 = vld [vmem:[%s3135_s15 + $0xb20] sm:$0xff] }
 0x32f   : > { %v1226_v30 = vpop.trf.xlu0 }
 0x330   : > { %2455 = vst [vmem:[%s3181_s16 + $0xb50] sm:$0xff] %v1226_v30  ;;  %v1289_v30 = vpop.trf.xlu2 }
 0x331   : > { %2703 = vst [vmem:[%s3181_s16 + $0x1310] sm:$0xff] %v1289_v30  ;;  %1422 = vxpose.xlu1.b32.cont [2/16] %v422_v34, 128  ;;  %v472_v30 = vld [vmem:[%s3135_s15 + $0x958] sm:$0xff] }
 0x333   : > { %1391 = vxpose.xlu0.b32.cont [3/16] %v426_v31, 128  ;;  %v1257_v31 = vpop.trf.xlu1 }
 0x334   : > { %2575 = vst [vmem:[%s3181_s16 + $0xf10] sm:$0xff] %v1257_v31  ;;  %1453 = vxpose.xlu2.b32.start [1/16] %v493_v35, 128  ;;  %v543_v31 = vld [vmem:[%s3135_s15 + $0xb90] sm:$0xff]  ;;  %v534_v35 = vld [vmem:[%s3135_s15 + $0xb48] sm:$0xff] }
 0x337   : > { %v1227_v36 = vpop.trf.xlu0 }
 0x338   : > { %2463 = vst [vmem:[%s3181_s16 + $0xb90] sm:$0xff] %v1227_v36  ;;  %v1290_v36 = vpop.trf.xlu2 }
 0x339   : > { %2711 = vst [vmem:[%s3181_s16 + $0x1350] sm:$0xff] %v1290_v36  ;;  %1423 = vxpose.xlu1.b32.cont [3/16] %v427_v40, 128  ;;  %v477_v36 = vld [vmem:[%s3135_s15 + $0x980] sm:$0xff] }
 0x33b   : > { %1392 = vxpose.xlu0.b32.cont [4/16] %v431_v37, 128  ;;  %v1258_v37 = vpop.trf.xlu1 }
 0x33c   : > { %2583 = vst [vmem:[%s3181_s16 + $0xf50] sm:$0xff] %v1258_v37  ;;  %1454 = vxpose.xlu2.b32.cont [2/16] %v498_v41, 128  ;;  %v548_v37 = vld [vmem:[%s3135_s15 + $0xbb8] sm:$0xff]  ;;  %v539_v41 = vld [vmem:[%s3135_s15 + $0xb70] sm:$0xff] }
 0x33f   : > { %v1228_v42 = vpop.trf.xlu0 }
 0x340   : > { %2471 = vst [vmem:[%s3181_s16 + $0xbd0] sm:$0xff] %v1228_v42  ;;  %v1291_v42 = vpop.trf.xlu2 }
 0x341   : > { %2719 = vst [vmem:[%s3181_s16 + $0x1390] sm:$0xff] %v1291_v42  ;;  %1424 = vxpose.xlu1.b32.cont [4/16] %v432_v46, 128  ;;  %v482_v42 = vld [vmem:[%s3135_s15 + $0x9a8] sm:$0xff] }
 0x343   : > { %1393 = vxpose.xlu0.b32.cont [5/16] %v436_v43, 128  ;;  %v1259_v43 = vpop.trf.xlu1 }
 0x344   : > { %2591 = vst [vmem:[%s3181_s16 + $0xf90] sm:$0xff] %v1259_v43  ;;  %1455 = vxpose.xlu2.b32.cont [3/16] %v503_v47, 128  ;;  %v553_v43 = vld [vmem:[%s3135_s15 + $0xbe0] sm:$0xff]  ;;  %v544_v47 = vld [vmem:[%s3135_s15 + $0xb98] sm:$0xff] }
 0x347   : > { %v1309_v48 = vpop.trf.xlu0 }
 0x348   : > { %2096 = vst [vmem:[%s3181_s16 + $0x18] sm:$0xff] %v1309_v48  ;;  %v1292_v48 = vpop.trf.xlu2 }
 0x349   : > { %2727 = vst [vmem:[%s3181_s16 + $0x13d0] sm:$0xff] %v1292_v48  ;;  %1425 = vxpose.xlu1.b32.cont [5/16] %v437_v52, 128  ;;  %v487_v48 = vld [vmem:[%s3135_s15 + $0x9d0] sm:$0xff] }
 0x34b   : > { %1394 = vxpose.xlu0.b32.cont [6/16] %v441_v49, 128  ;;  %v1260_v49 = vpop.trf.xlu1 }
 0x34c   : > { %2599 = vst [vmem:[%s3181_s16 + $0xfd0] sm:$0xff] %v1260_v49  ;;  %1456 = vxpose.xlu2.b32.cont [4/16] %v508_v53, 128  ;;  %v558_v49 = vld [vmem:[%s3135_s15 + $0xc08] sm:$0xff]  ;;  %v549_v53 = vld [vmem:[%s3135_s15 + $0xbc0] sm:$0xff] }
 0x34f   : > { %v1310_v54 = vpop.trf.xlu0 }
 0x350   : > { %2104 = vst [vmem:[%s3181_s16 + $0x58] sm:$0xff] %v1310_v54  ;;  %v1373_v54 = vpop.trf.xlu2 }
 0x351   : > { %2352 = vst [vmem:[%s3181_s16 + $0x818] sm:$0xff] %v1373_v54  ;;  %1426 = vxpose.xlu1.b32.cont [6/16] %v442_v58, 128  ;;  %v492_v54 = vld [vmem:[%s3135_s15 + $0x9f8] sm:$0xff] }
 0x353   : > { %1395 = vxpose.xlu0.b32.cont [7/16] %v446_v55, 128  ;;  %v1341_v55 = vpop.trf.xlu1 }
 0x354   : > { %2224 = vst [vmem:[%s3181_s16 + $0x418] sm:$0xff] %v1341_v55  ;;  %1457 = vxpose.xlu2.b32.cont [5/16] %v513_v59, 128  ;;  %v563_v55 = vld [vmem:[%s3135_s15 + $0xc30] sm:$0xff]  ;;  %v554_v59 = vld [vmem:[%s3135_s15 + $0xbe8] sm:$0xff] }
 0x357   : > { %v1311_v60 = vpop.trf.xlu0 }
 0x358   : > { %2112 = vst [vmem:[%s3181_s16 + $0x98] sm:$0xff] %v1311_v60  ;;  %v1374_v60 = vpop.trf.xlu2 }
 0x359   : > { %2360 = vst [vmem:[%s3181_s16 + $0x858] sm:$0xff] %v1374_v60  ;;  %1427 = vxpose.xlu1.b32.cont [7/16] %v447_v0, 128  ;;  %v495_v60 = vld [vmem:[%s3135_s15 + $0xa10] sm:$0xff] }
 0x35b   : > { %1396 = vxpose.xlu0.b32.cont [8/16] %v451_v61, 128  ;;  %v1342_v61 = vpop.trf.xlu1 }
 0x35c   : > { %2232 = vst [vmem:[%s3181_s16 + $0x458] sm:$0xff] %v1342_v61  ;;  %1458 = vxpose.xlu2.b32.cont [6/16] %v518_v1, 128  ;;  %v568_v61 = vld [vmem:[%s3135_s15 + $0xc58] sm:$0xff]  ;;  %v559_v1 = vld [vmem:[%s3135_s15 + $0xc10] sm:$0xff] }
 0x35f   : > { %v1312_v2 = vpop.trf.xlu0 }
 0x360   : > { %2120 = vst [vmem:[%s3181_s16 + $0xd8] sm:$0xff] %v1312_v2  ;;  %v1375_v2 = vpop.trf.xlu2 }
 0x361   : > { %2368 = vst [vmem:[%s3181_s16 + $0x898] sm:$0xff] %v1375_v2  ;;  %1428 = vxpose.xlu1.b32.cont [8/16] %v452_v6, 128  ;;  %v500_v2 = vld [vmem:[%s3135_s15 + $0xa38] sm:$0xff] }
 0x363   : > { %1397 = vxpose.xlu0.b32.cont [9/16] %v456_v3, 128  ;;  %v1343_v3 = vpop.trf.xlu1 }
 0x364   : > { %2240 = vst [vmem:[%s3181_s16 + $0x498] sm:$0xff] %v1343_v3  ;;  %1459 = vxpose.xlu2.b32.cont [7/16] %v523_v7, 128  ;;  %v496_v3 = vld [vmem:[%s3135_s15 + $0xa18] sm:$0xff] }
 0x365   : > { %v564_v7 = vld [vmem:[%s3135_s15 + $0xc38] sm:$0xff] }
 0x367   : > { %v1313_v8 = vpop.trf.xlu0 }
 0x368   : > { %2128 = vst [vmem:[%s3181_s16 + $0x118] sm:$0xff] %v1313_v8  ;;  %v1376_v8 = vpop.trf.xlu2 }
 0x369   : > { %2376 = vst [vmem:[%s3181_s16 + $0x8d8] sm:$0xff] %v1376_v8  ;;  %1429 = vxpose.xlu1.b32.cont [9/16] %v457_v12, 128  ;;  %v505_v8 = vld [vmem:[%s3135_s15 + $0xa60] sm:$0xff] }
 0x36b   : > { %1398 = vxpose.xlu0.b32.cont [10/16] %v461_v9, 128  ;;  %v1344_v9 = vpop.trf.xlu1 }
 0x36c   : > { %2248 = vst [vmem:[%s3181_s16 + $0x4d8] sm:$0xff] %v1344_v9  ;;  %1460 = vxpose.xlu2.b32.cont [8/16] %v528_v13, 128  ;;  %v501_v9 = vld [vmem:[%s3135_s15 + $0xa40] sm:$0xff] }
 0x36d   : > { %v569_v13 = vld [vmem:[%s3135_s15 + $0xc60] sm:$0xff] }
 0x36f   : > { %v1314_v14 = vpop.trf.xlu0 }
 0x370   : > { %2136 = vst [vmem:[%s3181_s16 + $0x158] sm:$0xff] %v1314_v14  ;;  %v1377_v14 = vpop.trf.xlu2 }
 0x371   : > { %2384 = vst [vmem:[%s3181_s16 + $0x918] sm:$0xff] %v1377_v14  ;;  %1430 = vxpose.xlu1.b32.cont [10/16] %v462_v18, 128  ;;  %v510_v14 = vld [vmem:[%s3135_s15 + $0xa88] sm:$0xff] }
 0x373   : > { %1399 = vxpose.xlu0.b32.cont [11/16] %v466_v15, 128  ;;  %v1345_v15 = vpop.trf.xlu1 }
 0x374   : > { %2256 = vst [vmem:[%s3181_s16 + $0x518] sm:$0xff] %v1345_v15  ;;  %1461 = vxpose.xlu2.b32.cont [9/16] %v533_v19, 128  ;;  %v506_v15 = vld [vmem:[%s3135_s15 + $0xa68] sm:$0xff]  ;;  %v497_v19 = vld [vmem:[%s3135_s15 + $0xa20] sm:$0xff] }
 0x377   : > { %v1315_v20 = vpop.trf.xlu0 }
 0x378   : > { %2144 = vst [vmem:[%s3181_s16 + $0x198] sm:$0xff] %v1315_v20  ;;  %v1378_v20 = vpop.trf.xlu2 }
 0x379   : > { %2392 = vst [vmem:[%s3181_s16 + $0x958] sm:$0xff] %v1378_v20  ;;  %1431 = vxpose.xlu1.b32.cont [11/16] %v467_v24, 128  ;;  %v515_v20 = vld [vmem:[%s3135_s15 + $0xab0] sm:$0xff] }
 0x37b   : > { %1400 = vxpose.xlu0.b32.cont [12/16] %v471_v21, 128  ;;  %v1346_v21 = vpop.trf.xlu1 }
 0x37c   : > { %2264 = vst [vmem:[%s3181_s16 + $0x558] sm:$0xff] %v1346_v21  ;;  %1462 = vxpose.xlu2.b32.cont [10/16] %v538_v25, 128  ;;  %v511_v21 = vld [vmem:[%s3135_s15 + $0xa90] sm:$0xff]  ;;  %v502_v25 = vld [vmem:[%s3135_s15 + $0xa48] sm:$0xff] }
 0x37f   : > { %v1316_v26 = vpop.trf.xlu0 }
 0x380   : > { %2152 = vst [vmem:[%s3181_s16 + $0x1d8] sm:$0xff] %v1316_v26  ;;  %v1379_v26 = vpop.trf.xlu2 }
 0x381   : > { %2400 = vst [vmem:[%s3181_s16 + $0x998] sm:$0xff] %v1379_v26  ;;  %1432 = vxpose.xlu1.b32.cont [12/16] %v472_v30, 128  ;;  %v520_v26 = vld [vmem:[%s3135_s15 + $0xad8] sm:$0xff] }
 0x383   : > { %1401 = vxpose.xlu0.b32.cont [13/16] %v476_v27, 128  ;;  %v1347_v27 = vpop.trf.xlu1 }
 0x384   : > { %2272 = vst [vmem:[%s3181_s16 + $0x598] sm:$0xff] %v1347_v27  ;;  %1463 = vxpose.xlu2.b32.cont [11/16] %v543_v31, 128  ;;  %v516_v27 = vld [vmem:[%s3135_s15 + $0xab8] sm:$0xff]  ;;  %v507_v31 = vld [vmem:[%s3135_s15 + $0xa70] sm:$0xff] }
 0x387   : > { %v1317_v32 = vpop.trf.xlu0 }
 0x388   : > { %2160 = vst [vmem:[%s3181_s16 + $0x218] sm:$0xff] %v1317_v32  ;;  %v1380_v32 = vpop.trf.xlu2 }
 0x389   : > { %2408 = vst [vmem:[%s3181_s16 + $0x9d8] sm:$0xff] %v1380_v32  ;;  %1433 = vxpose.xlu1.b32.cont [13/16] %v477_v36, 128  ;;  %v525_v32 = vld [vmem:[%s3135_s15 + $0xb00] sm:$0xff] }
 0x38b   : > { %1402 = vxpose.xlu0.b32.cont [14/16] %v481_v33, 128  ;;  %v1348_v33 = vpop.trf.xlu1 }
 0x38c   : > { %2280 = vst [vmem:[%s3181_s16 + $0x5d8] sm:$0xff] %v1348_v33  ;;  %1464 = vxpose.xlu2.b32.cont [12/16] %v548_v37, 128  ;;  %v521_v33 = vld [vmem:[%s3135_s15 + $0xae0] sm:$0xff]  ;;  %v512_v37 = vld [vmem:[%s3135_s15 + $0xa98] sm:$0xff] }
 0x38f   : > { %v1318_v38 = vpop.trf.xlu0 }
 0x390   : > { %2168 = vst [vmem:[%s3181_s16 + $0x258] sm:$0xff] %v1318_v38  ;;  %v1381_v38 = vpop.trf.xlu2 }
 0x391   : > { %2416 = vst [vmem:[%s3181_s16 + $0xa18] sm:$0xff] %v1381_v38  ;;  %1434 = vxpose.xlu1.b32.cont [14/16] %v482_v42, 128  ;;  %v530_v38 = vld [vmem:[%s3135_s15 + $0xb28] sm:$0xff] }
 0x393   : > { %1403 = vxpose.xlu0.b32.cont [15/16] %v486_v39, 128  ;;  %v1349_v39 = vpop.trf.xlu1 }
 0x394   : > { %2288 = vst [vmem:[%s3181_s16 + $0x618] sm:$0xff] %v1349_v39  ;;  %1465 = vxpose.xlu2.b32.cont [13/16] %v553_v43, 128  ;;  %v526_v39 = vld [vmem:[%s3135_s15 + $0xb08] sm:$0xff]  ;;  %v517_v43 = vld [vmem:[%s3135_s15 + $0xac0] sm:$0xff] }
 0x397   : > { %v1319_v44 = vpop.trf.xlu0 }
 0x398   : > { %2176 = vst [vmem:[%s3181_s16 + $0x298] sm:$0xff] %v1319_v44  ;;  %v1382_v44 = vpop.trf.xlu2 }
 0x399   : > { %2424 = vst [vmem:[%s3181_s16 + $0xa58] sm:$0xff] %v1382_v44  ;;  %1435 = vxpose.xlu1.b32.cont [15/16] %v487_v48, 128  ;;  %v535_v44 = vld [vmem:[%s3135_s15 + $0xb50] sm:$0xff] }
 0x39b   : > { %1404 = vxpose.xlu0.b32.end [16/16] %v491_v45, 128  ;;  %v1350_v45 = vpop.trf.xlu1 }
 0x39c   : > { %2296 = vst [vmem:[%s3181_s16 + $0x658] sm:$0xff] %v1350_v45  ;;  %1466 = vxpose.xlu2.b32.cont [14/16] %v558_v49, 128  ;;  %v531_v45 = vld [vmem:[%s3135_s15 + $0xb30] sm:$0xff]  ;;  %v522_v49 = vld [vmem:[%s3135_s15 + $0xae8] sm:$0xff] }
 0x39f   : > { %v1320_v50 = vpop.trf.xlu0 }
 0x3a0   : > { %2184 = vst [vmem:[%s3181_s16 + $0x2d8] sm:$0xff] %v1320_v50  ;;  %v1383_v50 = vpop.trf.xlu2 }
 0x3a1   : > { %2432 = vst [vmem:[%s3181_s16 + $0xa98] sm:$0xff] %v1383_v50  ;;  %1436 = vxpose.xlu1.b32.end [16/16] %v492_v54, 128  ;;  %v540_v50 = vld [vmem:[%s3135_s15 + $0xb78] sm:$0xff] }
 0x3a3   : > { %1485 = vxpose.xlu0.b32.start [1/16] %v494_v51, 128  ;;  %v1351_v51 = vpop.trf.xlu1 }
 0x3a4   : > { %2304 = vst [vmem:[%s3181_s16 + $0x698] sm:$0xff] %v1351_v51  ;;  %1467 = vxpose.xlu2.b32.cont [15/16] %v563_v55, 128  ;;  %v536_v51 = vld [vmem:[%s3135_s15 + $0xb58] sm:$0xff]  ;;  %v527_v55 = vld [vmem:[%s3135_s15 + $0xb10] sm:$0xff] }
 0x3a7   : > { %v1321_v56 = vpop.trf.xlu0 }
 0x3a8   : > { %2192 = vst [vmem:[%s3181_s16 + $0x318] sm:$0xff] %v1321_v56  ;;  %v1384_v56 = vpop.trf.xlu2 }
 0x3a9   : > { %2440 = vst [vmem:[%s3181_s16 + $0xad8] sm:$0xff] %v1384_v56  ;;  %1517 = vxpose.xlu1.b32.start [1/16] %v495_v60, 128  ;;  %v545_v56 = vld [vmem:[%s3135_s15 + $0xba0] sm:$0xff] }
 0x3ab   : > { %1486 = vxpose.xlu0.b32.cont [2/16] %v499_v57, 128  ;;  %v1352_v57 = vpop.trf.xlu1 }
 0x3ac   : > { %2312 = vst [vmem:[%s3181_s16 + $0x6d8] sm:$0xff] %v1352_v57  ;;  %1468 = vxpose.xlu2.b32.end [16/16] %v568_v61, 128  ;;  %v541_v57 = vld [vmem:[%s3135_s15 + $0xb80] sm:$0xff]  ;;  %v532_v61 = vld [vmem:[%s3135_s15 + $0xb38] sm:$0xff] }
 0x3af   : > { %v1322_v62 = vpop.trf.xlu0 }
 0x3b0   : > { %2200 = vst [vmem:[%s3181_s16 + $0x358] sm:$0xff] %v1322_v62  ;;  %v1385_v62 = vpop.trf.xlu2 }
 0x3b1   : > { %2448 = vst [vmem:[%s3181_s16 + $0xb18] sm:$0xff] %v1385_v62  ;;  %1518 = vxpose.xlu1.b32.cont [2/16] %v500_v2, 128  ;;  %v550_v62 = vld [vmem:[%s3135_s15 + $0xbc8] sm:$0xff] }
 0x3b3   : > { %1487 = vxpose.xlu0.b32.cont [3/16] %v504_v63, 128  ;;  %v1353_v63 = vpop.trf.xlu1 }
 0x3b4   : > { %2320 = vst [vmem:[%s3181_s16 + $0x718] sm:$0xff] %v1353_v63  ;;  %1549 = vxpose.xlu2.b32.start [1/16] %v496_v3, 128  ;;  %v546_v63 = vld [vmem:[%s3135_s15 + $0xba8] sm:$0xff]  ;;  %v537_v3 = vld [vmem:[%s3135_s15 + $0xb60] sm:$0xff] }
 0x3b7   : > { %v1323_v4 = vpop.trf.xlu0 }
 0x3b8   : > { %2208 = vst [vmem:[%s3181_s16 + $0x398] sm:$0xff] %v1323_v4  ;;  %v1386_v4 = vpop.trf.xlu2 }
 0x3b9   : > { %2456 = vst [vmem:[%s3181_s16 + $0xb58] sm:$0xff] %v1386_v4  ;;  %1519 = vxpose.xlu1.b32.cont [3/16] %v505_v8, 128  ;;  %v555_v4 = vld [vmem:[%s3135_s15 + $0xbf0] sm:$0xff] }
 0x3bb   : > { %1488 = vxpose.xlu0.b32.cont [4/16] %v509_v5, 128  ;;  %v1354_v5 = vpop.trf.xlu1 }
 0x3bc   : > { %2328 = vst [vmem:[%s3181_s16 + $0x758] sm:$0xff] %v1354_v5  ;;  %1550 = vxpose.xlu2.b32.cont [2/16] %v501_v9, 128  ;;  %v551_v5 = vld [vmem:[%s3135_s15 + $0xbd0] sm:$0xff]  ;;  %v542_v9 = vld [vmem:[%s3135_s15 + $0xb88] sm:$0xff] }
 0x3bf   : > { %v1324_v10 = vpop.trf.xlu0 }
 0x3c0   : > { %2216 = vst [vmem:[%s3181_s16 + $0x3d8] sm:$0xff] %v1324_v10  ;;  %v1387_v10 = vpop.trf.xlu2 }
 0x3c1   : > { %2464 = vst [vmem:[%s3181_s16 + $0xb98] sm:$0xff] %v1387_v10  ;;  %1520 = vxpose.xlu1.b32.cont [4/16] %v510_v14, 128  ;;  %v560_v10 = vld [vmem:[%s3135_s15 + $0xc18] sm:$0xff] }
 0x3c3   : > { %1489 = vxpose.xlu0.b32.cont [5/16] %v514_v11, 128  ;;  %v1355_v11 = vpop.trf.xlu1 }
 0x3c4   : > { %2336 = vst [vmem:[%s3181_s16 + $0x798] sm:$0xff] %v1355_v11  ;;  %1551 = vxpose.xlu2.b32.cont [3/16] %v506_v15, 128  ;;  %v556_v11 = vld [vmem:[%s3135_s15 + $0xbf8] sm:$0xff]  ;;  %v547_v15 = vld [vmem:[%s3135_s15 + $0xbb0] sm:$0xff] }
 0x3c7   : > { %v1405_v16 = vpop.trf.xlu0 }
 0x3c8   : > { %2480 = vst [vmem:[%s3181_s16 + $0xc18] sm:$0xff] %v1405_v16  ;;  %v1388_v16 = vpop.trf.xlu2 }
 0x3c9   : > { %2472 = vst [vmem:[%s3181_s16 + $0xbd8] sm:$0xff] %v1388_v16  ;;  %1521 = vxpose.xlu1.b32.cont [5/16] %v515_v20, 128  ;;  %v565_v16 = vld [vmem:[%s3135_s15 + $0xc40] sm:$0xff] }
 0x3cb   : > { %1490 = vxpose.xlu0.b32.cont [6/16] %v519_v17, 128  ;;  %v1356_v17 = vpop.trf.xlu1 }
 0x3cc   : > { %2344 = vst [vmem:[%s3181_s16 + $0x7d8] sm:$0xff] %v1356_v17  ;;  %1552 = vxpose.xlu2.b32.cont [4/16] %v511_v21, 128  ;;  %v561_v17 = vld [vmem:[%s3135_s15 + $0xc20] sm:$0xff]  ;;  %v552_v21 = vld [vmem:[%s3135_s15 + $0xbd8] sm:$0xff] }
 0x3cf   : > { %v1406_v22 = vpop.trf.xlu0 }
 0x3d0   : > { %2488 = vst [vmem:[%s3181_s16 + $0xc58] sm:$0xff] %v1406_v22  ;;  %v1469_v22 = vpop.trf.xlu2 }
 0x3d1   : > { %2097 = vst [vmem:[%s3181_s16 + $0x20] sm:$0xff] %v1469_v22  ;;  %1522 = vxpose.xlu1.b32.cont [6/16] %v520_v26, 128  ;;  %v570_v22 = vld [vmem:[%s3135_s15 + $0xc68] sm:$0xff] }
 0x3d3   : > { %1491 = vxpose.xlu0.b32.cont [7/16] %v524_v23, 128  ;;  %v1437_v23 = vpop.trf.xlu1 }
 0x3d4   : > { %2608 = vst [vmem:[%s3181_s16 + $0x1018] sm:$0xff] %v1437_v23  ;;  %1553 = vxpose.xlu2.b32.cont [5/16] %v516_v27, 128  ;;  %v566_v23 = vld [vmem:[%s3135_s15 + $0xc48] sm:$0xff]  ;;  %v557_v27 = vld [vmem:[%s3135_s15 + $0xc00] sm:$0xff] }
 0x3d7   : > { %v1407_v28 = vpop.trf.xlu0 }
 0x3d8   : > { %2496 = vst [vmem:[%s3181_s16 + $0xc98] sm:$0xff] %v1407_v28  ;;  %v1470_v28 = vpop.trf.xlu2 }
 0x3d9   : > { %2105 = vst [vmem:[%s3181_s16 + $0x60] sm:$0xff] %v1470_v28  ;;  %1523 = vxpose.xlu1.b32.cont [7/16] %v525_v32, 128  ;;  %v573_v28 = vld [vmem:[%s3135_s15 + $0xc80] sm:$0xff] }
 0x3db   : > { %1492 = vxpose.xlu0.b32.cont [8/16] %v529_v29, 128  ;;  %v1438_v29 = vpop.trf.xlu1 }
 0x3dc   : > { %2616 = vst [vmem:[%s3181_s16 + $0x1058] sm:$0xff] %v1438_v29  ;;  %1554 = vxpose.xlu2.b32.cont [6/16] %v521_v33, 128  ;;  %v571_v29 = vld [vmem:[%s3135_s15 + $0xc70] sm:$0xff]  ;;  %v562_v33 = vld [vmem:[%s3135_s15 + $0xc28] sm:$0xff] }
 0x3df   : > { %v1408_v34 = vpop.trf.xlu0 }
 0x3e0   : > { %2504 = vst [vmem:[%s3181_s16 + $0xcd8] sm:$0xff] %v1408_v34  ;;  %v1471_v34 = vpop.trf.xlu2 }
 0x3e1   : > { %2113 = vst [vmem:[%s3181_s16 + $0xa0] sm:$0xff] %v1471_v34  ;;  %1524 = vxpose.xlu1.b32.cont [8/16] %v530_v38, 128  ;;  %v578_v34 = vld [vmem:[%s3135_s15 + $0xca8] sm:$0xff] }
 0x3e3   : > { %1493 = vxpose.xlu0.b32.cont [9/16] %v534_v35, 128  ;;  %v1439_v35 = vpop.trf.xlu1 }
 0x3e4   : > { %2624 = vst [vmem:[%s3181_s16 + $0x1098] sm:$0xff] %v1439_v35  ;;  %1555 = vxpose.xlu2.b32.cont [7/16] %v526_v39, 128  ;;  %v574_v35 = vld [vmem:[%s3135_s15 + $0xc88] sm:$0xff]  ;;  %v567_v39 = vld [vmem:[%s3135_s15 + $0xc50] sm:$0xff] }
 0x3e7   : > { %v1409_v40 = vpop.trf.xlu0 }
 0x3e8   : > { %2512 = vst [vmem:[%s3181_s16 + $0xd18] sm:$0xff] %v1409_v40  ;;  %v1472_v40 = vpop.trf.xlu2 }
 0x3e9   : > { %2121 = vst [vmem:[%s3181_s16 + $0xe0] sm:$0xff] %v1472_v40  ;;  %1525 = vxpose.xlu1.b32.cont [9/16] %v535_v44, 128  ;;  %v583_v40 = vld [vmem:[%s3135_s15 + $0xcd0] sm:$0xff] }
 0x3eb   : > { %1494 = vxpose.xlu0.b32.cont [10/16] %v539_v41, 128  ;;  %v1440_v41 = vpop.trf.xlu1 }
 0x3ec   : > { %2632 = vst [vmem:[%s3181_s16 + $0x10d8] sm:$0xff] %v1440_v41  ;;  %1556 = vxpose.xlu2.b32.cont [8/16] %v531_v45, 128  ;;  %v579_v41 = vld [vmem:[%s3135_s15 + $0xcb0] sm:$0xff]  ;;  %v572_v45 = vld [vmem:[%s3135_s15 + $0xc78] sm:$0xff] }
 0x3ef   : > { %v1410_v46 = vpop.trf.xlu0 }
 0x3f0   : > { %2520 = vst [vmem:[%s3181_s16 + $0xd58] sm:$0xff] %v1410_v46  ;;  %v1473_v46 = vpop.trf.xlu2 }
 0x3f1   : > { %2129 = vst [vmem:[%s3181_s16 + $0x120] sm:$0xff] %v1473_v46  ;;  %1526 = vxpose.xlu1.b32.cont [10/16] %v540_v50, 128  ;;  %v588_v46 = vld [vmem:[%s3135_s15 + $0xcf8] sm:$0xff] }
 0x3f3   : > { %1495 = vxpose.xlu0.b32.cont [11/16] %v544_v47, 128  ;;  %v1441_v47 = vpop.trf.xlu1 }
 0x3f4   : > { %2640 = vst [vmem:[%s3181_s16 + $0x1118] sm:$0xff] %v1441_v47  ;;  %1557 = vxpose.xlu2.b32.cont [9/16] %v536_v51, 128  ;;  %v584_v47 = vld [vmem:[%s3135_s15 + $0xcd8] sm:$0xff]  ;;  %v575_v51 = vld [vmem:[%s3135_s15 + $0xc90] sm:$0xff] }
 0x3f7   : > { %v1411_v52 = vpop.trf.xlu0 }
 0x3f8   : > { %2528 = vst [vmem:[%s3181_s16 + $0xd98] sm:$0xff] %v1411_v52  ;;  %v1474_v52 = vpop.trf.xlu2 }
 0x3f9   : > { %2137 = vst [vmem:[%s3181_s16 + $0x160] sm:$0xff] %v1474_v52  ;;  %1527 = vxpose.xlu1.b32.cont [11/16] %v545_v56, 128  ;;  %v593_v52 = vld [vmem:[%s3135_s15 + $0xd20] sm:$0xff] }
 0x3fb   : > { %1496 = vxpose.xlu0.b32.cont [12/16] %v549_v53, 128  ;;  %v1442_v53 = vpop.trf.xlu1 }
 0x3fc   : > { %2648 = vst [vmem:[%s3181_s16 + $0x1158] sm:$0xff] %v1442_v53  ;;  %1558 = vxpose.xlu2.b32.cont [10/16] %v541_v57, 128  ;;  %v589_v53 = vld [vmem:[%s3135_s15 + $0xd00] sm:$0xff]  ;;  %v580_v57 = vld [vmem:[%s3135_s15 + $0xcb8] sm:$0xff] }
 0x3ff   : > { %v1412_v58 = vpop.trf.xlu0 }
 0x400   : > { %2536 = vst [vmem:[%s3181_s16 + $0xdd8] sm:$0xff] %v1412_v58  ;;  %v1475_v58 = vpop.trf.xlu2 }
 0x401   : > { %2145 = vst [vmem:[%s3181_s16 + $0x1a0] sm:$0xff] %v1475_v58  ;;  %1528 = vxpose.xlu1.b32.cont [12/16] %v550_v62, 128  ;;  %v598_v58 = vld [vmem:[%s3135_s15 + $0xd48] sm:$0xff] }
 0x403   : > { %1497 = vxpose.xlu0.b32.cont [13/16] %v554_v59, 128  ;;  %v1443_v59 = vpop.trf.xlu1 }
 0x404   : > { %2656 = vst [vmem:[%s3181_s16 + $0x1198] sm:$0xff] %v1443_v59  ;;  %1559 = vxpose.xlu2.b32.cont [11/16] %v546_v63, 128  ;;  %v594_v59 = vld [vmem:[%s3135_s15 + $0xd28] sm:$0xff]  ;;  %v585_v63 = vld [vmem:[%s3135_s15 + $0xce0] sm:$0xff] }
 0x407   : > { %v1413_v0 = vpop.trf.xlu0 }
 0x408   : > { %2544 = vst [vmem:[%s3181_s16 + $0xe18] sm:$0xff] %v1413_v0  ;;  %v1476_v0 = vpop.trf.xlu2 }
 0x409   : > { %2153 = vst [vmem:[%s3181_s16 + $0x1e0] sm:$0xff] %v1476_v0  ;;  %1529 = vxpose.xlu1.b32.cont [13/16] %v555_v4, 128  ;;  %v603_v0 = vld [vmem:[%s3135_s15 + $0xd70] sm:$0xff] }
 0x40b   : > { %1498 = vxpose.xlu0.b32.cont [14/16] %v559_v1, 128  ;;  %v1444_v1 = vpop.trf.xlu1 }
 0x40c   : > { %2664 = vst [vmem:[%s3181_s16 + $0x11d8] sm:$0xff] %v1444_v1  ;;  %1560 = vxpose.xlu2.b32.cont [12/16] %v551_v5, 128  ;;  %v599_v1 = vld [vmem:[%s3135_s15 + $0xd50] sm:$0xff]  ;;  %v590_v5 = vld [vmem:[%s3135_s15 + $0xd08] sm:$0xff] }
 0x40f   : > { %v1414_v6 = vpop.trf.xlu0 }
 0x410   : > { %2552 = vst [vmem:[%s3181_s16 + $0xe58] sm:$0xff] %v1414_v6  ;;  %v1477_v6 = vpop.trf.xlu2 }
 0x411   : > { %2161 = vst [vmem:[%s3181_s16 + $0x220] sm:$0xff] %v1477_v6  ;;  %1530 = vxpose.xlu1.b32.cont [14/16] %v560_v10, 128  ;;  %v608_v6 = vld [vmem:[%s3135_s15 + $0xd98] sm:$0xff] }
 0x413   : > { %1499 = vxpose.xlu0.b32.cont [15/16] %v564_v7, 128  ;;  %v1445_v7 = vpop.trf.xlu1 }
 0x414   : > { %2672 = vst [vmem:[%s3181_s16 + $0x1218] sm:$0xff] %v1445_v7  ;;  %1561 = vxpose.xlu2.b32.cont [13/16] %v556_v11, 128  ;;  %v604_v7 = vld [vmem:[%s3135_s15 + $0xd78] sm:$0xff]  ;;  %v595_v11 = vld [vmem:[%s3135_s15 + $0xd30] sm:$0xff] }
 0x417   : > { %v1415_v12 = vpop.trf.xlu0 }
 0x418   : > { %2560 = vst [vmem:[%s3181_s16 + $0xe98] sm:$0xff] %v1415_v12  ;;  %v1478_v12 = vpop.trf.xlu2 }
 0x419   : > { %2169 = vst [vmem:[%s3181_s16 + $0x260] sm:$0xff] %v1478_v12  ;;  %1531 = vxpose.xlu1.b32.cont [15/16] %v565_v16, 128  ;;  %v613_v12 = vld [vmem:[%s3135_s15 + $0xdc0] sm:$0xff] }
 0x41b   : > { %1500 = vxpose.xlu0.b32.end [16/16] %v569_v13, 128  ;;  %v1446_v13 = vpop.trf.xlu1 }
 0x41c   : > { %2680 = vst [vmem:[%s3181_s16 + $0x1258] sm:$0xff] %v1446_v13  ;;  %1562 = vxpose.xlu2.b32.cont [14/16] %v561_v17, 128  ;;  %v609_v13 = vld [vmem:[%s3135_s15 + $0xda0] sm:$0xff]  ;;  %v600_v17 = vld [vmem:[%s3135_s15 + $0xd58] sm:$0xff] }
 0x41f   : > { %v1416_v18 = vpop.trf.xlu0 }
 0x420   : > { %2568 = vst [vmem:[%s3181_s16 + $0xed8] sm:$0xff] %v1416_v18  ;;  %v1479_v18 = vpop.trf.xlu2 }
 0x421   : > { %2177 = vst [vmem:[%s3181_s16 + $0x2a0] sm:$0xff] %v1479_v18  ;;  %1532 = vxpose.xlu1.b32.end [16/16] %v570_v22, 128  ;;  %v618_v18 = vld [vmem:[%s3135_s15 + $0xde8] sm:$0xff] }
 0x423   : > { %1581 = vxpose.xlu0.b32.start [1/16] %v497_v19, 128  ;;  %v1447_v19 = vpop.trf.xlu1 }
 0x424   : > { %2688 = vst [vmem:[%s3181_s16 + $0x1298] sm:$0xff] %v1447_v19  ;;  %1563 = vxpose.xlu2.b32.cont [15/16] %v566_v23, 128  ;;  %v614_v19 = vld [vmem:[%s3135_s15 + $0xdc8] sm:$0xff]  ;;  %v605_v23 = vld [vmem:[%s3135_s15 + $0xd80] sm:$0xff] }
 0x427   : > { %v1417_v24 = vpop.trf.xlu0 }
 0x428   : > { %2576 = vst [vmem:[%s3181_s16 + $0xf18] sm:$0xff] %v1417_v24  ;;  %v1480_v24 = vpop.trf.xlu2 }
 0x429   : > { %2185 = vst [vmem:[%s3181_s16 + $0x2e0] sm:$0xff] %v1480_v24  ;;  %1613 = vxpose.xlu1.b32.start [1/16] %v573_v28, 128  ;;  %v623_v24 = vld [vmem:[%s3135_s15 + $0xe10] sm:$0xff] }
 0x42b   : > { %1582 = vxpose.xlu0.b32.cont [2/16] %v502_v25, 128  ;;  %v1448_v25 = vpop.trf.xlu1 }
 0x42c   : > { %2696 = vst [vmem:[%s3181_s16 + $0x12d8] sm:$0xff] %v1448_v25  ;;  %1564 = vxpose.xlu2.b32.end [16/16] %v571_v29, 128  ;;  %v619_v25 = vld [vmem:[%s3135_s15 + $0xdf0] sm:$0xff]  ;;  %v610_v29 = vld [vmem:[%s3135_s15 + $0xda8] sm:$0xff] }
 0x42f   : > { %v1418_v30 = vpop.trf.xlu0 }
 0x430   : > { %2584 = vst [vmem:[%s3181_s16 + $0xf58] sm:$0xff] %v1418_v30  ;;  %v1481_v30 = vpop.trf.xlu2 }
 0x431   : > { %2193 = vst [vmem:[%s3181_s16 + $0x320] sm:$0xff] %v1481_v30  ;;  %1614 = vxpose.xlu1.b32.cont [2/16] %v578_v34, 128  ;;  %v628_v30 = vld [vmem:[%s3135_s15 + $0xe38] sm:$0xff] }
 0x433   : > { %1583 = vxpose.xlu0.b32.cont [3/16] %v507_v31, 128  ;;  %v1449_v31 = vpop.trf.xlu1 }
 0x434   : > { %2704 = vst [vmem:[%s3181_s16 + $0x1318] sm:$0xff] %v1449_v31  ;;  %1645 = vxpose.xlu2.b32.start [1/16] %v574_v35, 128  ;;  %v624_v31 = vld [vmem:[%s3135_s15 + $0xe18] sm:$0xff]  ;;  %v615_v35 = vld [vmem:[%s3135_s15 + $0xdd0] sm:$0xff] }
 0x437   : > { %v1419_v36 = vpop.trf.xlu0 }
 0x438   : > { %2592 = vst [vmem:[%s3181_s16 + $0xf98] sm:$0xff] %v1419_v36  ;;  %v1482_v36 = vpop.trf.xlu2 }
 0x439   : > { %2201 = vst [vmem:[%s3181_s16 + $0x360] sm:$0xff] %v1482_v36  ;;  %1615 = vxpose.xlu1.b32.cont [3/16] %v583_v40, 128  ;;  %v633_v36 = vld [vmem:[%s3135_s15 + $0xe60] sm:$0xff] }
 0x43b   : > { %1584 = vxpose.xlu0.b32.cont [4/16] %v512_v37, 128  ;;  %v1450_v37 = vpop.trf.xlu1 }
 0x43c   : > { %2712 = vst [vmem:[%s3181_s16 + $0x1358] sm:$0xff] %v1450_v37  ;;  %1646 = vxpose.xlu2.b32.cont [2/16] %v579_v41, 128  ;;  %v629_v37 = vld [vmem:[%s3135_s15 + $0xe40] sm:$0xff]  ;;  %v620_v41 = vld [vmem:[%s3135_s15 + $0xdf8] sm:$0xff] }
 0x43f   : > { %v1420_v42 = vpop.trf.xlu0 }
 0x440   : > { %2600 = vst [vmem:[%s3181_s16 + $0xfd8] sm:$0xff] %v1420_v42  ;;  %v1483_v42 = vpop.trf.xlu2 }
 0x441   : > { %2209 = vst [vmem:[%s3181_s16 + $0x3a0] sm:$0xff] %v1483_v42  ;;  %1616 = vxpose.xlu1.b32.cont [4/16] %v588_v46, 128  ;;  %v638_v42 = vld [vmem:[%s3135_s15 + $0xe88] sm:$0xff] }
 0x443   : > { %1585 = vxpose.xlu0.b32.cont [5/16] %v517_v43, 128  ;;  %v1451_v43 = vpop.trf.xlu1 }
 0x444   : > { %2720 = vst [vmem:[%s3181_s16 + $0x1398] sm:$0xff] %v1451_v43  ;;  %1647 = vxpose.xlu2.b32.cont [3/16] %v584_v47, 128  ;;  %v634_v43 = vld [vmem:[%s3135_s15 + $0xe68] sm:$0xff]  ;;  %v625_v47 = vld [vmem:[%s3135_s15 + $0xe20] sm:$0xff] }
 0x447   : > { %v1501_v48 = vpop.trf.xlu0 }
 0x448   : > { %2225 = vst [vmem:[%s3181_s16 + $0x420] sm:$0xff] %v1501_v48  ;;  %v1484_v48 = vpop.trf.xlu2 }
 0x449   : > { %2217 = vst [vmem:[%s3181_s16 + $0x3e0] sm:$0xff] %v1484_v48  ;;  %1617 = vxpose.xlu1.b32.cont [5/16] %v593_v52, 128  ;;  %v643_v48 = vld [vmem:[%s3135_s15 + $0xeb0] sm:$0xff] }
 0x44b   : > { %1586 = vxpose.xlu0.b32.cont [6/16] %v522_v49, 128  ;;  %v1452_v49 = vpop.trf.xlu1 }
 0x44c   : > { %2728 = vst [vmem:[%s3181_s16 + $0x13d8] sm:$0xff] %v1452_v49  ;;  %1648 = vxpose.xlu2.b32.cont [4/16] %v589_v53, 128  ;;  %v639_v49 = vld [vmem:[%s3135_s15 + $0xe90] sm:$0xff]  ;;  %v630_v53 = vld [vmem:[%s3135_s15 + $0xe48] sm:$0xff] }
 0x44f   : > { %v1502_v54 = vpop.trf.xlu0 }
 0x450   : > { %2233 = vst [vmem:[%s3181_s16 + $0x460] sm:$0xff] %v1502_v54  ;;  %v1565_v54 = vpop.trf.xlu2 }
 0x451   : > { %2481 = vst [vmem:[%s3181_s16 + $0xc20] sm:$0xff] %v1565_v54  ;;  %1618 = vxpose.xlu1.b32.cont [6/16] %v598_v58, 128  ;;  %v648_v54 = vld [vmem:[%s3135_s15 + $0xed8] sm:$0xff] }
 0x453   : > { %1587 = vxpose.xlu0.b32.cont [7/16] %v527_v55, 128  ;;  %v1533_v55 = vpop.trf.xlu1 }
 0x454   : > { %2353 = vst [vmem:[%s3181_s16 + $0x820] sm:$0xff] %v1533_v55  ;;  %1649 = vxpose.xlu2.b32.cont [5/16] %v594_v59, 128  ;;  %v644_v55 = vld [vmem:[%s3135_s15 + $0xeb8] sm:$0xff]  ;;  %v635_v59 = vld [vmem:[%s3135_s15 + $0xe70] sm:$0xff] }
 0x457   : > { %v1503_v60 = vpop.trf.xlu0 }
 0x458   : > { %2241 = vst [vmem:[%s3181_s16 + $0x4a0] sm:$0xff] %v1503_v60  ;;  %v1566_v60 = vpop.trf.xlu2 }
 0x459   : > { %2489 = vst [vmem:[%s3181_s16 + $0xc60] sm:$0xff] %v1566_v60  ;;  %1619 = vxpose.xlu1.b32.cont [7/16] %v603_v0, 128  ;;  %v576_v60 = vld [vmem:[%s3135_s15 + $0xc98] sm:$0xff] }
 0x45b   : > { %1588 = vxpose.xlu0.b32.cont [8/16] %v532_v61, 128  ;;  %v1534_v61 = vpop.trf.xlu1 }
 0x45c   : > { %2361 = vst [vmem:[%s3181_s16 + $0x860] sm:$0xff] %v1534_v61  ;;  %1650 = vxpose.xlu2.b32.cont [6/16] %v599_v1, 128  ;;  %v649_v61 = vld [vmem:[%s3135_s15 + $0xee0] sm:$0xff]  ;;  %v640_v1 = vld [vmem:[%s3135_s15 + $0xe98] sm:$0xff] }
 0x45f   : > { %v1504_v2 = vpop.trf.xlu0 }
 0x460   : > { %2249 = vst [vmem:[%s3181_s16 + $0x4e0] sm:$0xff] %v1504_v2  ;;  %v1567_v2 = vpop.trf.xlu2 }
 0x461   : > { %2497 = vst [vmem:[%s3181_s16 + $0xca0] sm:$0xff] %v1567_v2  ;;  %1620 = vxpose.xlu1.b32.cont [8/16] %v608_v6, 128  ;;  %v581_v2 = vld [vmem:[%s3135_s15 + $0xcc0] sm:$0xff] }
 0x463   : > { %1589 = vxpose.xlu0.b32.cont [9/16] %v537_v3, 128  ;;  %v1535_v3 = vpop.trf.xlu1 }
 0x464   : > { %2369 = vst [vmem:[%s3181_s16 + $0x8a0] sm:$0xff] %v1535_v3  ;;  %1651 = vxpose.xlu2.b32.cont [7/16] %v604_v7, 128  ;;  %v577_v3 = vld [vmem:[%s3135_s15 + $0xca0] sm:$0xff] }
 0x465   : > { %v645_v7 = vld [vmem:[%s3135_s15 + $0xec0] sm:$0xff] }
 0x467   : > { %v1505_v8 = vpop.trf.xlu0 }
 0x468   : > { %2257 = vst [vmem:[%s3181_s16 + $0x520] sm:$0xff] %v1505_v8  ;;  %v1568_v8 = vpop.trf.xlu2 }
 0x469   : > { %2505 = vst [vmem:[%s3181_s16 + $0xce0] sm:$0xff] %v1568_v8  ;;  %1621 = vxpose.xlu1.b32.cont [9/16] %v613_v12, 128  ;;  %v586_v8 = vld [vmem:[%s3135_s15 + $0xce8] sm:$0xff] }
 0x46b   : > { %1590 = vxpose.xlu0.b32.cont [10/16] %v542_v9, 128  ;;  %v1536_v9 = vpop.trf.xlu1 }
 0x46c   : > { %2377 = vst [vmem:[%s3181_s16 + $0x8e0] sm:$0xff] %v1536_v9  ;;  %1652 = vxpose.xlu2.b32.cont [8/16] %v609_v13, 128  ;;  %v582_v9 = vld [vmem:[%s3135_s15 + $0xcc8] sm:$0xff] }
 0x46d   : > { %v650_v13 = vld [vmem:[%s3135_s15 + $0xee8] sm:$0xff] }
 0x46f   : > { %v1506_v14 = vpop.trf.xlu0 }
 0x470   : > { %2265 = vst [vmem:[%s3181_s16 + $0x560] sm:$0xff] %v1506_v14  ;;  %v1569_v14 = vpop.trf.xlu2 }
 0x471   : > { %2513 = vst [vmem:[%s3181_s16 + $0xd20] sm:$0xff] %v1569_v14  ;;  %1622 = vxpose.xlu1.b32.cont [10/16] %v618_v18, 128  ;;  %v591_v14 = vld [vmem:[%s3135_s15 + $0xd10] sm:$0xff] }
 0x473   : > { %1591 = vxpose.xlu0.b32.cont [11/16] %v547_v15, 128  ;;  %v1537_v15 = vpop.trf.xlu1 }
 0x474   : > { %2385 = vst [vmem:[%s3181_s16 + $0x920] sm:$0xff] %v1537_v15  ;;  %1653 = vxpose.xlu2.b32.cont [9/16] %v614_v19, 128  ;;  %v587_v15 = vld [vmem:[%s3135_s15 + $0xcf0] sm:$0xff]  ;;  %v653_v19 = vld [vmem:[%s3135_s15 + $0xf00] sm:$0xff] }
 0x477   : > { %v1507_v20 = vpop.trf.xlu0 }
 0x478   : > { %2273 = vst [vmem:[%s3181_s16 + $0x5a0] sm:$0xff] %v1507_v20  ;;  %v1570_v20 = vpop.trf.xlu2 }
 0x479   : > { %2521 = vst [vmem:[%s3181_s16 + $0xd60] sm:$0xff] %v1570_v20  ;;  %1623 = vxpose.xlu1.b32.cont [11/16] %v623_v24, 128  ;;  %v596_v20 = vld [vmem:[%s3135_s15 + $0xd38] sm:$0xff] }
 0x47b   : > { %1592 = vxpose.xlu0.b32.cont [12/16] %v552_v21, 128  ;;  %v1538_v21 = vpop.trf.xlu1 }
 0x47c   : > { %2393 = vst [vmem:[%s3181_s16 + $0x960] sm:$0xff] %v1538_v21  ;;  %1654 = vxpose.xlu2.b32.cont [10/16] %v619_v25, 128  ;;  %v592_v21 = vld [vmem:[%s3135_s15 + $0xd18] sm:$0xff]  ;;  %v658_v25 = vld [vmem:[%s3135_s15 + $0xf28] sm:$0xff] }
 0x47f   : > { %v1508_v26 = vpop.trf.xlu0 }
 0x480   : > { %2281 = vst [vmem:[%s3181_s16 + $0x5e0] sm:$0xff] %v1508_v26  ;;  %v1571_v26 = vpop.trf.xlu2 }
 0x481   : > { %2529 = vst [vmem:[%s3181_s16 + $0xda0] sm:$0xff] %v1571_v26  ;;  %1624 = vxpose.xlu1.b32.cont [12/16] %v628_v30, 128  ;;  %v601_v26 = vld [vmem:[%s3135_s15 + $0xd60] sm:$0xff] }
 0x483   : > { %1593 = vxpose.xlu0.b32.cont [13/16] %v557_v27, 128  ;;  %v1539_v27 = vpop.trf.xlu1 }
 0x484   : > { %2401 = vst [vmem:[%s3181_s16 + $0x9a0] sm:$0xff] %v1539_v27  ;;  %1655 = vxpose.xlu2.b32.cont [11/16] %v624_v31, 128  ;;  %v597_v27 = vld [vmem:[%s3135_s15 + $0xd40] sm:$0xff]  ;;  %v663_v31 = vld [vmem:[%s3135_s15 + $0xf50] sm:$0xff] }
 0x487   : > { %v1509_v32 = vpop.trf.xlu0 }
 0x488   : > { %2289 = vst [vmem:[%s3181_s16 + $0x620] sm:$0xff] %v1509_v32  ;;  %v1572_v32 = vpop.trf.xlu2 }
 0x489   : > { %2537 = vst [vmem:[%s3181_s16 + $0xde0] sm:$0xff] %v1572_v32  ;;  %1625 = vxpose.xlu1.b32.cont [13/16] %v633_v36, 128  ;;  %v606_v32 = vld [vmem:[%s3135_s15 + $0xd88] sm:$0xff] }
 0x48b   : > { %1594 = vxpose.xlu0.b32.cont [14/16] %v562_v33, 128  ;;  %v1540_v33 = vpop.trf.xlu1 }
 0x48c   : > { %2409 = vst [vmem:[%s3181_s16 + $0x9e0] sm:$0xff] %v1540_v33  ;;  %1656 = vxpose.xlu2.b32.cont [12/16] %v629_v37, 128  ;;  %v602_v33 = vld [vmem:[%s3135_s15 + $0xd68] sm:$0xff]  ;;  %v668_v37 = vld [vmem:[%s3135_s15 + $0xf78] sm:$0xff] }
 0x48f   : > { %v1510_v38 = vpop.trf.xlu0 }
 0x490   : > { %2297 = vst [vmem:[%s3181_s16 + $0x660] sm:$0xff] %v1510_v38  ;;  %v1573_v38 = vpop.trf.xlu2 }
 0x491   : > { %2545 = vst [vmem:[%s3181_s16 + $0xe20] sm:$0xff] %v1573_v38  ;;  %1626 = vxpose.xlu1.b32.cont [14/16] %v638_v42, 128  ;;  %v611_v38 = vld [vmem:[%s3135_s15 + $0xdb0] sm:$0xff] }
 0x493   : > { %1595 = vxpose.xlu0.b32.cont [15/16] %v567_v39, 128  ;;  %v1541_v39 = vpop.trf.xlu1 }
 0x494   : > { %2417 = vst [vmem:[%s3181_s16 + $0xa20] sm:$0xff] %v1541_v39  ;;  %1657 = vxpose.xlu2.b32.cont [13/16] %v634_v43, 128  ;;  %v607_v39 = vld [vmem:[%s3135_s15 + $0xd90] sm:$0xff]  ;;  %v673_v43 = vld [vmem:[%s3135_s15 + $0xfa0] sm:$0xff] }
 0x497   : > { %v1511_v44 = vpop.trf.xlu0 }
 0x498   : > { %2305 = vst [vmem:[%s3181_s16 + $0x6a0] sm:$0xff] %v1511_v44  ;;  %v1574_v44 = vpop.trf.xlu2 }
 0x499   : > { %2553 = vst [vmem:[%s3181_s16 + $0xe60] sm:$0xff] %v1574_v44  ;;  %1627 = vxpose.xlu1.b32.cont [15/16] %v643_v48, 128  ;;  %v616_v44 = vld [vmem:[%s3135_s15 + $0xdd8] sm:$0xff] }
 0x49b   : > { %1596 = vxpose.xlu0.b32.end [16/16] %v572_v45, 128  ;;  %v1542_v45 = vpop.trf.xlu1 }
 0x49c   : > { %2425 = vst [vmem:[%s3181_s16 + $0xa60] sm:$0xff] %v1542_v45  ;;  %1658 = vxpose.xlu2.b32.cont [14/16] %v639_v49, 128  ;;  %v612_v45 = vld [vmem:[%s3135_s15 + $0xdb8] sm:$0xff]  ;;  %v678_v49 = vld [vmem:[%s3135_s15 + $0xfc8] sm:$0xff] }
 0x49f   : > { %v1512_v50 = vpop.trf.xlu0 }
 0x4a0   : > { %2313 = vst [vmem:[%s3181_s16 + $0x6e0] sm:$0xff] %v1512_v50  ;;  %v1575_v50 = vpop.trf.xlu2 }
 0x4a1   : > { %2561 = vst [vmem:[%s3181_s16 + $0xea0] sm:$0xff] %v1575_v50  ;;  %1628 = vxpose.xlu1.b32.end [16/16] %v648_v54, 128  ;;  %v621_v50 = vld [vmem:[%s3135_s15 + $0xe00] sm:$0xff] }
 0x4a3   : > { %1677 = vxpose.xlu0.b32.start [1/16] %v575_v51, 128  ;;  %v1543_v51 = vpop.trf.xlu1 }
 0x4a4   : > { %2433 = vst [vmem:[%s3181_s16 + $0xaa0] sm:$0xff] %v1543_v51  ;;  %1659 = vxpose.xlu2.b32.cont [15/16] %v644_v55, 128  ;;  %v617_v51 = vld [vmem:[%s3135_s15 + $0xde0] sm:$0xff]  ;;  %v683_v55 = vld [vmem:[%s3135_s15 + $0xff0] sm:$0xff] }
 0x4a7   : > { %v1513_v56 = vpop.trf.xlu0 }
 0x4a8   : > { %2321 = vst [vmem:[%s3181_s16 + $0x720] sm:$0xff] %v1513_v56  ;;  %v1576_v56 = vpop.trf.xlu2 }
 0x4a9   : > { %2569 = vst [vmem:[%s3181_s16 + $0xee0] sm:$0xff] %v1576_v56  ;;  %1709 = vxpose.xlu1.b32.start [1/16] %v576_v60, 128  ;;  %v626_v56 = vld [vmem:[%s3135_s15 + $0xe28] sm:$0xff] }
 0x4ab   : > { %1678 = vxpose.xlu0.b32.cont [2/16] %v580_v57, 128  ;;  %v1544_v57 = vpop.trf.xlu1 }
 0x4ac   : > { %2441 = vst [vmem:[%s3181_s16 + $0xae0] sm:$0xff] %v1544_v57  ;;  %1660 = vxpose.xlu2.b32.end [16/16] %v649_v61, 128  ;;  %v622_v57 = vld [vmem:[%s3135_s15 + $0xe08] sm:$0xff]  ;;  %v688_v61 = vld [vmem:[%s3135_s15 + $0x1018] sm:$0xff] }
 0x4af   : > { %v1514_v62 = vpop.trf.xlu0 }
 0x4b0   : > { %2329 = vst [vmem:[%s3181_s16 + $0x760] sm:$0xff] %v1514_v62  ;;  %v1577_v62 = vpop.trf.xlu2 }
 0x4b1   : > { %2577 = vst [vmem:[%s3181_s16 + $0xf20] sm:$0xff] %v1577_v62  ;;  %1710 = vxpose.xlu1.b32.cont [2/16] %v581_v2, 128  ;;  %v631_v62 = vld [vmem:[%s3135_s15 + $0xe50] sm:$0xff] }
 0x4b3   : > { %1679 = vxpose.xlu0.b32.cont [3/16] %v585_v63, 128  ;;  %v1545_v63 = vpop.trf.xlu1 }
 0x4b4   : > { %2449 = vst [vmem:[%s3181_s16 + $0xb20] sm:$0xff] %v1545_v63  ;;  %1741 = vxpose.xlu2.b32.start [1/16] %v577_v3, 128  ;;  %v627_v63 = vld [vmem:[%s3135_s15 + $0xe30] sm:$0xff]  ;;  %v693_v3 = vld [vmem:[%s3135_s15 + $0x1040] sm:$0xff] }
 0x4b7   : > { %v1515_v4 = vpop.trf.xlu0 }
 0x4b8   : > { %2337 = vst [vmem:[%s3181_s16 + $0x7a0] sm:$0xff] %v1515_v4  ;;  %v1578_v4 = vpop.trf.xlu2 }
 0x4b9   : > { %2585 = vst [vmem:[%s3181_s16 + $0xf60] sm:$0xff] %v1578_v4  ;;  %1711 = vxpose.xlu1.b32.cont [3/16] %v586_v8, 128  ;;  %v636_v4 = vld [vmem:[%s3135_s15 + $0xe78] sm:$0xff] }
 0x4bb   : > { %1680 = vxpose.xlu0.b32.cont [4/16] %v590_v5, 128  ;;  %v1546_v5 = vpop.trf.xlu1 }
 0x4bc   : > { %2457 = vst [vmem:[%s3181_s16 + $0xb60] sm:$0xff] %v1546_v5  ;;  %1742 = vxpose.xlu2.b32.cont [2/16] %v582_v9, 128  ;;  %v632_v5 = vld [vmem:[%s3135_s15 + $0xe58] sm:$0xff]  ;;  %v698_v9 = vld [vmem:[%s3135_s15 + $0x1068] sm:$0xff] }
 0x4bf   : > { %v1516_v10 = vpop.trf.xlu0 }
 0x4c0   : > { %2345 = vst [vmem:[%s3181_s16 + $0x7e0] sm:$0xff] %v1516_v10  ;;  %v1579_v10 = vpop.trf.xlu2 }
 0x4c1   : > { %2593 = vst [vmem:[%s3181_s16 + $0xfa0] sm:$0xff] %v1579_v10  ;;  %1712 = vxpose.xlu1.b32.cont [4/16] %v591_v14, 128  ;;  %v641_v10 = vld [vmem:[%s3135_s15 + $0xea0] sm:$0xff] }
 0x4c3   : > { %1681 = vxpose.xlu0.b32.cont [5/16] %v595_v11, 128  ;;  %v1547_v11 = vpop.trf.xlu1 }
 0x4c4   : > { %2465 = vst [vmem:[%s3181_s16 + $0xba0] sm:$0xff] %v1547_v11  ;;  %1743 = vxpose.xlu2.b32.cont [3/16] %v587_v15, 128  ;;  %v637_v11 = vld [vmem:[%s3135_s15 + $0xe80] sm:$0xff]  ;;  %v703_v15 = vld [vmem:[%s3135_s15 + $0x1090] sm:$0xff] }
 0x4c7   : > { %v1597_v16 = vpop.trf.xlu0 }
 0x4c8   : > { %2609 = vst [vmem:[%s3181_s16 + $0x1020] sm:$0xff] %v1597_v16  ;;  %v1580_v16 = vpop.trf.xlu2 }
 0x4c9   : > { %2601 = vst [vmem:[%s3181_s16 + $0xfe0] sm:$0xff] %v1580_v16  ;;  %1713 = vxpose.xlu1.b32.cont [5/16] %v596_v20, 128  ;;  %v646_v16 = vld [vmem:[%s3135_s15 + $0xec8] sm:$0xff] }
 0x4cb   : > { %1682 = vxpose.xlu0.b32.cont [6/16] %v600_v17, 128  ;;  %v1548_v17 = vpop.trf.xlu1 }
 0x4cc   : > { %2473 = vst [vmem:[%s3181_s16 + $0xbe0] sm:$0xff] %v1548_v17  ;;  %1744 = vxpose.xlu2.b32.cont [4/16] %v592_v21, 128  ;;  %v642_v17 = vld [vmem:[%s3135_s15 + $0xea8] sm:$0xff]  ;;  %v708_v21 = vld [vmem:[%s3135_s15 + $0x10b8] sm:$0xff] }
 0x4cf   : > { %v1598_v22 = vpop.trf.xlu0 }
 0x4d0   : > { %2617 = vst [vmem:[%s3181_s16 + $0x1060] sm:$0xff] %v1598_v22  ;;  %v1661_v22 = vpop.trf.xlu2 }
 0x4d1   : > { %2226 = vst [vmem:[%s3181_s16 + $0x428] sm:$0xff] %v1661_v22  ;;  %1714 = vxpose.xlu1.b32.cont [6/16] %v601_v26, 128  ;;  %v651_v22 = vld [vmem:[%s3135_s15 + $0xef0] sm:$0xff] }
 0x4d3   : > { %1683 = vxpose.xlu0.b32.cont [7/16] %v605_v23, 128  ;;  %v1629_v23 = vpop.trf.xlu1 }
 0x4d4   : > { %2098 = vst [vmem:[%s3181_s16 + $0x28] sm:$0xff] %v1629_v23  ;;  %1745 = vxpose.xlu2.b32.cont [5/16] %v597_v27, 128  ;;  %v647_v23 = vld [vmem:[%s3135_s15 + $0xed0] sm:$0xff]  ;;  %v713_v27 = vld [vmem:[%s3135_s15 + $0x10e0] sm:$0xff] }
 0x4d7   : > { %v1599_v28 = vpop.trf.xlu0 }
 0x4d8   : > { %2625 = vst [vmem:[%s3181_s16 + $0x10a0] sm:$0xff] %v1599_v28  ;;  %v1662_v28 = vpop.trf.xlu2 }
 0x4d9   : > { %2234 = vst [vmem:[%s3181_s16 + $0x468] sm:$0xff] %v1662_v28  ;;  %1715 = vxpose.xlu1.b32.cont [7/16] %v606_v32, 128  ;;  %v654_v28 = vld [vmem:[%s3135_s15 + $0xf08] sm:$0xff] }
 0x4db   : > { %1684 = vxpose.xlu0.b32.cont [8/16] %v610_v29, 128  ;;  %v1630_v29 = vpop.trf.xlu1 }
 0x4dc   : > { %2106 = vst [vmem:[%s3181_s16 + $0x68] sm:$0xff] %v1630_v29  ;;  %1746 = vxpose.xlu2.b32.cont [6/16] %v602_v33, 128  ;;  %v652_v29 = vld [vmem:[%s3135_s15 + $0xef8] sm:$0xff]  ;;  %v718_v33 = vld [vmem:[%s3135_s15 + $0x1108] sm:$0xff] }
 0x4df   : > { %v1600_v34 = vpop.trf.xlu0 }
 0x4e0   : > { %2633 = vst [vmem:[%s3181_s16 + $0x10e0] sm:$0xff] %v1600_v34  ;;  %v1663_v34 = vpop.trf.xlu2 }
 0x4e1   : > { %2242 = vst [vmem:[%s3181_s16 + $0x4a8] sm:$0xff] %v1663_v34  ;;  %1716 = vxpose.xlu1.b32.cont [8/16] %v611_v38, 128  ;;  %v659_v34 = vld [vmem:[%s3135_s15 + $0xf30] sm:$0xff] }
 0x4e3   : > { %1685 = vxpose.xlu0.b32.cont [9/16] %v615_v35, 128  ;;  %v1631_v35 = vpop.trf.xlu1 }
 0x4e4   : > { %2114 = vst [vmem:[%s3181_s16 + $0xa8] sm:$0xff] %v1631_v35  ;;  %1747 = vxpose.xlu2.b32.cont [7/16] %v607_v39, 128  ;;  %v655_v35 = vld [vmem:[%s3135_s15 + $0xf10] sm:$0xff] }
 0x4e5   : > { %v723_v39 = vld [vmem:[%s3135_s15 + $0x1130] sm:$0xff] }
 0x4e7   : > { %v1601_v40 = vpop.trf.xlu0 }
 0x4e8   : > { %2641 = vst [vmem:[%s3181_s16 + $0x1120] sm:$0xff] %v1601_v40  ;;  %v1664_v40 = vpop.trf.xlu2 }
 0x4e9   : > { %2250 = vst [vmem:[%s3181_s16 + $0x4e8] sm:$0xff] %v1664_v40  ;;  %1717 = vxpose.xlu1.b32.cont [9/16] %v616_v44, 128  ;;  %v664_v40 = vld [vmem:[%s3135_s15 + $0xf58] sm:$0xff] }
 0x4eb   : > { %1686 = vxpose.xlu0.b32.cont [10/16] %v620_v41, 128  ;;  %v1632_v41 = vpop.trf.xlu1 }
 0x4ec   : > { %2122 = vst [vmem:[%s3181_s16 + $0xe8] sm:$0xff] %v1632_v41  ;;  %1748 = vxpose.xlu2.b32.cont [8/16] %v612_v45, 128  ;;  %v660_v41 = vld [vmem:[%s3135_s15 + $0xf38] sm:$0xff] }
 0x4ed   : > { %v728_v45 = vld [vmem:[%s3135_s15 + $0x1158] sm:$0xff] }
 0x4ef   : > { %v1602_v46 = vpop.trf.xlu0 }
 0x4f0   : > { %2649 = vst [vmem:[%s3181_s16 + $0x1160] sm:$0xff] %v1602_v46  ;;  %v1665_v46 = vpop.trf.xlu2 }
 0x4f1   : > { %2258 = vst [vmem:[%s3181_s16 + $0x528] sm:$0xff] %v1665_v46  ;;  %1718 = vxpose.xlu1.b32.cont [10/16] %v621_v50, 128  ;;  %v669_v46 = vld [vmem:[%s3135_s15 + $0xf80] sm:$0xff] }
 0x4f3   : > { %1687 = vxpose.xlu0.b32.cont [11/16] %v625_v47, 128  ;;  %v1633_v47 = vpop.trf.xlu1 }
 0x4f4   : > { %2130 = vst [vmem:[%s3181_s16 + $0x128] sm:$0xff] %v1633_v47  ;;  %1749 = vxpose.xlu2.b32.cont [9/16] %v617_v51, 128  ;;  %v665_v47 = vld [vmem:[%s3135_s15 + $0xf60] sm:$0xff]  ;;  %v656_v51 = vld [vmem:[%s3135_s15 + $0xf18] sm:$0xff] }
 0x4f7   : > { %v1603_v52 = vpop.trf.xlu0 }
 0x4f8   : > { %2657 = vst [vmem:[%s3181_s16 + $0x11a0] sm:$0xff] %v1603_v52  ;;  %v1666_v52 = vpop.trf.xlu2 }
 0x4f9   : > { %2266 = vst [vmem:[%s3181_s16 + $0x568] sm:$0xff] %v1666_v52  ;;  %1719 = vxpose.xlu1.b32.cont [11/16] %v626_v56, 128  ;;  %v674_v52 = vld [vmem:[%s3135_s15 + $0xfa8] sm:$0xff] }
 0x4fb   : > { %1688 = vxpose.xlu0.b32.cont [12/16] %v630_v53, 128  ;;  %v1634_v53 = vpop.trf.xlu1 }
 0x4fc   : > { %2138 = vst [vmem:[%s3181_s16 + $0x168] sm:$0xff] %v1634_v53  ;;  %1750 = vxpose.xlu2.b32.cont [10/16] %v622_v57, 128  ;;  %v670_v53 = vld [vmem:[%s3135_s15 + $0xf88] sm:$0xff]  ;;  %v661_v57 = vld [vmem:[%s3135_s15 + $0xf40] sm:$0xff] }
 0x4ff   : > { %v1604_v58 = vpop.trf.xlu0 }
 0x500   : > { %2665 = vst [vmem:[%s3181_s16 + $0x11e0] sm:$0xff] %v1604_v58  ;;  %v1667_v58 = vpop.trf.xlu2 }
 0x501   : > { %2274 = vst [vmem:[%s3181_s16 + $0x5a8] sm:$0xff] %v1667_v58  ;;  %1720 = vxpose.xlu1.b32.cont [12/16] %v631_v62, 128  ;;  %v679_v58 = vld [vmem:[%s3135_s15 + $0xfd0] sm:$0xff] }
 0x503   : > { %1689 = vxpose.xlu0.b32.cont [13/16] %v635_v59, 128  ;;  %v1635_v59 = vpop.trf.xlu1 }
 0x504   : > { %2146 = vst [vmem:[%s3181_s16 + $0x1a8] sm:$0xff] %v1635_v59  ;;  %1751 = vxpose.xlu2.b32.cont [11/16] %v627_v63, 128  ;;  %v675_v59 = vld [vmem:[%s3135_s15 + $0xfb0] sm:$0xff]  ;;  %v666_v63 = vld [vmem:[%s3135_s15 + $0xf68] sm:$0xff] }
 0x507   : > { %v1605_v0 = vpop.trf.xlu0 }
 0x508   : > { %2673 = vst [vmem:[%s3181_s16 + $0x1220] sm:$0xff] %v1605_v0  ;;  %v1668_v0 = vpop.trf.xlu2 }
 0x509   : > { %2282 = vst [vmem:[%s3181_s16 + $0x5e8] sm:$0xff] %v1668_v0  ;;  %1721 = vxpose.xlu1.b32.cont [13/16] %v636_v4, 128  ;;  %v684_v0 = vld [vmem:[%s3135_s15 + $0xff8] sm:$0xff] }
 0x50b   : > { %1690 = vxpose.xlu0.b32.cont [14/16] %v640_v1, 128  ;;  %v1636_v1 = vpop.trf.xlu1 }
 0x50c   : > { %2154 = vst [vmem:[%s3181_s16 + $0x1e8] sm:$0xff] %v1636_v1  ;;  %1752 = vxpose.xlu2.b32.cont [12/16] %v632_v5, 128  ;;  %v680_v1 = vld [vmem:[%s3135_s15 + $0xfd8] sm:$0xff]  ;;  %v671_v5 = vld [vmem:[%s3135_s15 + $0xf90] sm:$0xff] }
 0x50f   : > { %v1606_v6 = vpop.trf.xlu0 }
 0x510   : > { %2681 = vst [vmem:[%s3181_s16 + $0x1260] sm:$0xff] %v1606_v6  ;;  %v1669_v6 = vpop.trf.xlu2 }
 0x511   : > { %2290 = vst [vmem:[%s3181_s16 + $0x628] sm:$0xff] %v1669_v6  ;;  %1722 = vxpose.xlu1.b32.cont [14/16] %v641_v10, 128  ;;  %v689_v6 = vld [vmem:[%s3135_s15 + $0x1020] sm:$0xff] }
 0x513   : > { %1691 = vxpose.xlu0.b32.cont [15/16] %v645_v7, 128  ;;  %v1637_v7 = vpop.trf.xlu1 }
 0x514   : > { %2162 = vst [vmem:[%s3181_s16 + $0x228] sm:$0xff] %v1637_v7  ;;  %1753 = vxpose.xlu2.b32.cont [13/16] %v637_v11, 128  ;;  %v685_v7 = vld [vmem:[%s3135_s15 + $0x1000] sm:$0xff]  ;;  %v676_v11 = vld [vmem:[%s3135_s15 + $0xfb8] sm:$0xff] }
 0x517   : > { %v1607_v12 = vpop.trf.xlu0 }
 0x518   : > { %2689 = vst [vmem:[%s3181_s16 + $0x12a0] sm:$0xff] %v1607_v12  ;;  %v1670_v12 = vpop.trf.xlu2 }
 0x519   : > { %2298 = vst [vmem:[%s3181_s16 + $0x668] sm:$0xff] %v1670_v12  ;;  %1723 = vxpose.xlu1.b32.cont [15/16] %v646_v16, 128  ;;  %v694_v12 = vld [vmem:[%s3135_s15 + $0x1048] sm:$0xff] }
 0x51b   : > { %1692 = vxpose.xlu0.b32.end [16/16] %v650_v13, 128  ;;  %v1638_v13 = vpop.trf.xlu1 }
 0x51c   : > { %2170 = vst [vmem:[%s3181_s16 + $0x268] sm:$0xff] %v1638_v13  ;;  %1754 = vxpose.xlu2.b32.cont [14/16] %v642_v17, 128  ;;  %v690_v13 = vld [vmem:[%s3135_s15 + $0x1028] sm:$0xff]  ;;  %v681_v17 = vld [vmem:[%s3135_s15 + $0xfe0] sm:$0xff] }
 0x51f   : > { %v1608_v18 = vpop.trf.xlu0 }
 0x520   : > { %2697 = vst [vmem:[%s3181_s16 + $0x12e0] sm:$0xff] %v1608_v18  ;;  %v1671_v18 = vpop.trf.xlu2 }
 0x521   : > { %2306 = vst [vmem:[%s3181_s16 + $0x6a8] sm:$0xff] %v1671_v18  ;;  %1724 = vxpose.xlu1.b32.end [16/16] %v651_v22, 128  ;;  %v699_v18 = vld [vmem:[%s3135_s15 + $0x1070] sm:$0xff] }
 0x523   : > { %1773 = vxpose.xlu0.b32.start [1/16] %v653_v19, 128  ;;  %v1639_v19 = vpop.trf.xlu1 }
 0x524   : > { %2178 = vst [vmem:[%s3181_s16 + $0x2a8] sm:$0xff] %v1639_v19  ;;  %1755 = vxpose.xlu2.b32.cont [15/16] %v647_v23, 128  ;;  %v695_v19 = vld [vmem:[%s3135_s15 + $0x1050] sm:$0xff]  ;;  %v686_v23 = vld [vmem:[%s3135_s15 + $0x1008] sm:$0xff] }
 0x527   : > { %v1609_v24 = vpop.trf.xlu0 }
 0x528   : > { %2705 = vst [vmem:[%s3181_s16 + $0x1320] sm:$0xff] %v1609_v24  ;;  %v1672_v24 = vpop.trf.xlu2 }
 0x529   : > { %2314 = vst [vmem:[%s3181_s16 + $0x6e8] sm:$0xff] %v1672_v24  ;;  %1805 = vxpose.xlu1.b32.start [1/16] %v654_v28, 128  ;;  %v704_v24 = vld [vmem:[%s3135_s15 + $0x1098] sm:$0xff] }
 0x52b   : > { %1774 = vxpose.xlu0.b32.cont [2/16] %v658_v25, 128  ;;  %v1640_v25 = vpop.trf.xlu1 }
 0x52c   : > { %2186 = vst [vmem:[%s3181_s16 + $0x2e8] sm:$0xff] %v1640_v25  ;;  %1756 = vxpose.xlu2.b32.end [16/16] %v652_v29, 128  ;;  %v700_v25 = vld [vmem:[%s3135_s15 + $0x1078] sm:$0xff]  ;;  %v691_v29 = vld [vmem:[%s3135_s15 + $0x1030] sm:$0xff] }
 0x52f   : > { %v1610_v30 = vpop.trf.xlu0 }
 0x530   : > { %2713 = vst [vmem:[%s3181_s16 + $0x1360] sm:$0xff] %v1610_v30  ;;  %v1673_v30 = vpop.trf.xlu2 }
 0x531   : > { %2322 = vst [vmem:[%s3181_s16 + $0x728] sm:$0xff] %v1673_v30  ;;  %1806 = vxpose.xlu1.b32.cont [2/16] %v659_v34, 128  ;;  %v709_v30 = vld [vmem:[%s3135_s15 + $0x10c0] sm:$0xff] }
 0x533   : > { %1775 = vxpose.xlu0.b32.cont [3/16] %v663_v31, 128  ;;  %v1641_v31 = vpop.trf.xlu1 }
 0x534   : > { %2194 = vst [vmem:[%s3181_s16 + $0x328] sm:$0xff] %v1641_v31  ;;  %1837 = vxpose.xlu2.b32.start [1/16] %v655_v35, 128  ;;  %v705_v31 = vld [vmem:[%s3135_s15 + $0x10a0] sm:$0xff]  ;;  %v696_v35 = vld [vmem:[%s3135_s15 + $0x1058] sm:$0xff] }
 0x537   : > { %v1611_v36 = vpop.trf.xlu0 }
 0x538   : > { %2721 = vst [vmem:[%s3181_s16 + $0x13a0] sm:$0xff] %v1611_v36  ;;  %v1674_v36 = vpop.trf.xlu2 }
 0x539   : > { %2330 = vst [vmem:[%s3181_s16 + $0x768] sm:$0xff] %v1674_v36  ;;  %1807 = vxpose.xlu1.b32.cont [3/16] %v664_v40, 128  ;;  %v714_v36 = vld [vmem:[%s3135_s15 + $0x10e8] sm:$0xff] }
 0x53b   : > { %1776 = vxpose.xlu0.b32.cont [4/16] %v668_v37, 128  ;;  %v1642_v37 = vpop.trf.xlu1 }
 0x53c   : > { %2202 = vst [vmem:[%s3181_s16 + $0x368] sm:$0xff] %v1642_v37  ;;  %1838 = vxpose.xlu2.b32.cont [2/16] %v660_v41, 128  ;;  %v710_v37 = vld [vmem:[%s3135_s15 + $0x10c8] sm:$0xff]  ;;  %v701_v41 = vld [vmem:[%s3135_s15 + $0x1080] sm:$0xff] }
 0x53f   : > { %v1612_v42 = vpop.trf.xlu0 }
 0x540   : > { %2729 = vst [vmem:[%s3181_s16 + $0x13e0] sm:$0xff] %v1612_v42  ;;  %v1675_v42 = vpop.trf.xlu2 }
 0x541   : > { %2338 = vst [vmem:[%s3181_s16 + $0x7a8] sm:$0xff] %v1675_v42  ;;  %1808 = vxpose.xlu1.b32.cont [4/16] %v669_v46, 128  ;;  %v719_v42 = vld [vmem:[%s3135_s15 + $0x1110] sm:$0xff] }
 0x543   : > { %1777 = vxpose.xlu0.b32.cont [5/16] %v673_v43, 128  ;;  %v1643_v43 = vpop.trf.xlu1 }
 0x544   : > { %2210 = vst [vmem:[%s3181_s16 + $0x3a8] sm:$0xff] %v1643_v43  ;;  %1839 = vxpose.xlu2.b32.cont [3/16] %v665_v47, 128  ;;  %v715_v43 = vld [vmem:[%s3135_s15 + $0x10f0] sm:$0xff]  ;;  %v706_v47 = vld [vmem:[%s3135_s15 + $0x10a8] sm:$0xff] }
 0x547   : > { %v1693_v48 = vpop.trf.xlu0 }
 0x548   : > { %2354 = vst [vmem:[%s3181_s16 + $0x828] sm:$0xff] %v1693_v48  ;;  %v1676_v48 = vpop.trf.xlu2 }
 0x549   : > { %2346 = vst [vmem:[%s3181_s16 + $0x7e8] sm:$0xff] %v1676_v48  ;;  %1809 = vxpose.xlu1.b32.cont [5/16] %v674_v52, 128  ;;  %v724_v48 = vld [vmem:[%s3135_s15 + $0x1138] sm:$0xff] }
 0x54b   : > { %1778 = vxpose.xlu0.b32.cont [6/16] %v678_v49, 128  ;;  %v1644_v49 = vpop.trf.xlu1 }
 0x54c   : > { %2218 = vst [vmem:[%s3181_s16 + $0x3e8] sm:$0xff] %v1644_v49  ;;  %1840 = vxpose.xlu2.b32.cont [4/16] %v670_v53, 128  ;;  %v720_v49 = vld [vmem:[%s3135_s15 + $0x1118] sm:$0xff]  ;;  %v711_v53 = vld [vmem:[%s3135_s15 + $0x10d0] sm:$0xff] }
 0x54f   : > { %v1694_v54 = vpop.trf.xlu0 }
 0x550   : > { %2362 = vst [vmem:[%s3181_s16 + $0x868] sm:$0xff] %v1694_v54  ;;  %v1757_v54 = vpop.trf.xlu2 }
 0x551   : > { %2610 = vst [vmem:[%s3181_s16 + $0x1028] sm:$0xff] %v1757_v54  ;;  %1810 = vxpose.xlu1.b32.cont [6/16] %v679_v58, 128  ;;  %v729_v54 = vld [vmem:[%s3135_s15 + $0x1160] sm:$0xff] }
 0x553   : > { %1779 = vxpose.xlu0.b32.cont [7/16] %v683_v55, 128  ;;  %v1725_v55 = vpop.trf.xlu1 }
 0x554   : > { %2482 = vst [vmem:[%s3181_s16 + $0xc28] sm:$0xff] %v1725_v55  ;;  %1841 = vxpose.xlu2.b32.cont [5/16] %v675_v59, 128  ;;  %v725_v55 = vld [vmem:[%s3135_s15 + $0x1140] sm:$0xff]  ;;  %v716_v59 = vld [vmem:[%s3135_s15 + $0x10f8] sm:$0xff] }
 0x557   : > { %v1695_v60 = vpop.trf.xlu0 }
 0x558   : > { %2370 = vst [vmem:[%s3181_s16 + $0x8a8] sm:$0xff] %v1695_v60  ;;  %v1758_v60 = vpop.trf.xlu2 }
 0x559   : > { %2618 = vst [vmem:[%s3181_s16 + $0x1068] sm:$0xff] %v1758_v60  ;;  %1811 = vxpose.xlu1.b32.cont [7/16] %v684_v0, 128  ;;  %v657_v60 = vld [vmem:[%s3135_s15 + $0xf20] sm:$0xff] }
 0x55b   : > { %1780 = vxpose.xlu0.b32.cont [8/16] %v688_v61, 128  ;;  %v1726_v61 = vpop.trf.xlu1 }
 0x55c   : > { %2490 = vst [vmem:[%s3181_s16 + $0xc68] sm:$0xff] %v1726_v61  ;;  %1842 = vxpose.xlu2.b32.cont [6/16] %v680_v1, 128  ;;  %v730_v61 = vld [vmem:[%s3135_s15 + $0x1168] sm:$0xff]  ;;  %v721_v1 = vld [vmem:[%s3135_s15 + $0x1120] sm:$0xff] }
 0x55f   : > { %v1696_v2 = vpop.trf.xlu0 }
 0x560   : > { %2378 = vst [vmem:[%s3181_s16 + $0x8e8] sm:$0xff] %v1696_v2  ;;  %v1759_v2 = vpop.trf.xlu2 }
 0x561   : > { %2626 = vst [vmem:[%s3181_s16 + $0x10a8] sm:$0xff] %v1759_v2  ;;  %1812 = vxpose.xlu1.b32.cont [8/16] %v689_v6, 128  ;;  %v662_v2 = vld [vmem:[%s3135_s15 + $0xf48] sm:$0xff] }
 0x563   : > { %1781 = vxpose.xlu0.b32.cont [9/16] %v693_v3, 128  ;;  %v1727_v3 = vpop.trf.xlu1 }
 0x564   : > { %2498 = vst [vmem:[%s3181_s16 + $0xca8] sm:$0xff] %v1727_v3  ;;  %1843 = vxpose.xlu2.b32.cont [7/16] %v685_v7, 128  ;;  %v733_v3 = vld [vmem:[%s3135_s15 + $0x1180] sm:$0xff]  ;;  %v726_v7 = vld [vmem:[%s3135_s15 + $0x1148] sm:$0xff] }
 0x567   : > { %v1697_v8 = vpop.trf.xlu0 }
 0x568   : > { %2386 = vst [vmem:[%s3181_s16 + $0x928] sm:$0xff] %v1697_v8  ;;  %v1760_v8 = vpop.trf.xlu2 }
 0x569   : > { %2634 = vst [vmem:[%s3181_s16 + $0x10e8] sm:$0xff] %v1760_v8  ;;  %1813 = vxpose.xlu1.b32.cont [9/16] %v694_v12, 128  ;;  %v667_v8 = vld [vmem:[%s3135_s15 + $0xf70] sm:$0xff] }
 0x56b   : > { %1782 = vxpose.xlu0.b32.cont [10/16] %v698_v9, 128  ;;  %v1728_v9 = vpop.trf.xlu1 }
 0x56c   : > { %2506 = vst [vmem:[%s3181_s16 + $0xce8] sm:$0xff] %v1728_v9  ;;  %1844 = vxpose.xlu2.b32.cont [8/16] %v690_v13, 128  ;;  %v738_v9 = vld [vmem:[%s3135_s15 + $0x11a8] sm:$0xff]  ;;  %v731_v13 = vld [vmem:[%s3135_s15 + $0x1170] sm:$0xff] }
 0x56f   : > { %v1698_v14 = vpop.trf.xlu0 }
 0x570   : > { %2394 = vst [vmem:[%s3181_s16 + $0x968] sm:$0xff] %v1698_v14  ;;  %v1761_v14 = vpop.trf.xlu2 }
 0x571   : > { %2642 = vst [vmem:[%s3181_s16 + $0x1128] sm:$0xff] %v1761_v14  ;;  %1814 = vxpose.xlu1.b32.cont [10/16] %v699_v18, 128  ;;  %v672_v14 = vld [vmem:[%s3135_s15 + $0xf98] sm:$0xff] }
 0x573   : > { %1783 = vxpose.xlu0.b32.cont [11/16] %v703_v15, 128  ;;  %v1729_v15 = vpop.trf.xlu1 }
 0x574   : > { %2514 = vst [vmem:[%s3181_s16 + $0xd28] sm:$0xff] %v1729_v15  ;;  %1845 = vxpose.xlu2.b32.cont [9/16] %v695_v19, 128  ;;  %v743_v15 = vld [vmem:[%s3135_s15 + $0x11d0] sm:$0xff]  ;;  %v734_v19 = vld [vmem:[%s3135_s15 + $0x1188] sm:$0xff] }
 0x577   : > { %v1699_v20 = vpop.trf.xlu0 }
 0x578   : > { %2402 = vst [vmem:[%s3181_s16 + $0x9a8] sm:$0xff] %v1699_v20  ;;  %v1762_v20 = vpop.trf.xlu2 }
 0x579   : > { %2650 = vst [vmem:[%s3181_s16 + $0x1168] sm:$0xff] %v1762_v20  ;;  %1815 = vxpose.xlu1.b32.cont [11/16] %v704_v24, 128  ;;  %v677_v20 = vld [vmem:[%s3135_s15 + $0xfc0] sm:$0xff] }
 0x57b   : > { %1784 = vxpose.xlu0.b32.cont [12/16] %v708_v21, 128  ;;  %v1730_v21 = vpop.trf.xlu1 }
 0x57c   : > { %2522 = vst [vmem:[%s3181_s16 + $0xd68] sm:$0xff] %v1730_v21  ;;  %1846 = vxpose.xlu2.b32.cont [10/16] %v700_v25, 128  ;;  %v748_v21 = vld [vmem:[%s3135_s15 + $0x11f8] sm:$0xff]  ;;  %v739_v25 = vld [vmem:[%s3135_s15 + $0x11b0] sm:$0xff] }
 0x57f   : > { %v1700_v26 = vpop.trf.xlu0 }
 0x580   : > { %2410 = vst [vmem:[%s3181_s16 + $0x9e8] sm:$0xff] %v1700_v26  ;;  %v1763_v26 = vpop.trf.xlu2 }
 0x581   : > { %2658 = vst [vmem:[%s3181_s16 + $0x11a8] sm:$0xff] %v1763_v26  ;;  %1816 = vxpose.xlu1.b32.cont [12/16] %v709_v30, 128  ;;  %v682_v26 = vld [vmem:[%s3135_s15 + $0xfe8] sm:$0xff] }
 0x583   : > { %1785 = vxpose.xlu0.b32.cont [13/16] %v713_v27, 128  ;;  %v1731_v27 = vpop.trf.xlu1 }
 0x584   : > { %2530 = vst [vmem:[%s3181_s16 + $0xda8] sm:$0xff] %v1731_v27  ;;  %1847 = vxpose.xlu2.b32.cont [11/16] %v705_v31, 128  ;;  %v753_v27 = vld [vmem:[%s3135_s15 + $0x1220] sm:$0xff]  ;;  %v744_v31 = vld [vmem:[%s3135_s15 + $0x11d8] sm:$0xff] }
 0x587   : > { %v1701_v32 = vpop.trf.xlu0 }
 0x588   : > { %2418 = vst [vmem:[%s3181_s16 + $0xa28] sm:$0xff] %v1701_v32  ;;  %v1764_v32 = vpop.trf.xlu2 }
 0x589   : > { %2666 = vst [vmem:[%s3181_s16 + $0x11e8] sm:$0xff] %v1764_v32  ;;  %1817 = vxpose.xlu1.b32.cont [13/16] %v714_v36, 128  ;;  %v687_v32 = vld [vmem:[%s3135_s15 + $0x1010] sm:$0xff] }
 0x58b   : > { %1786 = vxpose.xlu0.b32.cont [14/16] %v718_v33, 128  ;;  %v1732_v33 = vpop.trf.xlu1 }
 0x58c   : > { %2538 = vst [vmem:[%s3181_s16 + $0xde8] sm:$0xff] %v1732_v33  ;;  %1848 = vxpose.xlu2.b32.cont [12/16] %v710_v37, 128  ;;  %v758_v33 = vld [vmem:[%s3135_s15 + $0x1248] sm:$0xff]  ;;  %v749_v37 = vld [vmem:[%s3135_s15 + $0x1200] sm:$0xff] }
 0x58f   : > { %v1702_v38 = vpop.trf.xlu0 }
 0x590   : > { %2426 = vst [vmem:[%s3181_s16 + $0xa68] sm:$0xff] %v1702_v38  ;;  %v1765_v38 = vpop.trf.xlu2 }
 0x591   : > { %2674 = vst [vmem:[%s3181_s16 + $0x1228] sm:$0xff] %v1765_v38  ;;  %1818 = vxpose.xlu1.b32.cont [14/16] %v719_v42, 128  ;;  %v692_v38 = vld [vmem:[%s3135_s15 + $0x1038] sm:$0xff] }
 0x593   : > { %1787 = vxpose.xlu0.b32.cont [15/16] %v723_v39, 128  ;;  %v1733_v39 = vpop.trf.xlu1 }
 0x594   : > { %2546 = vst [vmem:[%s3181_s16 + $0xe28] sm:$0xff] %v1733_v39  ;;  %1849 = vxpose.xlu2.b32.cont [13/16] %v715_v43, 128  ;;  %v763_v39 = vld [vmem:[%s3135_s15 + $0x1270] sm:$0xff]  ;;  %v754_v43 = vld [vmem:[%s3135_s15 + $0x1228] sm:$0xff] }
 0x597   : > { %v1703_v44 = vpop.trf.xlu0 }
 0x598   : > { %2434 = vst [vmem:[%s3181_s16 + $0xaa8] sm:$0xff] %v1703_v44  ;;  %v1766_v44 = vpop.trf.xlu2 }
 0x599   : > { %2682 = vst [vmem:[%s3181_s16 + $0x1268] sm:$0xff] %v1766_v44  ;;  %1819 = vxpose.xlu1.b32.cont [15/16] %v724_v48, 128  ;;  %v697_v44 = vld [vmem:[%s3135_s15 + $0x1060] sm:$0xff] }
 0x59b   : > { %1788 = vxpose.xlu0.b32.end [16/16] %v728_v45, 128  ;;  %v1734_v45 = vpop.trf.xlu1 }
 0x59c   : > { %2554 = vst [vmem:[%s3181_s16 + $0xe68] sm:$0xff] %v1734_v45  ;;  %1850 = vxpose.xlu2.b32.cont [14/16] %v720_v49, 128  ;;  %v768_v45 = vld [vmem:[%s3135_s15 + $0x1298] sm:$0xff]  ;;  %v759_v49 = vld [vmem:[%s3135_s15 + $0x1250] sm:$0xff] }
 0x59f   : > { %v1704_v50 = vpop.trf.xlu0 }
 0x5a0   : > { %2442 = vst [vmem:[%s3181_s16 + $0xae8] sm:$0xff] %v1704_v50  ;;  %v1767_v50 = vpop.trf.xlu2 }
 0x5a1   : > { %2690 = vst [vmem:[%s3181_s16 + $0x12a8] sm:$0xff] %v1767_v50  ;;  %1820 = vxpose.xlu1.b32.end [16/16] %v729_v54, 128  ;;  %v702_v50 = vld [vmem:[%s3135_s15 + $0x1088] sm:$0xff] }
 0x5a3   : > { %1869 = vxpose.xlu0.b32.start [1/16] %v656_v51, 128  ;;  %v1735_v51 = vpop.trf.xlu1 }
 0x5a4   : > { %2562 = vst [vmem:[%s3181_s16 + $0xea8] sm:$0xff] %v1735_v51  ;;  %1851 = vxpose.xlu2.b32.cont [15/16] %v725_v55, 128  ;;  %v773_v51 = vld [vmem:[%s3135_s15 + $0x12c0] sm:$0xff]  ;;  %v764_v55 = vld [vmem:[%s3135_s15 + $0x1278] sm:$0xff] }
 0x5a7   : > { %v1705_v56 = vpop.trf.xlu0 }
 0x5a8   : > { %2450 = vst [vmem:[%s3181_s16 + $0xb28] sm:$0xff] %v1705_v56  ;;  %v1768_v56 = vpop.trf.xlu2 }
 0x5a9   : > { %2698 = vst [vmem:[%s3181_s16 + $0x12e8] sm:$0xff] %v1768_v56  ;;  %1901 = vxpose.xlu1.b32.start [1/16] %v657_v60, 128  ;;  %v707_v56 = vld [vmem:[%s3135_s15 + $0x10b0] sm:$0xff] }
 0x5ab   : > { %1870 = vxpose.xlu0.b32.cont [2/16] %v661_v57, 128  ;;  %v1736_v57 = vpop.trf.xlu1 }
 0x5ac   : > { %2570 = vst [vmem:[%s3181_s16 + $0xee8] sm:$0xff] %v1736_v57  ;;  %1852 = vxpose.xlu2.b32.end [16/16] %v730_v61, 128  ;;  %v778_v57 = vld [vmem:[%s3135_s15 + $0x12e8] sm:$0xff]  ;;  %v769_v61 = vld [vmem:[%s3135_s15 + $0x12a0] sm:$0xff] }
 0x5af   : > { %v1706_v62 = vpop.trf.xlu0 }
 0x5b0   : > { %2458 = vst [vmem:[%s3181_s16 + $0xb68] sm:$0xff] %v1706_v62  ;;  %v1769_v62 = vpop.trf.xlu2 }
 0x5b1   : > { %2706 = vst [vmem:[%s3181_s16 + $0x1328] sm:$0xff] %v1769_v62  ;;  %1902 = vxpose.xlu1.b32.cont [2/16] %v662_v2, 128  ;;  %v712_v62 = vld [vmem:[%s3135_s15 + $0x10d8] sm:$0xff] }
 0x5b3   : > { %1871 = vxpose.xlu0.b32.cont [3/16] %v666_v63, 128  ;;  %v1737_v63 = vpop.trf.xlu1 }
 0x5b4   : > { %2578 = vst [vmem:[%s3181_s16 + $0xf28] sm:$0xff] %v1737_v63  ;;  %1933 = vxpose.xlu2.b32.start [1/16] %v733_v3, 128  ;;  %v783_v63 = vld [vmem:[%s3135_s15 + $0x1310] sm:$0xff]  ;;  %v774_v3 = vld [vmem:[%s3135_s15 + $0x12c8] sm:$0xff] }
 0x5b7   : > { %v1707_v4 = vpop.trf.xlu0 }
 0x5b8   : > { %2466 = vst [vmem:[%s3181_s16 + $0xba8] sm:$0xff] %v1707_v4  ;;  %v1770_v4 = vpop.trf.xlu2 }
 0x5b9   : > { %2714 = vst [vmem:[%s3181_s16 + $0x1368] sm:$0xff] %v1770_v4  ;;  %1903 = vxpose.xlu1.b32.cont [3/16] %v667_v8, 128  ;;  %v717_v4 = vld [vmem:[%s3135_s15 + $0x1100] sm:$0xff] }
 0x5bb   : > { %1872 = vxpose.xlu0.b32.cont [4/16] %v671_v5, 128  ;;  %v1738_v5 = vpop.trf.xlu1 }
 0x5bc   : > { %2586 = vst [vmem:[%s3181_s16 + $0xf68] sm:$0xff] %v1738_v5  ;;  %1934 = vxpose.xlu2.b32.cont [2/16] %v738_v9, 128  ;;  %v788_v5 = vld [vmem:[%s3135_s15 + $0x1338] sm:$0xff]  ;;  %v779_v9 = vld [vmem:[%s3135_s15 + $0x12f0] sm:$0xff] }
 0x5bf   : > { %v1708_v10 = vpop.trf.xlu0 }
 0x5c0   : > { %2474 = vst [vmem:[%s3181_s16 + $0xbe8] sm:$0xff] %v1708_v10  ;;  %v1771_v10 = vpop.trf.xlu2 }
 0x5c1   : > { %2722 = vst [vmem:[%s3181_s16 + $0x13a8] sm:$0xff] %v1771_v10  ;;  %1904 = vxpose.xlu1.b32.cont [4/16] %v672_v14, 128  ;;  %v722_v10 = vld [vmem:[%s3135_s15 + $0x1128] sm:$0xff] }
 0x5c3   : > { %1873 = vxpose.xlu0.b32.cont [5/16] %v676_v11, 128  ;;  %v1739_v11 = vpop.trf.xlu1 }
 0x5c4   : > { %2594 = vst [vmem:[%s3181_s16 + $0xfa8] sm:$0xff] %v1739_v11  ;;  %1935 = vxpose.xlu2.b32.cont [3/16] %v743_v15, 128  ;;  %v793_v11 = vld [vmem:[%s3135_s15 + $0x1360] sm:$0xff]  ;;  %v784_v15 = vld [vmem:[%s3135_s15 + $0x1318] sm:$0xff] }
 0x5c7   : > { %v1789_v16 = vpop.trf.xlu0 }
 0x5c8   : > { %2099 = vst [vmem:[%s3181_s16 + $0x30] sm:$0xff] %v1789_v16  ;;  %v1772_v16 = vpop.trf.xlu2 }
 0x5c9   : > { %2730 = vst [vmem:[%s3181_s16 + $0x13e8] sm:$0xff] %v1772_v16  ;;  %1905 = vxpose.xlu1.b32.cont [5/16] %v677_v20, 128  ;;  %v727_v16 = vld [vmem:[%s3135_s15 + $0x1150] sm:$0xff] }
 0x5cb   : > { %1874 = vxpose.xlu0.b32.cont [6/16] %v681_v17, 128  ;;  %v1740_v17 = vpop.trf.xlu1 }
 0x5cc   : > { %2602 = vst [vmem:[%s3181_s16 + $0xfe8] sm:$0xff] %v1740_v17  ;;  %1936 = vxpose.xlu2.b32.cont [4/16] %v748_v21, 128  ;;  %v798_v17 = vld [vmem:[%s3135_s15 + $0x1388] sm:$0xff]  ;;  %v789_v21 = vld [vmem:[%s3135_s15 + $0x1340] sm:$0xff] }
 0x5cf   : > { %v1790_v22 = vpop.trf.xlu0 }
 0x5d0   : > { %2107 = vst [vmem:[%s3181_s16 + $0x70] sm:$0xff] %v1790_v22  ;;  %v1853_v22 = vpop.trf.xlu2 }
 0x5d1   : > { %2355 = vst [vmem:[%s3181_s16 + $0x830] sm:$0xff] %v1853_v22  ;;  %1906 = vxpose.xlu1.b32.cont [6/16] %v682_v26, 128  ;;  %v732_v22 = vld [vmem:[%s3135_s15 + $0x1178] sm:$0xff] }
 0x5d3   : > { %1875 = vxpose.xlu0.b32.cont [7/16] %v686_v23, 128  ;;  %v1821_v23 = vpop.trf.xlu1 }
 0x5d4   : > { %2227 = vst [vmem:[%s3181_s16 + $0x430] sm:$0xff] %v1821_v23  ;;  %1937 = vxpose.xlu2.b32.cont [5/16] %v753_v27, 128  ;;  %v803_v23 = vld [vmem:[%s3135_s15 + $0x13b0] sm:$0xff]  ;;  %v794_v27 = vld [vmem:[%s3135_s15 + $0x1368] sm:$0xff] }
 0x5d7   : > { %v1791_v28 = vpop.trf.xlu0 }
 0x5d8   : > { %2115 = vst [vmem:[%s3181_s16 + $0xb0] sm:$0xff] %v1791_v28  ;;  %v1854_v28 = vpop.trf.xlu2 }
 0x5d9   : > { %2363 = vst [vmem:[%s3181_s16 + $0x870] sm:$0xff] %v1854_v28  ;;  %1907 = vxpose.xlu1.b32.cont [7/16] %v687_v32, 128  ;;  %v735_v28 = vld [vmem:[%s3135_s15 + $0x1190] sm:$0xff] }
 0x5db   : > { %1876 = vxpose.xlu0.b32.cont [8/16] %v691_v29, 128  ;;  %v1822_v29 = vpop.trf.xlu1 }
 0x5dc   : > { %2235 = vst [vmem:[%s3181_s16 + $0x470] sm:$0xff] %v1822_v29  ;;  %1938 = vxpose.xlu2.b32.cont [6/16] %v758_v33, 128  ;;  %v808_v29 = vld [vmem:[%s3135_s15 + $0x13d8] sm:$0xff]  ;;  %v799_v33 = vld [vmem:[%s3135_s15 + $0x1390] sm:$0xff] }
 0x5df   : > { %v1792_v34 = vpop.trf.xlu0 }
 0x5e0   : > { %2123 = vst [vmem:[%s3181_s16 + $0xf0] sm:$0xff] %v1792_v34  ;;  %v1855_v34 = vpop.trf.xlu2 }
 0x5e1   : > { %2371 = vst [vmem:[%s3181_s16 + $0x8b0] sm:$0xff] %v1855_v34  ;;  %1908 = vxpose.xlu1.b32.cont [8/16] %v692_v38, 128  ;;  %v740_v34 = vld [vmem:[%s3135_s15 + $0x11b8] sm:$0xff] }
 0x5e3   : > { %1877 = vxpose.xlu0.b32.cont [9/16] %v696_v35, 128  ;;  %v1823_v35 = vpop.trf.xlu1 }
 0x5e4   : > { %2243 = vst [vmem:[%s3181_s16 + $0x4b0] sm:$0xff] %v1823_v35  ;;  %1939 = vxpose.xlu2.b32.cont [7/16] %v763_v39, 128  ;;  %v736_v35 = vld [vmem:[%s3135_s15 + $0x1198] sm:$0xff] }
 0x5e5   : > { %v804_v39 = vld [vmem:[%s3135_s15 + $0x13b8] sm:$0xff] }
 0x5e7   : > { %v1793_v40 = vpop.trf.xlu0 }
 0x5e8   : > { %2131 = vst [vmem:[%s3181_s16 + $0x130] sm:$0xff] %v1793_v40  ;;  %v1856_v40 = vpop.trf.xlu2 }
 0x5e9   : > { %2379 = vst [vmem:[%s3181_s16 + $0x8f0] sm:$0xff] %v1856_v40  ;;  %1909 = vxpose.xlu1.b32.cont [9/16] %v697_v44, 128  ;;  %v745_v40 = vld [vmem:[%s3135_s15 + $0x11e0] sm:$0xff] }
 0x5eb   : > { %1878 = vxpose.xlu0.b32.cont [10/16] %v701_v41, 128  ;;  %v1824_v41 = vpop.trf.xlu1 }
 0x5ec   : > { %2251 = vst [vmem:[%s3181_s16 + $0x4f0] sm:$0xff] %v1824_v41  ;;  %1940 = vxpose.xlu2.b32.cont [8/16] %v768_v45, 128  ;;  %v741_v41 = vld [vmem:[%s3135_s15 + $0x11c0] sm:$0xff] }
 0x5ed   : > { %v809_v45 = vld [vmem:[%s3135_s15 + $0x13e0] sm:$0xff] }
 0x5ef   : > { %v1794_v46 = vpop.trf.xlu0 }
 0x5f0   : > { %2139 = vst [vmem:[%s3181_s16 + $0x170] sm:$0xff] %v1794_v46  ;;  %v1857_v46 = vpop.trf.xlu2 }
 0x5f1   : > { %2387 = vst [vmem:[%s3181_s16 + $0x930] sm:$0xff] %v1857_v46  ;;  %1910 = vxpose.xlu1.b32.cont [10/16] %v702_v50, 128  ;;  %v750_v46 = vld [vmem:[%s3135_s15 + $0x1208] sm:$0xff] }
 0x5f3   : > { %1879 = vxpose.xlu0.b32.cont [11/16] %v706_v47, 128  ;;  %v1825_v47 = vpop.trf.xlu1 }
 0x5f4   : > { %2259 = vst [vmem:[%s3181_s16 + $0x530] sm:$0xff] %v1825_v47  ;;  %1941 = vxpose.xlu2.b32.cont [9/16] %v773_v51, 128  ;;  %v746_v47 = vld [vmem:[%s3135_s15 + $0x11e8] sm:$0xff]  ;;  %v737_v51 = vld [vmem:[%s3135_s15 + $0x11a0] sm:$0xff] }
 0x5f7   : > { %v1795_v52 = vpop.trf.xlu0 }
 0x5f8   : > { %2147 = vst [vmem:[%s3181_s16 + $0x1b0] sm:$0xff] %v1795_v52  ;;  %v1858_v52 = vpop.trf.xlu2 }
 0x5f9   : > { %2395 = vst [vmem:[%s3181_s16 + $0x970] sm:$0xff] %v1858_v52  ;;  %1911 = vxpose.xlu1.b32.cont [11/16] %v707_v56, 128  ;;  %v755_v52 = vld [vmem:[%s3135_s15 + $0x1230] sm:$0xff] }
 0x5fb   : > { %1880 = vxpose.xlu0.b32.cont [12/16] %v711_v53, 128  ;;  %v1826_v53 = vpop.trf.xlu1 }
 0x5fc   : > { %2267 = vst [vmem:[%s3181_s16 + $0x570] sm:$0xff] %v1826_v53  ;;  %1942 = vxpose.xlu2.b32.cont [10/16] %v778_v57, 128  ;;  %v751_v53 = vld [vmem:[%s3135_s15 + $0x1210] sm:$0xff]  ;;  %v742_v57 = vld [vmem:[%s3135_s15 + $0x11c8] sm:$0xff] }
 0x5ff   : > { %v1796_v58 = vpop.trf.xlu0 }
 0x600   : > { %2155 = vst [vmem:[%s3181_s16 + $0x1f0] sm:$0xff] %v1796_v58  ;;  %v1859_v58 = vpop.trf.xlu2 }
 0x601   : > { %2403 = vst [vmem:[%s3181_s16 + $0x9b0] sm:$0xff] %v1859_v58  ;;  %1912 = vxpose.xlu1.b32.cont [12/16] %v712_v62, 128  ;;  %v760_v58 = vld [vmem:[%s3135_s15 + $0x1258] sm:$0xff] }
 0x603   : > { %1881 = vxpose.xlu0.b32.cont [13/16] %v716_v59, 128  ;;  %v1827_v59 = vpop.trf.xlu1 }
 0x604   : > { %2275 = vst [vmem:[%s3181_s16 + $0x5b0] sm:$0xff] %v1827_v59  ;;  %1943 = vxpose.xlu2.b32.cont [11/16] %v783_v63, 128  ;;  %v756_v59 = vld [vmem:[%s3135_s15 + $0x1238] sm:$0xff]  ;;  %v747_v63 = vld [vmem:[%s3135_s15 + $0x11f0] sm:$0xff] }
 0x607   : > { %v1797_v0 = vpop.trf.xlu0 }
 0x608   : > { %2163 = vst [vmem:[%s3181_s16 + $0x230] sm:$0xff] %v1797_v0  ;;  %v1860_v0 = vpop.trf.xlu2 }
 0x609   : > { %2411 = vst [vmem:[%s3181_s16 + $0x9f0] sm:$0xff] %v1860_v0  ;;  %1913 = vxpose.xlu1.b32.cont [13/16] %v717_v4, 128  ;;  %v765_v0 = vld [vmem:[%s3135_s15 + $0x1280] sm:$0xff] }
 0x60b   : > { %1882 = vxpose.xlu0.b32.cont [14/16] %v721_v1, 128  ;;  %v1828_v1 = vpop.trf.xlu1 }
 0x60c   : > { %2283 = vst [vmem:[%s3181_s16 + $0x5f0] sm:$0xff] %v1828_v1  ;;  %1944 = vxpose.xlu2.b32.cont [12/16] %v788_v5, 128  ;;  %v761_v1 = vld [vmem:[%s3135_s15 + $0x1260] sm:$0xff]  ;;  %v752_v5 = vld [vmem:[%s3135_s15 + $0x1218] sm:$0xff] }
 0x60f   : > { %v1798_v6 = vpop.trf.xlu0 }
 0x610   : > { %2171 = vst [vmem:[%s3181_s16 + $0x270] sm:$0xff] %v1798_v6  ;;  %v1861_v6 = vpop.trf.xlu2 }
 0x611   : > { %2419 = vst [vmem:[%s3181_s16 + $0xa30] sm:$0xff] %v1861_v6  ;;  %1914 = vxpose.xlu1.b32.cont [14/16] %v722_v10, 128  ;;  %v770_v6 = vld [vmem:[%s3135_s15 + $0x12a8] sm:$0xff] }
 0x613   : > { %1883 = vxpose.xlu0.b32.cont [15/16] %v726_v7, 128  ;;  %v1829_v7 = vpop.trf.xlu1 }
 0x614   : > { %2291 = vst [vmem:[%s3181_s16 + $0x630] sm:$0xff] %v1829_v7  ;;  %1945 = vxpose.xlu2.b32.cont [13/16] %v793_v11, 128  ;;  %v766_v7 = vld [vmem:[%s3135_s15 + $0x1288] sm:$0xff]  ;;  %v757_v11 = vld [vmem:[%s3135_s15 + $0x1240] sm:$0xff] }
 0x617   : > { %v1799_v12 = vpop.trf.xlu0 }
 0x618   : > { %2179 = vst [vmem:[%s3181_s16 + $0x2b0] sm:$0xff] %v1799_v12  ;;  %v1862_v12 = vpop.trf.xlu2 }
 0x619   : > { %2427 = vst [vmem:[%s3181_s16 + $0xa70] sm:$0xff] %v1862_v12  ;;  %1915 = vxpose.xlu1.b32.cont [15/16] %v727_v16, 128  ;;  %v775_v12 = vld [vmem:[%s3135_s15 + $0x12d0] sm:$0xff] }
 0x61b   : > { %1884 = vxpose.xlu0.b32.end [16/16] %v731_v13, 128  ;;  %v1830_v13 = vpop.trf.xlu1 }
 0x61c   : > { %2299 = vst [vmem:[%s3181_s16 + $0x670] sm:$0xff] %v1830_v13  ;;  %1946 = vxpose.xlu2.b32.cont [14/16] %v798_v17, 128  ;;  %v771_v13 = vld [vmem:[%s3135_s15 + $0x12b0] sm:$0xff]  ;;  %v762_v17 = vld [vmem:[%s3135_s15 + $0x1268] sm:$0xff] }
 0x61f   : > { %v1800_v18 = vpop.trf.xlu0 }
 0x620   : > { %2187 = vst [vmem:[%s3181_s16 + $0x2f0] sm:$0xff] %v1800_v18  ;;  %v1863_v18 = vpop.trf.xlu2 }
 0x621   : > { %2435 = vst [vmem:[%s3181_s16 + $0xab0] sm:$0xff] %v1863_v18  ;;  %1916 = vxpose.xlu1.b32.end [16/16] %v732_v22, 128  ;;  %v780_v18 = vld [vmem:[%s3135_s15 + $0x12f8] sm:$0xff] }
 0x623   : > { %1965 = vxpose.xlu0.b32.start [1/16] %v734_v19, 128  ;;  %v1831_v19 = vpop.trf.xlu1 }
 0x624   : > { %2307 = vst [vmem:[%s3181_s16 + $0x6b0] sm:$0xff] %v1831_v19  ;;  %1947 = vxpose.xlu2.b32.cont [15/16] %v803_v23, 128  ;;  %v776_v19 = vld [vmem:[%s3135_s15 + $0x12d8] sm:$0xff]  ;;  %v767_v23 = vld [vmem:[%s3135_s15 + $0x1290] sm:$0xff] }
 0x627   : > { %v1801_v24 = vpop.trf.xlu0 }
 0x628   : > { %2195 = vst [vmem:[%s3181_s16 + $0x330] sm:$0xff] %v1801_v24  ;;  %v1864_v24 = vpop.trf.xlu2 }
 0x629   : > { %2443 = vst [vmem:[%s3181_s16 + $0xaf0] sm:$0xff] %v1864_v24  ;;  %1997 = vxpose.xlu1.b32.start [1/16] %v735_v28, 128  ;;  %v785_v24 = vld [vmem:[%s3135_s15 + $0x1320] sm:$0xff] }
 0x62b   : > { %1966 = vxpose.xlu0.b32.cont [2/16] %v739_v25, 128  ;;  %v1832_v25 = vpop.trf.xlu1 }
 0x62c   : > { %2315 = vst [vmem:[%s3181_s16 + $0x6f0] sm:$0xff] %v1832_v25  ;;  %1948 = vxpose.xlu2.b32.end [16/16] %v808_v29, 128  ;;  %v781_v25 = vld [vmem:[%s3135_s15 + $0x1300] sm:$0xff]  ;;  %v772_v29 = vld [vmem:[%s3135_s15 + $0x12b8] sm:$0xff] }
 0x62f   : > { %v1802_v30 = vpop.trf.xlu0 }
 0x630   : > { %2203 = vst [vmem:[%s3181_s16 + $0x370] sm:$0xff] %v1802_v30  ;;  %v1865_v30 = vpop.trf.xlu2 }
 0x631   : > { %2451 = vst [vmem:[%s3181_s16 + $0xb30] sm:$0xff] %v1865_v30  ;;  %1998 = vxpose.xlu1.b32.cont [2/16] %v740_v34, 128  ;;  %v790_v30 = vld [vmem:[%s3135_s15 + $0x1348] sm:$0xff] }
 0x633   : > { %1967 = vxpose.xlu0.b32.cont [3/16] %v744_v31, 128  ;;  %v1833_v31 = vpop.trf.xlu1 }
 0x634   : > { %2323 = vst [vmem:[%s3181_s16 + $0x730] sm:$0xff] %v1833_v31  ;;  %2029 = vxpose.xlu2.b32.start [1/16] %v736_v35, 128  ;;  %v786_v31 = vld [vmem:[%s3135_s15 + $0x1328] sm:$0xff]  ;;  %v777_v35 = vld [vmem:[%s3135_s15 + $0x12e0] sm:$0xff] }
 0x637   : > { %v1803_v36 = vpop.trf.xlu0 }
 0x638   : > { %2211 = vst [vmem:[%s3181_s16 + $0x3b0] sm:$0xff] %v1803_v36  ;;  %v1866_v36 = vpop.trf.xlu2 }
 0x639   : > { %2459 = vst [vmem:[%s3181_s16 + $0xb70] sm:$0xff] %v1866_v36  ;;  %1999 = vxpose.xlu1.b32.cont [3/16] %v745_v40, 128  ;;  %v795_v36 = vld [vmem:[%s3135_s15 + $0x1370] sm:$0xff] }
 0x63b   : > { %1968 = vxpose.xlu0.b32.cont [4/16] %v749_v37, 128  ;;  %v1834_v37 = vpop.trf.xlu1 }
 0x63c   : > { %2331 = vst [vmem:[%s3181_s16 + $0x770] sm:$0xff] %v1834_v37  ;;  %2030 = vxpose.xlu2.b32.cont [2/16] %v741_v41, 128  ;;  %v791_v37 = vld [vmem:[%s3135_s15 + $0x1350] sm:$0xff]  ;;  %v782_v41 = vld [vmem:[%s3135_s15 + $0x1308] sm:$0xff] }
 0x63f   : > { %v1804_v42 = vpop.trf.xlu0 }
 0x640   : > { %2219 = vst [vmem:[%s3181_s16 + $0x3f0] sm:$0xff] %v1804_v42  ;;  %v1867_v42 = vpop.trf.xlu2 }
 0x641   : > { %2467 = vst [vmem:[%s3181_s16 + $0xbb0] sm:$0xff] %v1867_v42  ;;  %2000 = vxpose.xlu1.b32.cont [4/16] %v750_v46, 128  ;;  %v800_v42 = vld [vmem:[%s3135_s15 + $0x1398] sm:$0xff] }
 0x643   : > { %1969 = vxpose.xlu0.b32.cont [5/16] %v754_v43, 128  ;;  %v1835_v43 = vpop.trf.xlu1 }
 0x644   : > { %2339 = vst [vmem:[%s3181_s16 + $0x7b0] sm:$0xff] %v1835_v43  ;;  %2031 = vxpose.xlu2.b32.cont [3/16] %v746_v47, 128  ;;  %v796_v43 = vld [vmem:[%s3135_s15 + $0x1378] sm:$0xff]  ;;  %v787_v47 = vld [vmem:[%s3135_s15 + $0x1330] sm:$0xff] }
 0x647   : > { %v1885_v48 = vpop.trf.xlu0 }
 0x648   : > { %2483 = vst [vmem:[%s3181_s16 + $0xc30] sm:$0xff] %v1885_v48  ;;  %v1868_v48 = vpop.trf.xlu2 }
 0x649   : > { %2475 = vst [vmem:[%s3181_s16 + $0xbf0] sm:$0xff] %v1868_v48  ;;  %2001 = vxpose.xlu1.b32.cont [5/16] %v755_v52, 128  ;;  %v805_v48 = vld [vmem:[%s3135_s15 + $0x13c0] sm:$0xff] }
 0x64b   : > { %1970 = vxpose.xlu0.b32.cont [6/16] %v759_v49, 128  ;;  %v1836_v49 = vpop.trf.xlu1 }
 0x64c   : > { %2347 = vst [vmem:[%s3181_s16 + $0x7f0] sm:$0xff] %v1836_v49  ;;  %2032 = vxpose.xlu2.b32.cont [4/16] %v751_v53, 128  ;;  %v801_v49 = vld [vmem:[%s3135_s15 + $0x13a0] sm:$0xff]  ;;  %v792_v53 = vld [vmem:[%s3135_s15 + $0x1358] sm:$0xff] }
 0x64f   : > { %v1886_v54 = vpop.trf.xlu0 }
 0x650   : > { %2491 = vst [vmem:[%s3181_s16 + $0xc70] sm:$0xff] %v1886_v54  ;;  %v1949_v54 = vpop.trf.xlu2 }
 0x651   : > { %2100 = vst [vmem:[%s3181_s16 + $0x38] sm:$0xff] %v1949_v54  ;;  %2002 = vxpose.xlu1.b32.cont [6/16] %v760_v58, 128  ;;  %v810_v54 = vld [vmem:[%s3135_s15 + $0x13e8] sm:$0xff] }
 0x653   : > { %1971 = vxpose.xlu0.b32.cont [7/16] %v764_v55, 128  ;;  %v1917_v55 = vpop.trf.xlu1 }
 0x654   : > { %2611 = vst [vmem:[%s3181_s16 + $0x1030] sm:$0xff] %v1917_v55  ;;  %2033 = vxpose.xlu2.b32.cont [5/16] %v756_v59, 128  ;;  %v806_v55 = vld [vmem:[%s3135_s15 + $0x13c8] sm:$0xff]  ;;  %v797_v59 = vld [vmem:[%s3135_s15 + $0x1380] sm:$0xff] }
 0x657   : > { %v1887_v60 = vpop.trf.xlu0 }
 0x658   : > { %2499 = vst [vmem:[%s3181_s16 + $0xcb0] sm:$0xff] %v1887_v60  ;;  %v1950_v60 = vpop.trf.xlu2 }
 0x659   : > { %2108 = vst [vmem:[%s3181_s16 + $0x78] sm:$0xff] %v1950_v60  ;;  %2003 = vxpose.xlu1.b32.cont [7/16] %v765_v0, 128  ;;  %v811_v60 = vld [vmem:[%s3135_s15 + $0x13f0] sm:$0xff]  ;;  %v802_v0 = vld [vmem:[%s3135_s15 + $0x13a8] sm:$0xff] }
 0x65b   : > { %1972 = vxpose.xlu0.b32.cont [8/16] %v769_v61, 128  ;;  %v1918_v61 = vpop.trf.xlu1 }
 0x65c   : > { %2619 = vst [vmem:[%s3181_s16 + $0x1070] sm:$0xff] %v1918_v61  ;;  %2034 = vxpose.xlu2.b32.cont [6/16] %v761_v1, 128 }
 0x65f   : > { %v1888_v2 = vpop.trf.xlu0 }
 0x660   : > { %2507 = vst [vmem:[%s3181_s16 + $0xcf0] sm:$0xff] %v1888_v2  ;;  %v1951_v2 = vpop.trf.xlu2 }
 0x661   : > { %2116 = vst [vmem:[%s3181_s16 + $0xb8] sm:$0xff] %v1951_v2  ;;  %2004 = vxpose.xlu1.b32.cont [8/16] %v770_v6, 128 }
 0x663   : > { %1973 = vxpose.xlu0.b32.cont [9/16] %v774_v3, 128  ;;  %v1919_v3 = vpop.trf.xlu1 }
 0x664   : > { %2627 = vst [vmem:[%s3181_s16 + $0x10b0] sm:$0xff] %v1919_v3  ;;  %2035 = vxpose.xlu2.b32.cont [7/16] %v766_v7, 128 }
 0x667   : > { %v1889_v8 = vpop.trf.xlu0 }
 0x668   : > { %2515 = vst [vmem:[%s3181_s16 + $0xd30] sm:$0xff] %v1889_v8  ;;  %v1952_v8 = vpop.trf.xlu2 }
 0x669   : > { %2124 = vst [vmem:[%s3181_s16 + $0xf8] sm:$0xff] %v1952_v8  ;;  %2005 = vxpose.xlu1.b32.cont [9/16] %v775_v12, 128  ;;  %v812_v8 = vld [vmem:[%s3135_s15 + $0x13f8] sm:$0xff] }
 0x66b   : > { %1974 = vxpose.xlu0.b32.cont [10/16] %v779_v9, 128  ;;  %v1920_v9 = vpop.trf.xlu1 }
 0x66c   : > { %2635 = vst [vmem:[%s3181_s16 + $0x10f0] sm:$0xff] %v1920_v9  ;;  %2036 = vxpose.xlu2.b32.cont [8/16] %v771_v13, 128 }
 0x66f   : > { %v1890_v14 = vpop.trf.xlu0 }
 0x670   : > { %2523 = vst [vmem:[%s3181_s16 + $0xd70] sm:$0xff] %v1890_v14  ;;  %v1953_v14 = vpop.trf.xlu2 }
 0x671   : > { %2132 = vst [vmem:[%s3181_s16 + $0x138] sm:$0xff] %v1953_v14  ;;  %2006 = vxpose.xlu1.b32.cont [10/16] %v780_v18, 128 }
 0x673   : > { %1975 = vxpose.xlu0.b32.cont [11/16] %v784_v15, 128  ;;  %v1921_v15 = vpop.trf.xlu1 }
 0x674   : > { %2643 = vst [vmem:[%s3181_s16 + $0x1130] sm:$0xff] %v1921_v15  ;;  %2037 = vxpose.xlu2.b32.cont [9/16] %v776_v19, 128 }
 0x677   : > { %v1891_v20 = vpop.trf.xlu0 }
 0x678   : > { %2531 = vst [vmem:[%s3181_s16 + $0xdb0] sm:$0xff] %v1891_v20  ;;  %v1954_v20 = vpop.trf.xlu2 }
 0x679   : > { %2140 = vst [vmem:[%s3181_s16 + $0x178] sm:$0xff] %v1954_v20  ;;  %2007 = vxpose.xlu1.b32.cont [11/16] %v785_v24, 128 }
 0x67b   : > { %1976 = vxpose.xlu0.b32.cont [12/16] %v789_v21, 128  ;;  %v1922_v21 = vpop.trf.xlu1 }
 0x67c   : > { %2651 = vst [vmem:[%s3181_s16 + $0x1170] sm:$0xff] %v1922_v21  ;;  %2038 = vxpose.xlu2.b32.cont [10/16] %v781_v25, 128 }
 0x67f   : > { %v1892_v26 = vpop.trf.xlu0 }
 0x680   : > { %2539 = vst [vmem:[%s3181_s16 + $0xdf0] sm:$0xff] %v1892_v26  ;;  %v1955_v26 = vpop.trf.xlu2 }
 0x681   : > { %2148 = vst [vmem:[%s3181_s16 + $0x1b8] sm:$0xff] %v1955_v26  ;;  %2008 = vxpose.xlu1.b32.cont [12/16] %v790_v30, 128 }
 0x683   : > { %1977 = vxpose.xlu0.b32.cont [13/16] %v794_v27, 128  ;;  %v1923_v27 = vpop.trf.xlu1 }
 0x684   : > { %2659 = vst [vmem:[%s3181_s16 + $0x11b0] sm:$0xff] %v1923_v27  ;;  %2039 = vxpose.xlu2.b32.cont [11/16] %v786_v31, 128 }
 0x687   : > { %v1893_v32 = vpop.trf.xlu0 }
 0x688   : > { %2547 = vst [vmem:[%s3181_s16 + $0xe30] sm:$0xff] %v1893_v32  ;;  %v1956_v32 = vpop.trf.xlu2 }
 0x689   : > { %2156 = vst [vmem:[%s3181_s16 + $0x1f8] sm:$0xff] %v1956_v32  ;;  %2009 = vxpose.xlu1.b32.cont [13/16] %v795_v36, 128 }
 0x68b   : > { %1978 = vxpose.xlu0.b32.cont [14/16] %v799_v33, 128  ;;  %v1924_v33 = vpop.trf.xlu1 }
 0x68c   : > { %2667 = vst [vmem:[%s3181_s16 + $0x11f0] sm:$0xff] %v1924_v33  ;;  %2040 = vxpose.xlu2.b32.cont [12/16] %v791_v37, 128 }
 0x68f   : > { %v1894_v38 = vpop.trf.xlu0 }
 0x690   : > { %2555 = vst [vmem:[%s3181_s16 + $0xe70] sm:$0xff] %v1894_v38  ;;  %v1957_v38 = vpop.trf.xlu2 }
 0x691   : > { %2164 = vst [vmem:[%s3181_s16 + $0x238] sm:$0xff] %v1957_v38  ;;  %2010 = vxpose.xlu1.b32.cont [14/16] %v800_v42, 128 }
 0x693   : > { %1979 = vxpose.xlu0.b32.cont [15/16] %v804_v39, 128  ;;  %v1925_v39 = vpop.trf.xlu1 }
 0x694   : > { %2675 = vst [vmem:[%s3181_s16 + $0x1230] sm:$0xff] %v1925_v39  ;;  %2041 = vxpose.xlu2.b32.cont [13/16] %v796_v43, 128 }
 0x697   : > { %v1895_v44 = vpop.trf.xlu0 }
 0x698   : > { %2563 = vst [vmem:[%s3181_s16 + $0xeb0] sm:$0xff] %v1895_v44  ;;  %v1958_v44 = vpop.trf.xlu2 }
 0x699   : > { %2172 = vst [vmem:[%s3181_s16 + $0x278] sm:$0xff] %v1958_v44  ;;  %2011 = vxpose.xlu1.b32.cont [15/16] %v805_v48, 128 }
 0x69b   : > { %1980 = vxpose.xlu0.b32.end [16/16] %v809_v45, 128  ;;  %v1926_v45 = vpop.trf.xlu1 }
 0x69c   : > { %2683 = vst [vmem:[%s3181_s16 + $0x1270] sm:$0xff] %v1926_v45  ;;  %2042 = vxpose.xlu2.b32.cont [14/16] %v801_v49, 128 }
 0x69f   : > { %v1896_v50 = vpop.trf.xlu0 }
 0x6a0   : > { %2571 = vst [vmem:[%s3181_s16 + $0xef0] sm:$0xff] %v1896_v50  ;;  %v1959_v50 = vpop.trf.xlu2 }
 0x6a1   : > { %2180 = vst [vmem:[%s3181_s16 + $0x2b8] sm:$0xff] %v1959_v50  ;;  %2012 = vxpose.xlu1.b32.end [16/16] %v810_v54, 128 }
 0x6a3   : > { %2061 = vxpose.xlu0.b32.start [1/16] %v737_v51, 128  ;;  %v1927_v51 = vpop.trf.xlu1 }
 0x6a4   : > { %2691 = vst [vmem:[%s3181_s16 + $0x12b0] sm:$0xff] %v1927_v51  ;;  %2043 = vxpose.xlu2.b32.cont [15/16] %v806_v55, 128 }
 0x6a7   : > { %v1897_v56 = vpop.trf.xlu0 }
 0x6a8   : > { %2579 = vst [vmem:[%s3181_s16 + $0xf30] sm:$0xff] %v1897_v56  ;;  %v1960_v56 = vpop.trf.xlu2 }
 0x6a9   : > { %2188 = vst [vmem:[%s3181_s16 + $0x2f8] sm:$0xff] %v1960_v56 }
 0x6ab   : > { %2062 = vxpose.xlu0.b32.cont [2/16] %v742_v57, 128  ;;  %v1928_v57 = vpop.trf.xlu1 }
 0x6ac   : > { %2699 = vst [vmem:[%s3181_s16 + $0x12f0] sm:$0xff] %v1928_v57  ;;  %2044 = vxpose.xlu2.b32.end [16/16] %v811_v60, 128 }
 0x6af   : > { %v1898_v62 = vpop.trf.xlu0 }
 0x6b0   : > { %2587 = vst [vmem:[%s3181_s16 + $0xf70] sm:$0xff] %v1898_v62  ;;  %v1961_v61 = vpop.trf.xlu2 }
 0x6b1   : > { %2196 = vst [vmem:[%s3181_s16 + $0x338] sm:$0xff] %v1961_v61 }
 0x6b3   : > { %2063 = vxpose.xlu0.b32.cont [3/16] %v747_v63, 128  ;;  %v1929_v62 = vpop.trf.xlu1 }
 0x6b4   : > { %2707 = vst [vmem:[%s3181_s16 + $0x1330] sm:$0xff] %v1929_v62 }
 0x6b7   : > { %v1899_v4 = vpop.trf.xlu0 }
 0x6b8   : > { %2595 = vst [vmem:[%s3181_s16 + $0xfb0] sm:$0xff] %v1899_v4  ;;  %v1962_v1 = vpop.trf.xlu2  ;;  %v807_v4 = vld [vmem:[%s3135_s15 + $0x13d0] sm:$0xff] }
 0x6b9   : > { %2204 = vst [vmem:[%s3181_s16 + $0x378] sm:$0xff] %v1962_v1 }
 0x6bb   : > { %2064 = vxpose.xlu0.b32.cont [4/16] %v752_v5, 128  ;;  %v1930_v2 = vpop.trf.xlu1 }
 0x6bc   : > { %2715 = vst [vmem:[%s3181_s16 + $0x1370] sm:$0xff] %v1930_v2 }
 0x6bf   : > { %v1900_v10 = vpop.trf.xlu0 }
 0x6c0   : > { %2603 = vst [vmem:[%s3181_s16 + $0xff0] sm:$0xff] %v1900_v10  ;;  %v1963_v5 = vpop.trf.xlu2 }
 0x6c1   : > { %2212 = vst [vmem:[%s3181_s16 + $0x3b8] sm:$0xff] %v1963_v5 }
 0x6c3   : > { %2065 = vxpose.xlu0.b32.cont [5/16] %v757_v11, 128  ;;  %v1931_v6 = vpop.trf.xlu1 }
 0x6c4   : > { %2723 = vst [vmem:[%s3181_s16 + $0x13b0] sm:$0xff] %v1931_v6 }
 0x6c7   : > { %v1981_v16 = vpop.trf.xlu0 }
 0x6c8   : > { %2228 = vst [vmem:[%s3181_s16 + $0x438] sm:$0xff] %v1981_v16  ;;  %v1964_v9 = vpop.trf.xlu2 }
 0x6c9   : > { %2220 = vst [vmem:[%s3181_s16 + $0x3f8] sm:$0xff] %v1964_v9 }
 0x6cb   : > { %2066 = vxpose.xlu0.b32.cont [6/16] %v762_v17, 128  ;;  %v1932_v10 = vpop.trf.xlu1 }
 0x6cc   : > { %2731 = vst [vmem:[%s3181_s16 + $0x13f0] sm:$0xff] %v1932_v10 }
 0x6cf   : > { %v1982_v22 = vpop.trf.xlu0 }
 0x6d0   : > { %2236 = vst [vmem:[%s3181_s16 + $0x478] sm:$0xff] %v1982_v22  ;;  %v2045_v12 = vpop.trf.xlu2 }
 0x6d1   : > { %2484 = vst [vmem:[%s3181_s16 + $0xc38] sm:$0xff] %v2045_v12 }
 0x6d3   : > { %2067 = vxpose.xlu0.b32.cont [7/16] %v767_v23, 128  ;;  %v2013_v13 = vpop.trf.xlu1 }
 0x6d4   : > { %2356 = vst [vmem:[%s3181_s16 + $0x838] sm:$0xff] %v2013_v13 }
 0x6d7   : > { %v1983_v28 = vpop.trf.xlu0 }
 0x6d8   : > { %2244 = vst [vmem:[%s3181_s16 + $0x4b8] sm:$0xff] %v1983_v28  ;;  %v2046_v15 = vpop.trf.xlu2 }
 0x6d9   : > { %2492 = vst [vmem:[%s3181_s16 + $0xc78] sm:$0xff] %v2046_v15 }
 0x6db   : > { %2068 = vxpose.xlu0.b32.cont [8/16] %v772_v29, 128  ;;  %v2014_v16 = vpop.trf.xlu1 }
 0x6dc   : > { %2364 = vst [vmem:[%s3181_s16 + $0x878] sm:$0xff] %v2014_v16 }
 0x6df   : > { %v1984_v34 = vpop.trf.xlu0 }
 0x6e0   : > { %2252 = vst [vmem:[%s3181_s16 + $0x4f8] sm:$0xff] %v1984_v34  ;;  %v2047_v18 = vpop.trf.xlu2 }
 0x6e1   : > { %2500 = vst [vmem:[%s3181_s16 + $0xcb8] sm:$0xff] %v2047_v18 }
 0x6e3   : > { %2069 = vxpose.xlu0.b32.cont [9/16] %v777_v35, 128  ;;  %v2015_v19 = vpop.trf.xlu1 }
 0x6e4   : > { %2372 = vst [vmem:[%s3181_s16 + $0x8b8] sm:$0xff] %v2015_v19 }
 0x6e7   : > { %v1985_v40 = vpop.trf.xlu0 }
 0x6e8   : > { %2260 = vst [vmem:[%s3181_s16 + $0x538] sm:$0xff] %v1985_v40  ;;  %v2048_v21 = vpop.trf.xlu2 }
 0x6e9   : > { %2508 = vst [vmem:[%s3181_s16 + $0xcf8] sm:$0xff] %v2048_v21 }
 0x6eb   : > { %2070 = vxpose.xlu0.b32.cont [10/16] %v782_v41, 128  ;;  %v2016_v22 = vpop.trf.xlu1 }
 0x6ec   : > { %2380 = vst [vmem:[%s3181_s16 + $0x8f8] sm:$0xff] %v2016_v22 }
 0x6ef   : > { %v1986_v46 = vpop.trf.xlu0 }
 0x6f0   : > { %2268 = vst [vmem:[%s3181_s16 + $0x578] sm:$0xff] %v1986_v46  ;;  %v2049_v24 = vpop.trf.xlu2 }
 0x6f1   : > { %2516 = vst [vmem:[%s3181_s16 + $0xd38] sm:$0xff] %v2049_v24 }
 0x6f3   : > { %2071 = vxpose.xlu0.b32.cont [11/16] %v787_v47, 128  ;;  %v2017_v25 = vpop.trf.xlu1 }
 0x6f4   : > { %2388 = vst [vmem:[%s3181_s16 + $0x938] sm:$0xff] %v2017_v25 }
 0x6f7   : > { %v1987_v52 = vpop.trf.xlu0 }
 0x6f8   : > { %2276 = vst [vmem:[%s3181_s16 + $0x5b8] sm:$0xff] %v1987_v52  ;;  %v2050_v27 = vpop.trf.xlu2 }
 0x6f9   : > { %2524 = vst [vmem:[%s3181_s16 + $0xd78] sm:$0xff] %v2050_v27 }
 0x6fb   : > { %2072 = vxpose.xlu0.b32.cont [12/16] %v792_v53, 128  ;;  %v2018_v28 = vpop.trf.xlu1 }
 0x6fc   : > { %2396 = vst [vmem:[%s3181_s16 + $0x978] sm:$0xff] %v2018_v28 }
 0x6ff   : > { %v1988_v58 = vpop.trf.xlu0 }
 0x700   : > { %2284 = vst [vmem:[%s3181_s16 + $0x5f8] sm:$0xff] %v1988_v58  ;;  %v2051_v30 = vpop.trf.xlu2 }
 0x701   : > { %2532 = vst [vmem:[%s3181_s16 + $0xdb8] sm:$0xff] %v2051_v30 }
 0x703   : > { %2073 = vxpose.xlu0.b32.cont [13/16] %v797_v59, 128  ;;  %v2019_v31 = vpop.trf.xlu1 }
 0x704   : > { %2404 = vst [vmem:[%s3181_s16 + $0x9b8] sm:$0xff] %v2019_v31 }
 0x707   : > { %v1989_v63 = vpop.trf.xlu0 }
 0x708   : > { %2292 = vst [vmem:[%s3181_s16 + $0x638] sm:$0xff] %v1989_v63  ;;  %v2052_v33 = vpop.trf.xlu2 }
 0x709   : > { %2540 = vst [vmem:[%s3181_s16 + $0xdf8] sm:$0xff] %v2052_v33 }
 0x70b   : > { %2074 = vxpose.xlu0.b32.cont [14/16] %v802_v0, 128  ;;  %v2020_v34 = vpop.trf.xlu1 }
 0x70c   : > { %2412 = vst [vmem:[%s3181_s16 + $0x9f8] sm:$0xff] %v2020_v34 }
 0x70f   : > { %v1990_v3 = vpop.trf.xlu0 }
 0x710   : > { %2300 = vst [vmem:[%s3181_s16 + $0x678] sm:$0xff] %v1990_v3  ;;  %v2053_v36 = vpop.trf.xlu2 }
 0x711   : > { %2548 = vst [vmem:[%s3181_s16 + $0xe38] sm:$0xff] %v2053_v36 }
 0x713   : > { %2075 = vxpose.xlu0.b32.cont [15/16] %v807_v4, 128  ;;  %v2021_v37 = vpop.trf.xlu1 }
 0x714   : > { %2420 = vst [vmem:[%s3181_s16 + $0xa38] sm:$0xff] %v2021_v37 }
 0x717   : > { %v1991_v7 = vpop.trf.xlu0 }
 0x718   : > { %2308 = vst [vmem:[%s3181_s16 + $0x6b8] sm:$0xff] %v1991_v7  ;;  %v2054_v39 = vpop.trf.xlu2 }
 0x719   : > { %2556 = vst [vmem:[%s3181_s16 + $0xe78] sm:$0xff] %v2054_v39 }
 0x71b   : > { %2076 = vxpose.xlu0.b32.end [16/16] %v812_v8, 128  ;;  %v2022_v40 = vpop.trf.xlu1 }
 0x71c   : > { %2428 = vst [vmem:[%s3181_s16 + $0xa78] sm:$0xff] %v2022_v40 }
 0x71f   : > { %v1992_v11 = vpop.trf.xlu0 }
 0x720   : > { %2316 = vst [vmem:[%s3181_s16 + $0x6f8] sm:$0xff] %v1992_v11  ;;  %v2055_v42 = vpop.trf.xlu2 }
 0x721   : > { %2564 = vst [vmem:[%s3181_s16 + $0xeb8] sm:$0xff] %v2055_v42 }
 0x723   : > { %v2023_v43 = vpop.trf.xlu1 }
 0x724   : > { %2436 = vst [vmem:[%s3181_s16 + $0xab8] sm:$0xff] %v2023_v43 }
 0x727   : > { %v1993_v14 = vpop.trf.xlu0 }
 0x728   : > { %2324 = vst [vmem:[%s3181_s16 + $0x738] sm:$0xff] %v1993_v14  ;;  %v2056_v45 = vpop.trf.xlu2 }
 0x729   : > { %2572 = vst [vmem:[%s3181_s16 + $0xef8] sm:$0xff] %v2056_v45 }
 0x72b   : > { %v2024_v46 = vpop.trf.xlu1 }
 0x72c   : > { %2444 = vst [vmem:[%s3181_s16 + $0xaf8] sm:$0xff] %v2024_v46 }
 0x72f   : > { %v1994_v17 = vpop.trf.xlu0 }
 0x730   : > { %2332 = vst [vmem:[%s3181_s16 + $0x778] sm:$0xff] %v1994_v17  ;;  %v2057_v48 = vpop.trf.xlu2 }
 0x731   : > { %2580 = vst [vmem:[%s3181_s16 + $0xf38] sm:$0xff] %v2057_v48 }
 0x733   : > { %v2025_v49 = vpop.trf.xlu1 }
 0x734   : > { %2452 = vst [vmem:[%s3181_s16 + $0xb38] sm:$0xff] %v2025_v49 }
 0x737   : > { %v1995_v20 = vpop.trf.xlu0 }
 0x738   : > { %2340 = vst [vmem:[%s3181_s16 + $0x7b8] sm:$0xff] %v1995_v20  ;;  %v2058_v51 = vpop.trf.xlu2 }
 0x739   : > { %2588 = vst [vmem:[%s3181_s16 + $0xf78] sm:$0xff] %v2058_v51 }
 0x73b   : > { %v2026_v52 = vpop.trf.xlu1 }
 0x73c   : > { %2460 = vst [vmem:[%s3181_s16 + $0xb78] sm:$0xff] %v2026_v52 }
 0x73f   : > { %v1996_v23 = vpop.trf.xlu0 }
 0x740   : > { %2348 = vst [vmem:[%s3181_s16 + $0x7f8] sm:$0xff] %v1996_v23  ;;  %v2059_v54 = vpop.trf.xlu2 }
 0x741   : > { %2596 = vst [vmem:[%s3181_s16 + $0xfb8] sm:$0xff] %v2059_v54 }
 0x743   : > { %v2027_v55 = vpop.trf.xlu1 }
 0x744   : > { %2468 = vst [vmem:[%s3181_s16 + $0xbb8] sm:$0xff] %v2027_v55 }
 0x747   : > { %v2077_v26 = vpop.trf.xlu0 }
 0x748   : > { %2612 = vst [vmem:[%s3181_s16 + $0x1038] sm:$0xff] %v2077_v26  ;;  %v2060_v57 = vpop.trf.xlu2 }
 0x749   : > { %2604 = vst [vmem:[%s3181_s16 + $0xff8] sm:$0xff] %v2060_v57 }
 0x74b   : > { %v2028_v58 = vpop.trf.xlu1 }
 0x74c   : > { %2476 = vst [vmem:[%s3181_s16 + $0xbf8] sm:$0xff] %v2028_v58 }
 0x74f   : > { %v2078_v29 = vpop.trf.xlu0 }
 0x750   : > { %2620 = vst [vmem:[%s3181_s16 + $0x1078] sm:$0xff] %v2078_v29 }
 0x757   : > { %v2079_v32 = vpop.trf.xlu0 }
 0x758   : > { %2628 = vst [vmem:[%s3181_s16 + $0x10b8] sm:$0xff] %v2079_v32 }
 0x75f   : > { %v2080_v35 = vpop.trf.xlu0 }
 0x760   : > { %2636 = vst [vmem:[%s3181_s16 + $0x10f8] sm:$0xff] %v2080_v35 }
 0x767   : > { %v2081_v38 = vpop.trf.xlu0 }
 0x768   : > { %2644 = vst [vmem:[%s3181_s16 + $0x1138] sm:$0xff] %v2081_v38 }
 0x76f   : > { %v2082_v41 = vpop.trf.xlu0 }
 0x770   : > { %2652 = vst [vmem:[%s3181_s16 + $0x1178] sm:$0xff] %v2082_v41 }
 0x777   : > { %v2083_v44 = vpop.trf.xlu0 }
 0x778   : > { %2660 = vst [vmem:[%s3181_s16 + $0x11b8] sm:$0xff] %v2083_v44 }
 0x77f   : > { %v2084_v47 = vpop.trf.xlu0 }
 0x780   : > { %2668 = vst [vmem:[%s3181_s16 + $0x11f8] sm:$0xff] %v2084_v47 }
 0x787   : > { %v2085_v50 = vpop.trf.xlu0 }
 0x788   : > { %2676 = vst [vmem:[%s3181_s16 + $0x1238] sm:$0xff] %v2085_v50 }
 0x78f   : > { %v2086_v53 = vpop.trf.xlu0 }
 0x790   : > { %2684 = vst [vmem:[%s3181_s16 + $0x1278] sm:$0xff] %v2086_v53 }
 0x797   : > { %v2087_v56 = vpop.trf.xlu0 }
 0x798   : > { %2692 = vst [vmem:[%s3181_s16 + $0x12b8] sm:$0xff] %v2087_v56 }
 0x79f   : > { %v2088_v59 = vpop.trf.xlu0 }
 0x7a0   : > { %2700 = vst [vmem:[%s3181_s16 + $0x12f8] sm:$0xff] %v2088_v59 }
 0x7a7   : > { %v2089_v60 = vpop.trf.xlu0 }
 0x7a8   : > { %2708 = vst [vmem:[%s3181_s16 + $0x1338] sm:$0xff] %v2089_v60 }
 0x7af   : > { %v2090_v61 = vpop.trf.xlu0 }
 0x7b0   : > { %2716 = vst [vmem:[%s3181_s16 + $0x1378] sm:$0xff] %v2090_v61 }
 0x7b7   : > { %v2091_v62 = vpop.trf.xlu0 }
 0x7b8   : > { %2724 = vst [vmem:[%s3181_s16 + $0x13b8] sm:$0xff] %v2091_v62 }
 0x7bf   : > { %v2092_v63 = vpop.trf.xlu0 }
 0x7c0   : > { %2732 = vst [vmem:[%s3181_s16 + $0x13f8] sm:$0xff] %v2092_v63 }
 0x7c1   : > { %2984 = shalt.err (!%p2981_p13)
}
 0x7c2   : > { %s3043_s4 = smov 1024   ;;  %s3044_s5 = smov 64  }
 0x7c3   : > { %2863 = dma.vmem_to_hbm [thread:$0]  (%p3106_p9), %s2752_s24, 81920, %s2754_s25, %s2734_s26, %s3043_s4, %s3043_s4, %s3044_s5  }
 0x7c4 PF: > { %s2768_s12 = sand.u32 1, %s3019_s6   ;;  %p2870_p0 = pnand %p2851_p12, %p3113_p11 }
 0x7c5   : > { %s2769_s13 = scalar_lea.sflag [#allocation4], %s2768_s12 }
 0x7c6   : > { %p2871_p1 = pneg %p2870_p0 }
 0x7c8   : > { %3014 = dma.done.wait (%p2871_p1), %s2769_s13, 81920  }
 0x7c9   : > { %3016 = vsyncadd (%p2871_p1), %s2769_s13, 4294885376  ;;  %s17_s11 = sadd.s32 1, %s3039_s11   ;;  %s4470_s6 = smov %s3023_s7 }
 0x7ca   : > { %p14_p2 = scmp.ge.s32.totalorder %s17_s11, 4   ;;  %s4471_s7 = smov %s3027_s8 }
 0x7cb   : > { %s4472_s8 = smov %s3111_s20  ;;  %s4473_s9 = smov %s3035_s10 }
 0x7cc   : > { %s4474_s10 = smov %s4476_s14  ;;  %16 = sbr.rel (!%p14_p2) target bundleno = 6 (0x6), region = 69 }
 0x7d1   :  { %2775 = vsyncpa [#allocation3], 1 }
 0x7d2   :  { %2777 = vsyncpa [#allocation3 + $0x1], 1 }
 0x7d3   :  { %2778 = vsyncpa [#allocation4], 1 }
 0x7d4   :  { %2780 = vsyncpa [#allocation4 + $0x1], 1 }

</bundles_post_ra>
